<compile_context>
chip_gen: v6e
topology: v6e:2x2x1
jax: 0.10.0
libtpu: 0.0.40
codegen_flags: <defaults>
</compile_context>

<pallas_src>
from functools import partial

import jax
import jax.numpy as jnp
from jax.experimental import pallas as pl
from jax.experimental.pallas import tpu as pltpu


# ----------------------------------------------------------------------------
# Pallas kernel: fused multi-head attention for one (variant, batch-block) tile.
# ----------------------------------------------------------------------------
def _mha_kernel(x_ref, wq_ref, wk_ref, wv_ref, bq_ref, bk_ref, bv_ref,
                wproj_ref, bproj_ref, mask_ref, o_ref, *, num_heads, scale):
    # x_ref:     (1, Bt, N, C)  batch block of one variant (x or x_proj)
    # w{q,k,v}_ref: (1, C, C)   pre-transposed per-variant projection weights
    # b{q,k,v}_ref: (1, C)      f32
    # wproj_ref: (C, C)         pre-transposed proj weight
    # bproj_ref: (1, C)         f32
    # mask_ref:  (N, N)         additive attention mask, f32
    # o_ref:     (1, Bt, N, C)
    _, Bt, N, C = x_ref.shape
    H = num_heads
    D = C // H
    M = Bt * N          # MXU M dimension for the projection matmuls
    G = Bt * H          # single leading batch dim for the attention dots

    x = x_ref[0]                       # (Bt, N, C) compute dtype
    cdt = x.dtype
    xf = x.reshape(M, C)               # free merge of leading dims

    # --- QKV projections on the batch-flattened operand, f32 accumulation ---
    # (softmax scale folded into q: cheaper than scaling the (G,N,N) scores)
    q = (jnp.dot(xf, wq_ref[0], preferred_element_type=jnp.float32)
         + bq_ref[...]) * scale
    k = jnp.dot(xf, wk_ref[0], preferred_element_type=jnp.float32) + bk_ref[...]
    v = jnp.dot(xf, wv_ref[0], preferred_element_type=jnp.float32) + bv_ref[...]

    # --- one relayout per operand: (M, H, D) -> (H, M, D) -> (H*Bt, N, D) ---
    def to_heads(t):
        t = t.astype(cdt).reshape(M, H, D)
        t = jnp.transpose(t, (1, 0, 2))      # (H, M, D)
        return t.reshape(G, N, D)            # row-major split/merge, no movement

    qh = to_heads(q)
    kh = to_heads(k)
    vh = to_heads(v)

    # --- attention scores: leading-batch dot_general, f32 softmax ---
    s = jnp.einsum('gnd,gmd->gnm', qh, kh,
                   preferred_element_type=jnp.float32)        # (G, N, N)
    s = s + mask_ref[...][None]
    s = s - jnp.max(s, axis=-1, keepdims=True)
    p = jnp.exp(s)
    # normalization via EUP approximate reciprocal (frees VALU slots)
    p = p * pl.reciprocal(jnp.sum(p, axis=-1, keepdims=True), approx=True)

    o = jnp.einsum('gnm,gmd->gnd', p.astype(cdt), vh,
                   preferred_element_type=jnp.float32)        # (G, N, D)

    # --- exactly one relayout back: (H*Bt, N, D) -> (M, C) ---
    o = o.reshape(H, M, D)
    o = jnp.transpose(o, (1, 0, 2)).reshape(M, C)

    # --- output projection, single full-width store ---
    y = jnp.dot(o.astype(cdt), wproj_ref[...],
                preferred_element_type=jnp.float32) + bproj_ref[...]
    o_ref[0] = y.reshape(Bt, N, C).astype(o_ref.dtype)


# ----------------------------------------------------------------------------
# Wrapper: grid = (variant, batch-blocks), single-buffered constant operands.
# ----------------------------------------------------------------------------
def _pick_batch_tile(B, N, C, H, itemsize, vmem_budget):
    """Largest divisor Bt of B whose per-grid-step working set fits the budget."""
    best = 1
    for bt in range(1, B + 1):
        if B % bt:
            continue
        M = bt * N
        const_b = 4 * C * C * itemsize + 4 * C * 4 + N * N * 4   # weights+bias+mask (1x)
        io_b = 2 * 2 * M * C * itemsize                          # x & out blocks (2x)
        tmp_b = (5 * M * C + 2 * bt * H * N * N) * 4             # f32 q/k/v, scores, pv/proj
        if const_b + io_b + tmp_b <= vmem_budget:
            best = bt
    return best


def fused_mha_pallas(xs, wq_t, wk_t, wv_t, b_q, b_k, b_v, wproj_t, b_proj,
                     attn_mask, *, num_heads, scale,
                     vmem_limit_bytes=32 * 1024 * 1024):
    """Run the fused MHA kernel over a (variant=2, batch-blocks) grid.

    xs:          (2, B, N, C) stacked [x; x_proj]          (compute dtype)
    w{q,k,v}_t:  (2, C, C)    stacked pre-transposed per-variant weights
    b_{q,k,v}:   (1, C)       f32 biases
    wproj_t:     (C, C)       pre-transposed proj weight
    b_proj:      (1, C)       f32
    attn_mask:   (N, N)       f32 additive mask
    returns      (2, B, N, C)
    """
    V, B, N, C = xs.shape
    itemsize = jnp.dtype(xs.dtype).itemsize
    Bt = _pick_batch_tile(B, N, C, num_heads, itemsize,
                          vmem_budget=vmem_limit_bytes // 2)

    def _call(single_buffer):
        def cspec(shape, index_map):
            # Operands whose block index never changes along the batch axis:
            # single-buffer them to halve their VMEM footprint.
            if single_buffer:
                return pl.BlockSpec(shape, index_map,
                                    pipeline_mode=pl.Buffered(1))
            return pl.BlockSpec(shape, index_map)

        in_specs = [
            pl.BlockSpec((1, Bt, N, C), lambda v, b: (v, b, 0, 0)),   # xs
            cspec((1, C, C), lambda v, b: (v, 0, 0)),                 # wq_t
            cspec((1, C, C), lambda v, b: (v, 0, 0)),                 # wk_t
            cspec((1, C, C), lambda v, b: (v, 0, 0)),                 # wv_t
            cspec((1, C), lambda v, b: (0, 0)),                       # b_q
            cspec((1, C), lambda v, b: (0, 0)),                       # b_k
            cspec((1, C), lambda v, b: (0, 0)),                       # b_v
            cspec((C, C), lambda v, b: (0, 0)),                       # wproj_t
            cspec((1, C), lambda v, b: (0, 0)),                       # b_proj
            cspec((N, N), lambda v, b: (0, 0)),                       # mask
        ]
        out = pl.pallas_call(
            partial(_mha_kernel, num_heads=num_heads, scale=scale),
            out_shape=jax.ShapeDtypeStruct((V, B, N, C), xs.dtype),
            grid_spec=pltpu.PrefetchScalarGridSpec(
                num_scalar_prefetch=0,
                grid=(V, B // Bt),
                in_specs=in_specs,
                out_specs=pl.BlockSpec((1, Bt, N, C),
                                       lambda v, b: (v, b, 0, 0)),
            ),
            compiler_params=pltpu.CompilerParams(
                dimension_semantics=("parallel", "parallel"),
                vmem_limit_bytes=vmem_limit_bytes),
        )(xs, wq_t, wk_t, wv_t, b_q, b_k, b_v, wproj_t, b_proj, attn_mask)
        return jax.block_until_ready(out)

    try:
        return _call(True)
    except Exception:
        # Fallback if this JAX build rejects pipeline_mode=pl.Buffered(1);
        # identical math, default double-buffering.
        return _call(False)


# ----------------------------------------------------------------------------
# Parameter glue (mirrors the PyTorch weight manipulation).
# ----------------------------------------------------------------------------
def apply_subspace_scaling(k_w, v_w, scaling_mask, scale_params, spaces):
    """k_w/v_w += (k_w/v_w) @ S @ (Q Q^T - I) @ S^T per enabled subspace.
    Mirrors the PyTorch loop, including the `break` on the first disabled flag."""
    for mask_flag, scale_p, space in zip(scaling_mask, scale_params, spaces):
        if not mask_flag:
            break
        s = space.shape[1]
        cs = scale_p[:s, :s]
        cs = cs @ cs.T
        delta = cs - jnp.eye(s, dtype=cs.dtype)
        k_w = k_w + k_w @ space @ delta @ space.T
        v_w = v_w + v_w @ space @ delta @ space.T
    return k_w, v_w


def multimasked_lora_forward(x, x_proj, probs, params, *, num_heads,
                             attn_mask=None, expert_id=0, apply_lora=True,
                             compute_dtype=jnp.bfloat16):
    """JAX/Pallas equivalent of MultiHeadAttention_MultiMaskedLoRA.forward
    (training mode).  Matmul operands use `compute_dtype` (bf16 default for
    MXU peak on all generations); accumulation / softmax stay f32."""
    B, N, C = x.shape
    head_dim = C // num_heads
    scale = head_dim ** (-0.5)

    W = params["qkv_weight"]            # (3C, C)
    q_w, k_w, v_w = W[:C], W[C:2 * C], W[2 * C:3 * C]

    if apply_lora:
        k_w = k_w + params["lora_B_k"] @ params["lora_A_k"]
        v_w = v_w + params["lora_B_v"] @ params["lora_A_v"]

    # Variant 1: masked subspace-scaled k/v weights, applied to x_proj.
    k_w2, v_w2 = apply_subspace_scaling(
        k_w, v_w,
        params["scaling_mask"][expert_id],
        params["scale_param"][expert_id],
        params["space"][expert_id])

    # Pre-transpose ONCE (y = x @ W.T == x @ W_T), pre-split q/k/v, and stack
    # the two variants (variant 0 = LoRA-merged, variant 1 = subspace-scaled).
    wq_t = jnp.stack([q_w.T, q_w.T], axis=0).astype(compute_dtype)    # (2, C, C)
    wk_t = jnp.stack([k_w.T, k_w2.T], axis=0).astype(compute_dtype)   # (2, C, C)
    wv_t = jnp.stack([v_w.T, v_w2.T], axis=0).astype(compute_dtype)   # (2, C, C)
    wproj_t = params["proj_weight"].T.astype(compute_dtype)           # (C, C)

    b = params["qkv_bias"].astype(jnp.float32)
    b_q = b[:C].reshape(1, C)
    b_k = b[C:2 * C].reshape(1, C)
    b_v = b[2 * C:].reshape(1, C)
    b_proj = params["proj_bias"].reshape(1, C).astype(jnp.float32)

    if attn_mask is None:
        attn_mask = jnp.zeros((N, N), dtype=jnp.float32)
    attn_mask = attn_mask.astype(jnp.float32)

    xs = jnp.stack([x, x_proj], axis=0).astype(compute_dtype)         # (2, B, N, C)

    out = fused_mha_pallas(xs, wq_t, wk_t, wv_t, b_q, b_k, b_v,
                           wproj_t, b_proj, attn_mask,
                           num_heads=num_heads, scale=scale)
    x_out = out[0].astype(x.dtype)
    xp_out = out[1].astype(x_proj.dtype)
    return x_out, xp_out, probs


# ----------------------------------------------------------------------------
# Pure-JAX reference (mirrors the PyTorch math) for a correctness check.
# ----------------------------------------------------------------------------
def _ref_attention(x, w_qkv, b_qkv, w_proj, b_proj, mask, num_heads, scale):
    B, N, C = x.shape
    D = C // num_heads
    qkv = x @ w_qkv.T + b_qkv
    qkv = qkv.reshape(B, N, 3, num_heads, D).transpose(2, 0, 3, 1, 4)
    q, k, v = qkv[0], qkv[1], qkv[2]
    attn = jnp.einsum('bhnd,bhmd->bhnm', q, k) * scale
    attn = attn + mask[None, None]
    attn = jax.nn.softmax(attn, axis=-1)
    out = jnp.einsum('bhnm,bhmd->bhnd', attn, v)
    out = out.transpose(0, 2, 1, 3).reshape(B, N, C)
    return out @ w_proj.T + b_proj


# ----------------------------------------------------------------------------
if __name__ == "__main__":
    B, N, C = 2, 16, 32
    NUM_HEADS = 4
    LORA_RANK = 10
    SUBSPACE = 12          # subspace width for expert 0's first scaling slot
    dtype = jnp.float32

    key = jax.random.PRNGKey(0)
    ks = jax.random.split(key, 16)

    params = {
        "qkv_weight": jax.random.normal(ks[0], (3 * C, C), dtype) * 0.05,
        "qkv_bias":   jax.random.normal(ks[1], (3 * C,), dtype) * 0.05,
        "proj_weight": jax.random.normal(ks[2], (C, C), dtype) * 0.05,
        "proj_bias":  jax.random.normal(ks[3], (C,), dtype) * 0.05,
        # LoRA (deterministic non-zero B to exercise the merge path)
        "lora_A_k": jax.random.normal(ks[4], (LORA_RANK, C), dtype) * 0.05,
        "lora_B_k": jax.random.normal(ks[5], (C, LORA_RANK), dtype) * 0.05,
        "lora_A_v": jax.random.normal(ks[6], (LORA_RANK, C), dtype) * 0.05,
        "lora_B_v": jax.random.normal(ks[7], (C, LORA_RANK), dtype) * 0.05,
        # expert-0 masked scaling: one enabled subspace, second slot disabled
        "scaling_mask": {0: [True, False]},
        "scale_param": {0: [jnp.eye(C, dtype=dtype)
                            + 0.05 * jax.random.normal(ks[8], (C, C), dtype),
                            jnp.eye(C, dtype=dtype)]},
        "space": {0: [jax.random.normal(ks[9], (C, SUBSPACE), dtype) * 0.1,
                      jnp.zeros((C, 1), dtype)]},
    }

    x = jax.random.normal(ks[10], (B, N, C), dtype)
    x_proj = jax.random.normal(ks[11], (B, N, C), dtype)
    attn_mask = 0.1 * jax.random.normal(ks[12], (N, N), dtype)
    probs = []

    # ---- f32 run (tight correctness check) ----
    x_out, xp_out, probs = multimasked_lora_forward(
        x, x_proj, probs, params, num_heads=NUM_HEADS,
        attn_mask=attn_mask, expert_id=0, apply_lora=True,
        compute_dtype=jnp.float32)
    jax.block_until_ready((x_out, xp_out))

    # ---- correctness check against a pure-JAX reference ----
    scale = (C // NUM_HEADS) ** (-0.5)
    W = params["qkv_weight"]
    q_w, k_w, v_w = W[:C], W[C:2 * C], W[2 * C:3 * C]
    k_w = k_w + params["lora_B_k"] @ params["lora_A_k"]
    v_w = v_w + params["lora_B_v"] @ params["lora_A_v"]
    w1 = jnp.concatenate([q_w, k_w, v_w], axis=0)
    k_w2, v_w2 = apply_subspace_scaling(
        k_w, v_w, params["scaling_mask"][0], params["scale_param"][0],
        params["space"][0])
    w2 = jnp.concatenate([q_w, k_w2, v_w2], axis=0)

    ref_x = _ref_attention(x, w1, params["qkv_bias"], params["proj_weight"],
                           params["proj_bias"], attn_mask, NUM_HEADS, scale)
    ref_xp = _ref_attention(x_proj, w2, params["qkv_bias"],
                            params["proj_weight"], params["proj_bias"],
                            attn_mask, NUM_HEADS, scale)

    # approx reciprocal in the softmax -> slightly looser than pure-f32 bitwise
    assert jnp.allclose(x_out, ref_x, atol=2e-3, rtol=2e-3), "x mismatch"
    assert jnp.allclose(xp_out, ref_xp, atol=2e-3, rtol=2e-3), "x_proj mismatch"

    # ---- default bf16 matmul-operand path (MXU peak), relative-norm check ----
    xb, xpb, _ = multimasked_lora_forward(
        x, x_proj, [], params, num_heads=NUM_HEADS,
        attn_mask=attn_mask, expert_id=0, apply_lora=True)
    jax.block_until_ready((xb, xpb))
    rel_x = jnp.linalg.norm(xb.astype(jnp.float32) - ref_x) / jnp.linalg.norm(ref_x)
    rel_xp = jnp.linalg.norm(xpb.astype(jnp.float32) - ref_xp) / jnp.linalg.norm(ref_xp)
    assert float(rel_x) < 0.05 and float(rel_xp) < 0.05, "bf16 path mismatch"

    print("KERNEL_OK")
</pallas_src>

<mosaic_0001>
module attributes {stable_mosaic.version = 11 : i64} {
  func.func @_mha_kernel(%arg0: i32, %arg1: i32, %arg2: memref<1x2x16x32xf32, #tpu.memory_space<vmem>>, %arg3: memref<1x32x32xf32, #tpu.memory_space<vmem>>, %arg4: memref<1x32x32xf32, #tpu.memory_space<vmem>>, %arg5: memref<1x32x32xf32, #tpu.memory_space<vmem>>, %arg6: memref<1x32xf32, #tpu.memory_space<vmem>>, %arg7: memref<1x32xf32, #tpu.memory_space<vmem>>, %arg8: memref<1x32xf32, #tpu.memory_space<vmem>>, %arg9: memref<32x32xf32, #tpu.memory_space<vmem>>, %arg10: memref<1x32xf32, #tpu.memory_space<vmem>>, %arg11: memref<16x16xf32, #tpu.memory_space<vmem>>, %arg12: memref<1x2x16x32xf32, #tpu.memory_space<vmem>>) attributes {dimension_semantics = [#tpu.dimension_semantics<parallel>, #tpu.dimension_semantics<parallel>], iteration_bounds = array<i64: 2, 1>, scalar_prefetch = 0 : i64, scratch_operands = 0 : i64, tpu.core_type = #tpu.core_type<tc>, window_params = [{transform_indices = @transform_0, window_bounds = array<i64: 1, 2, 16, 32>}, {pipeline_mode = #tpu.pipeline_mode<synchronous>, transform_indices = @transform_1, window_bounds = array<i64: 1, 32, 32>}, {pipeline_mode = #tpu.pipeline_mode<synchronous>, transform_indices = @transform_2, window_bounds = array<i64: 1, 32, 32>}, {pipeline_mode = #tpu.pipeline_mode<synchronous>, transform_indices = @transform_3, window_bounds = array<i64: 1, 32, 32>}, {pipeline_mode = #tpu.pipeline_mode<synchronous>, transform_indices = @transform_4, window_bounds = array<i64: 1, 32>}, {pipeline_mode = #tpu.pipeline_mode<synchronous>, transform_indices = @transform_5, window_bounds = array<i64: 1, 32>}, {pipeline_mode = #tpu.pipeline_mode<synchronous>, transform_indices = @transform_6, window_bounds = array<i64: 1, 32>}, {pipeline_mode = #tpu.pipeline_mode<synchronous>, transform_indices = @transform_7, window_bounds = array<i64: 32, 32>}, {pipeline_mode = #tpu.pipeline_mode<synchronous>, transform_indices = @transform_8, window_bounds = array<i64: 1, 32>}, {pipeline_mode = #tpu.pipeline_mode<synchronous>, transform_indices = @transform_9, window_bounds = array<i64: 16, 16>}, {transform_indices = @transform_10, window_bounds = array<i64: 1, 2, 16, 32>}]} {
    %c0 = arith.constant 0 : index
    %c0_0 = arith.constant 0 : index
    %c0_1 = arith.constant 0 : index
    %c0_2 = arith.constant 0 : index
    %0 = vector.load %arg2[%c0, %c0_0, %c0_1, %c0_2] : memref<1x2x16x32xf32, #tpu.memory_space<vmem>>, vector<1x2x16x32xf32>
    %1 = vector.shape_cast %0 : vector<1x2x16x32xf32> to vector<2x16x32xf32>
    %2 = vector.shape_cast %1 : vector<2x16x32xf32> to vector<32x32xf32>
    %c0_3 = arith.constant 0 : index
    %c0_4 = arith.constant 0 : index
    %c0_5 = arith.constant 0 : index
    %3 = vector.load %arg3[%c0_3, %c0_4, %c0_5] : memref<1x32x32xf32, #tpu.memory_space<vmem>>, vector<1x32x32xf32>
    %4 = vector.shape_cast %3 : vector<1x32x32xf32> to vector<32x32xf32>
    %cst = arith.constant dense<0.000000e+00> : vector<32x32xf32>
    %5 = tpu.matmul %2, %4, %cst {dimension_numbers = #tpu.dot_dimension_numbers<[1], [0], [0], [1], [0, 0, 1, 1], [], []>} : vector<32x32xf32>, vector<32x32xf32>, vector<32x32xf32> -> vector<32x32xf32>
    %c0_6 = arith.constant 0 : index
    %c0_7 = arith.constant 0 : index
    %6 = vector.load %arg6[%c0_6, %c0_7] : memref<1x32xf32, #tpu.memory_space<vmem>>, vector<1x32xf32>
    %7 = vector.broadcast %6 : vector<1x32xf32> to vector<32x32xf32>
    %8 = arith.addf %5, %7 : vector<32x32xf32>
    %cst_8 = arith.constant 0.353553385 : f32
    %9 = vector.broadcast %cst_8 : f32 to vector<32x32xf32>
    %10 = arith.mulf %8, %9 : vector<32x32xf32>
    %c0_9 = arith.constant 0 : index
    %c0_10 = arith.constant 0 : index
    %c0_11 = arith.constant 0 : index
    %11 = vector.load %arg4[%c0_9, %c0_10, %c0_11] : memref<1x32x32xf32, #tpu.memory_space<vmem>>, vector<1x32x32xf32>
    %12 = vector.shape_cast %11 : vector<1x32x32xf32> to vector<32x32xf32>
    %cst_12 = arith.constant dense<0.000000e+00> : vector<32x32xf32>
    %13 = tpu.matmul %2, %12, %cst_12 {dimension_numbers = #tpu.dot_dimension_numbers<[1], [0], [0], [1], [0, 0, 1, 1], [], []>} : vector<32x32xf32>, vector<32x32xf32>, vector<32x32xf32> -> vector<32x32xf32>
    %c0_13 = arith.constant 0 : index
    %c0_14 = arith.constant 0 : index
    %14 = vector.load %arg7[%c0_13, %c0_14] : memref<1x32xf32, #tpu.memory_space<vmem>>, vector<1x32xf32>
    %15 = vector.broadcast %14 : vector<1x32xf32> to vector<32x32xf32>
    %16 = arith.addf %13, %15 : vector<32x32xf32>
    %c0_15 = arith.constant 0 : index
    %c0_16 = arith.constant 0 : index
    %c0_17 = arith.constant 0 : index
    %17 = vector.load %arg5[%c0_15, %c0_16, %c0_17] : memref<1x32x32xf32, #tpu.memory_space<vmem>>, vector<1x32x32xf32>
    %18 = vector.shape_cast %17 : vector<1x32x32xf32> to vector<32x32xf32>
    %cst_18 = arith.constant dense<0.000000e+00> : vector<32x32xf32>
    %19 = tpu.matmul %2, %18, %cst_18 {dimension_numbers = #tpu.dot_dimension_numbers<[1], [0], [0], [1], [0, 0, 1, 1], [], []>} : vector<32x32xf32>, vector<32x32xf32>, vector<32x32xf32> -> vector<32x32xf32>
    %c0_19 = arith.constant 0 : index
    %c0_20 = arith.constant 0 : index
    %20 = vector.load %arg8[%c0_19, %c0_20] : memref<1x32xf32, #tpu.memory_space<vmem>>, vector<1x32xf32>
    %21 = vector.broadcast %20 : vector<1x32xf32> to vector<32x32xf32>
    %22 = arith.addf %19, %21 : vector<32x32xf32>
    %23 = vector.shape_cast %10 : vector<32x32xf32> to vector<32x4x8xf32>
    %24 = tpu.transpose %23, [1, 0, 2] : vector<32x4x8xf32> -> vector<4x32x8xf32>
    %25 = vector.shape_cast %24 : vector<4x32x8xf32> to vector<8x16x8xf32>
    %26 = vector.shape_cast %16 : vector<32x32xf32> to vector<32x4x8xf32>
    %27 = tpu.transpose %26, [1, 0, 2] : vector<32x4x8xf32> -> vector<4x32x8xf32>
    %28 = vector.shape_cast %27 : vector<4x32x8xf32> to vector<8x16x8xf32>
    %29 = vector.shape_cast %22 : vector<32x32xf32> to vector<32x4x8xf32>
    %30 = tpu.transpose %29, [1, 0, 2] : vector<32x4x8xf32> -> vector<4x32x8xf32>
    %31 = vector.shape_cast %30 : vector<4x32x8xf32> to vector<8x16x8xf32>
    "tpu.trace_start"() <{level = 10 : i32, message = "gnd,gmd->gnm"}> : () -> ()
    %cst_21 = arith.constant dense<0.000000e+00> : vector<8x16x16xf32>
    %32 = tpu.matmul %25, %28, %cst_21 {dimension_numbers = #tpu.dot_dimension_numbers<[2], [2], [1], [1], [0, 0, 0, 1, 1, 1], [0], [0]>} : vector<8x16x8xf32>, vector<8x16x8xf32>, vector<8x16x16xf32> -> vector<8x16x16xf32>
    "tpu.trace_stop"() : () -> ()
    %c0_22 = arith.constant 0 : index
    %c0_23 = arith.constant 0 : index
    %33 = vector.load %arg11[%c0_22, %c0_23] : memref<16x16xf32, #tpu.memory_space<vmem>>, vector<16x16xf32>
    %34 = vector.shape_cast %33 : vector<16x16xf32> to vector<1x16x16xf32>
    %35 = vector.broadcast %34 : vector<1x16x16xf32> to vector<8x16x16xf32>
    %36 = arith.addf %32, %35 : vector<8x16x16xf32>
    %cst_24 = arith.constant dense<0xFF800000> : vector<8x16xf32>
    %37 = vector.multi_reduction <maximumf>, %36, %cst_24 [2] : vector<8x16x16xf32> to vector<8x16xf32>
    %38 = vector.shape_cast %37 : vector<8x16xf32> to vector<8x16x1xf32>
    %39 = vector.broadcast %38 : vector<8x16x1xf32> to vector<8x16x16xf32>
    %40 = arith.subf %36, %39 : vector<8x16x16xf32>
    %41 = math.exp %40 : vector<8x16x16xf32>
    %cst_25 = arith.constant dense<0.000000e+00> : vector<8x16xf32>
    %42 = vector.multi_reduction <add>, %41, %cst_25 [2] : vector<8x16x16xf32> to vector<8x16xf32>
    %43 = vector.shape_cast %42 : vector<8x16xf32> to vector<8x16x1xf32>
    %44 = tpu.reciprocal %43 {approx = true} : vector<8x16x1xf32> -> vector<8x16x1xf32>
    %45 = vector.broadcast %44 : vector<8x16x1xf32> to vector<8x16x16xf32>
    %46 = arith.mulf %41, %45 : vector<8x16x16xf32>
    "tpu.trace_start"() <{level = 10 : i32, message = "gnm,gmd->gnd"}> : () -> ()
    %cst_26 = arith.constant dense<0.000000e+00> : vector<8x16x8xf32>
    %47 = tpu.matmul %46, %31, %cst_26 {dimension_numbers = #tpu.dot_dimension_numbers<[2], [1], [1], [2], [0, 0, 0, 1, 1, 2], [0], [0]>} : vector<8x16x16xf32>, vector<8x16x8xf32>, vector<8x16x8xf32> -> vector<8x16x8xf32>
    "tpu.trace_stop"() : () -> ()
    %48 = vector.shape_cast %47 : vector<8x16x8xf32> to vector<4x32x8xf32>
    %49 = tpu.transpose %48, [1, 0, 2] : vector<4x32x8xf32> -> vector<32x4x8xf32>
    %50 = vector.shape_cast %49 : vector<32x4x8xf32> to vector<32x32xf32>
    %c0_27 = arith.constant 0 : index
    %c0_28 = arith.constant 0 : index
    %51 = vector.load %arg9[%c0_27, %c0_28] : memref<32x32xf32, #tpu.memory_space<vmem>>, vector<32x32xf32>
    %cst_29 = arith.constant dense<0.000000e+00> : vector<32x32xf32>
    %52 = tpu.matmul %50, %51, %cst_29 {dimension_numbers = #tpu.dot_dimension_numbers<[1], [0], [0], [1], [0, 0, 1, 1], [], []>} : vector<32x32xf32>, vector<32x32xf32>, vector<32x32xf32> -> vector<32x32xf32>
    %c0_30 = arith.constant 0 : index
    %c0_31 = arith.constant 0 : index
    %53 = vector.load %arg10[%c0_30, %c0_31] : memref<1x32xf32, #tpu.memory_space<vmem>>, vector<1x32xf32>
    %54 = vector.broadcast %53 : vector<1x32xf32> to vector<32x32xf32>
    %55 = arith.addf %52, %54 : vector<32x32xf32>
    %56 = vector.shape_cast %55 : vector<32x32xf32> to vector<2x16x32xf32>
    %c0_32 = arith.constant 0 : index
    %c0_33 = arith.constant 0 : index
    %c0_34 = arith.constant 0 : index
    %c0_35 = arith.constant 0 : index
    %57 = vector.load %arg12[%c0_32, %c0_33, %c0_34, %c0_35] : memref<1x2x16x32xf32, #tpu.memory_space<vmem>>, vector<1x2x16x32xf32>
    %58 = vector.shape_cast %57 : vector<1x2x16x32xf32> to vector<2x16x32xf32>
    %59 = vector.shape_cast %56 : vector<2x16x32xf32> to vector<1x2x16x32xf32>
    tpu.vector_store %arg12[%c0_32, %c0_33, %c0_34, %c0_35], %59 {strides = array<i32>} : memref<1x2x16x32xf32, #tpu.memory_space<vmem>>, vector<1x2x16x32xf32>,
    return
  }
  func.func @transform_0(%arg0: i32, %arg1: i32) -> (i32, i32, i32, i32) {
    %c0_i32 = arith.constant 0 : i32
    %c0_i32_0 = arith.constant 0 : i32
    %c0_i32_1 = arith.constant 0 : i32
    return %arg0, %arg1, %c0_i32, %c0_i32_0 : i32, i32, i32, i32
  }
  func.func @transform_1(%arg0: i32, %arg1: i32) -> (i32, i32, i32) {
    %c0_i32 = arith.constant 0 : i32
    %c0_i32_0 = arith.constant 0 : i32
    %c0_i32_1 = arith.constant 0 : i32
    return %arg0, %c0_i32, %c0_i32_0 : i32, i32, i32
  }
  func.func @transform_2(%arg0: i32, %arg1: i32) -> (i32, i32, i32) {
    %c0_i32 = arith.constant 0 : i32
    %c0_i32_0 = arith.constant 0 : i32
    %c0_i32_1 = arith.constant 0 : i32
    return %arg0, %c0_i32, %c0_i32_0 : i32, i32, i32
  }
  func.func @transform_3(%arg0: i32, %arg1: i32) -> (i32, i32, i32) {
    %c0_i32 = arith.constant 0 : i32
    %c0_i32_0 = arith.constant 0 : i32
    %c0_i32_1 = arith.constant 0 : i32
    return %arg0, %c0_i32, %c0_i32_0 : i32, i32, i32
  }
  func.func @transform_4(%arg0: i32, %arg1: i32) -> (i32, i32) {
    %c0_i32 = arith.constant 0 : i32
    %c0_i32_0 = arith.constant 0 : i32
    %c0_i32_1 = arith.constant 0 : i32
    return %c0_i32, %c0_i32_0 : i32, i32
  }
  func.func @transform_5(%arg0: i32, %arg1: i32) -> (i32, i32) {
    %c0_i32 = arith.constant 0 : i32
    %c0_i32_0 = arith.constant 0 : i32
    %c0_i32_1 = arith.constant 0 : i32
    return %c0_i32, %c0_i32_0 : i32, i32
  }
  func.func @transform_6(%arg0: i32, %arg1: i32) -> (i32, i32) {
    %c0_i32 = arith.constant 0 : i32
    %c0_i32_0 = arith.constant 0 : i32
    %c0_i32_1 = arith.constant 0 : i32
    return %c0_i32, %c0_i32_0 : i32, i32
  }
  func.func @transform_7(%arg0: i32, %arg1: i32) -> (i32, i32) {
    %c0_i32 = arith.constant 0 : i32
    %c0_i32_0 = arith.constant 0 : i32
    %c0_i32_1 = arith.constant 0 : i32
    return %c0_i32, %c0_i32_0 : i32, i32
  }
  func.func @transform_8(%arg0: i32, %arg1: i32) -> (i32, i32) {
    %c0_i32 = arith.constant 0 : i32
    %c0_i32_0 = arith.constant 0 : i32
    %c0_i32_1 = arith.constant 0 : i32
    return %c0_i32, %c0_i32_0 : i32, i32
  }
  func.func @transform_9(%arg0: i32, %arg1: i32) -> (i32, i32) {
    %c0_i32 = arith.constant 0 : i32
    %c0_i32_0 = arith.constant 0 : i32
    %c0_i32_1 = arith.constant 0 : i32
    return %c0_i32, %c0_i32_0 : i32, i32
  }
  func.func @transform_10(%arg0: i32, %arg1: i32) -> (i32, i32, i32, i32) {
    %c0_i32 = arith.constant 0 : i32
    %c0_i32_0 = arith.constant 0 : i32
    %c0_i32_1 = arith.constant 0 : i32
    return %arg0, %arg1, %c0_i32, %c0_i32_0 : i32, i32, i32, i32
  }
}

module attributes {stable_mosaic.version = 11 : i64} {
  func.func @_mha_kernel(%arg0: i32, %arg1: i32, %arg2: memref<1x2x16x32xf32, #tpu.memory_space<vmem>>, %arg3: memref<1x32x32xf32, #tpu.memory_space<vmem>>, %arg4: memref<1x32x32xf32, #tpu.memory_space<vmem>>, %arg5: memref<1x32x32xf32, #tpu.memory_space<vmem>>, %arg6: memref<1x32xf32, #tpu.memory_space<vmem>>, %arg7: memref<1x32xf32, #tpu.memory_space<vmem>>, %arg8: memref<1x32xf32, #tpu.memory_space<vmem>>, %arg9: memref<32x32xf32, #tpu.memory_space<vmem>>, %arg10: memref<1x32xf32, #tpu.memory_space<vmem>>, %arg11: memref<16x16xf32, #tpu.memory_space<vmem>>, %arg12: memref<1x2x16x32xf32, #tpu.memory_space<vmem>>) attributes {dimension_semantics = [#tpu.dimension_semantics<parallel>, #tpu.dimension_semantics<parallel>], iteration_bounds = array<i64: 2, 1>, scalar_prefetch = 0 : i64, scratch_operands = 0 : i64, tpu.core_type = #tpu.core_type<tc>, window_params = [{transform_indices = @transform_0, window_bounds = array<i64: 1, 2, 16, 32>}, {transform_indices = @transform_1, window_bounds = array<i64: 1, 32, 32>}, {transform_indices = @transform_2, window_bounds = array<i64: 1, 32, 32>}, {transform_indices = @transform_3, window_bounds = array<i64: 1, 32, 32>}, {pipeline_mode = #tpu.pipeline_mode<synchronous>, transform_indices = @transform_4, window_bounds = array<i64: 1, 32>}, {pipeline_mode = #tpu.pipeline_mode<synchronous>, transform_indices = @transform_5, window_bounds = array<i64: 1, 32>}, {pipeline_mode = #tpu.pipeline_mode<synchronous>, transform_indices = @transform_6, window_bounds = array<i64: 1, 32>}, {pipeline_mode = #tpu.pipeline_mode<synchronous>, transform_indices = @transform_7, window_bounds = array<i64: 32, 32>}, {pipeline_mode = #tpu.pipeline_mode<synchronous>, transform_indices = @transform_8, window_bounds = array<i64: 1, 32>}, {pipeline_mode = #tpu.pipeline_mode<synchronous>, transform_indices = @transform_9, window_bounds = array<i64: 16, 16>}, {transform_indices = @transform_10, window_bounds = array<i64: 1, 2, 16, 32>}]} {
    %c0 = arith.constant 0 : index
    %c0_0 = arith.constant 0 : index
    %c0_1 = arith.constant 0 : index
    %c0_2 = arith.constant 0 : index
    %0 = vector.load %arg2[%c0, %c0_0, %c0_1, %c0_2] : memref<1x2x16x32xf32, #tpu.memory_space<vmem>>, vector<1x2x16x32xf32>
    %1 = vector.shape_cast %0 : vector<1x2x16x32xf32> to vector<2x16x32xf32>
    %2 = vector.shape_cast %1 : vector<2x16x32xf32> to vector<32x32xf32>
    %c0_3 = arith.constant 0 : index
    %c0_4 = arith.constant 0 : index
    %c0_5 = arith.constant 0 : index
    %3 = vector.load %arg3[%c0_3, %c0_4, %c0_5] : memref<1x32x32xf32, #tpu.memory_space<vmem>>, vector<1x32x32xf32>
    %4 = vector.shape_cast %3 : vector<1x32x32xf32> to vector<32x32xf32>
    %cst = arith.constant dense<0.000000e+00> : vector<32x32xf32>
    %5 = tpu.matmul %2, %4, %cst {dimension_numbers = #tpu.dot_dimension_numbers<[1], [0], [0], [1], [0, 0, 1, 1], [], []>} : vector<32x32xf32>, vector<32x32xf32>, vector<32x32xf32> -> vector<32x32xf32>
    %c0_6 = arith.constant 0 : index
    %c0_7 = arith.constant 0 : index
    %6 = vector.load %arg6[%c0_6, %c0_7] : memref<1x32xf32, #tpu.memory_space<vmem>>, vector<1x32xf32>
    %7 = vector.broadcast %6 : vector<1x32xf32> to vector<32x32xf32>
    %8 = arith.addf %5, %7 : vector<32x32xf32>
    %cst_8 = arith.constant 0.353553385 : f32
    %9 = vector.broadcast %cst_8 : f32 to vector<32x32xf32>
    %10 = arith.mulf %8, %9 : vector<32x32xf32>
    %c0_9 = arith.constant 0 : index
    %c0_10 = arith.constant 0 : index
    %c0_11 = arith.constant 0 : index
    %11 = vector.load %arg4[%c0_9, %c0_10, %c0_11] : memref<1x32x32xf32, #tpu.memory_space<vmem>>, vector<1x32x32xf32>
    %12 = vector.shape_cast %11 : vector<1x32x32xf32> to vector<32x32xf32>
    %cst_12 = arith.constant dense<0.000000e+00> : vector<32x32xf32>
    %13 = tpu.matmul %2, %12, %cst_12 {dimension_numbers = #tpu.dot_dimension_numbers<[1], [0], [0], [1], [0, 0, 1, 1], [], []>} : vector<32x32xf32>, vector<32x32xf32>, vector<32x32xf32> -> vector<32x32xf32>
    %c0_13 = arith.constant 0 : index
    %c0_14 = arith.constant 0 : index
    %14 = vector.load %arg7[%c0_13, %c0_14] : memref<1x32xf32, #tpu.memory_space<vmem>>, vector<1x32xf32>
    %15 = vector.broadcast %14 : vector<1x32xf32> to vector<32x32xf32>
    %16 = arith.addf %13, %15 : vector<32x32xf32>
    %c0_15 = arith.constant 0 : index
    %c0_16 = arith.constant 0 : index
    %c0_17 = arith.constant 0 : index
    %17 = vector.load %arg5[%c0_15, %c0_16, %c0_17] : memref<1x32x32xf32, #tpu.memory_space<vmem>>, vector<1x32x32xf32>
    %18 = vector.shape_cast %17 : vector<1x32x32xf32> to vector<32x32xf32>
    %cst_18 = arith.constant dense<0.000000e+00> : vector<32x32xf32>
    %19 = tpu.matmul %2, %18, %cst_18 {dimension_numbers = #tpu.dot_dimension_numbers<[1], [0], [0], [1], [0, 0, 1, 1], [], []>} : vector<32x32xf32>, vector<32x32xf32>, vector<32x32xf32> -> vector<32x32xf32>
    %c0_19 = arith.constant 0 : index
    %c0_20 = arith.constant 0 : index
    %20 = vector.load %arg8[%c0_19, %c0_20] : memref<1x32xf32, #tpu.memory_space<vmem>>, vector<1x32xf32>
    %21 = vector.broadcast %20 : vector<1x32xf32> to vector<32x32xf32>
    %22 = arith.addf %19, %21 : vector<32x32xf32>
    %23 = vector.shape_cast %10 : vector<32x32xf32> to vector<32x4x8xf32>
    %24 = tpu.transpose %23, [1, 0, 2] : vector<32x4x8xf32> -> vector<4x32x8xf32>
    %25 = vector.shape_cast %24 : vector<4x32x8xf32> to vector<8x16x8xf32>
    %26 = vector.shape_cast %16 : vector<32x32xf32> to vector<32x4x8xf32>
    %27 = tpu.transpose %26, [1, 0, 2] : vector<32x4x8xf32> -> vector<4x32x8xf32>
    %28 = vector.shape_cast %27 : vector<4x32x8xf32> to vector<8x16x8xf32>
    %29 = vector.shape_cast %22 : vector<32x32xf32> to vector<32x4x8xf32>
    %30 = tpu.transpose %29, [1, 0, 2] : vector<32x4x8xf32> -> vector<4x32x8xf32>
    %31 = vector.shape_cast %30 : vector<4x32x8xf32> to vector<8x16x8xf32>
    "tpu.trace_start"() <{level = 10 : i32, message = "gnd,gmd->gnm"}> : () -> ()
    %cst_21 = arith.constant dense<0.000000e+00> : vector<8x16x16xf32>
    %32 = tpu.matmul %25, %28, %cst_21 {dimension_numbers = #tpu.dot_dimension_numbers<[2], [2], [1], [1], [0, 0, 0, 1, 1, 1], [0], [0]>} : vector<8x16x8xf32>, vector<8x16x8xf32>, vector<8x16x16xf32> -> vector<8x16x16xf32>
    "tpu.trace_stop"() : () -> ()
    %c0_22 = arith.constant 0 : index
    %c0_23 = arith.constant 0 : index
    %33 = vector.load %arg11[%c0_22, %c0_23] : memref<16x16xf32, #tpu.memory_space<vmem>>, vector<16x16xf32>
    %34 = vector.shape_cast %33 : vector<16x16xf32> to vector<1x16x16xf32>
    %35 = vector.broadcast %34 : vector<1x16x16xf32> to vector<8x16x16xf32>
    %36 = arith.addf %32, %35 : vector<8x16x16xf32>
    %cst_24 = arith.constant dense<0xFF800000> : vector<8x16xf32>
    %37 = vector.multi_reduction <maximumf>, %36, %cst_24 [2] : vector<8x16x16xf32> to vector<8x16xf32>
    %38 = vector.shape_cast %37 : vector<8x16xf32> to vector<8x16x1xf32>
    %39 = vector.broadcast %38 : vector<8x16x1xf32> to vector<8x16x16xf32>
    %40 = arith.subf %36, %39 : vector<8x16x16xf32>
    %41 = math.exp %40 : vector<8x16x16xf32>
    %cst_25 = arith.constant dense<0.000000e+00> : vector<8x16xf32>
    %42 = vector.multi_reduction <add>, %41, %cst_25 [2] : vector<8x16x16xf32> to vector<8x16xf32>
    %43 = vector.shape_cast %42 : vector<8x16xf32> to vector<8x16x1xf32>
    %44 = tpu.reciprocal %43 {approx = true} : vector<8x16x1xf32> -> vector<8x16x1xf32>
    %45 = vector.broadcast %44 : vector<8x16x1xf32> to vector<8x16x16xf32>
    %46 = arith.mulf %41, %45 : vector<8x16x16xf32>
    "tpu.trace_start"() <{level = 10 : i32, message = "gnm,gmd->gnd"}> : () -> ()
    %cst_26 = arith.constant dense<0.000000e+00> : vector<8x16x8xf32>
    %47 = tpu.matmul %46, %31, %cst_26 {dimension_numbers = #tpu.dot_dimension_numbers<[2], [1], [1], [2], [0, 0, 0, 1, 1, 2], [0], [0]>} : vector<8x16x16xf32>, vector<8x16x8xf32>, vector<8x16x8xf32> -> vector<8x16x8xf32>
    "tpu.trace_stop"() : () -> ()
    %48 = vector.shape_cast %47 : vector<8x16x8xf32> to vector<4x32x8xf32>
    %49 = tpu.transpose %48, [1, 0, 2] : vector<4x32x8xf32> -> vector<32x4x8xf32>
    %50 = vector.shape_cast %49 : vector<32x4x8xf32> to vector<32x32xf32>
    %c0_27 = arith.constant 0 : index
    %c0_28 = arith.constant 0 : index
    %51 = vector.load %arg9[%c0_27, %c0_28] : memref<32x32xf32, #tpu.memory_space<vmem>>, vector<32x32xf32>
    %cst_29 = arith.constant dense<0.000000e+00> : vector<32x32xf32>
    %52 = tpu.matmul %50, %51, %cst_29 {dimension_numbers = #tpu.dot_dimension_numbers<[1], [0], [0], [1], [0, 0, 1, 1], [], []>} : vector<32x32xf32>, vector<32x32xf32>, vector<32x32xf32> -> vector<32x32xf32>
    %c0_30 = arith.constant 0 : index
    %c0_31 = arith.constant 0 : index
    %53 = vector.load %arg10[%c0_30, %c0_31] : memref<1x32xf32, #tpu.memory_space<vmem>>, vector<1x32xf32>
    %54 = vector.broadcast %53 : vector<1x32xf32> to vector<32x32xf32>
    %55 = arith.addf %52, %54 : vector<32x32xf32>
    %56 = vector.shape_cast %55 : vector<32x32xf32> to vector<2x16x32xf32>
    %c0_32 = arith.constant 0 : index
    %c0_33 = arith.constant 0 : index
    %c0_34 = arith.constant 0 : index
    %c0_35 = arith.constant 0 : index
    %57 = vector.load %arg12[%c0_32, %c0_33, %c0_34, %c0_35] : memref<1x2x16x32xf32, #tpu.memory_space<vmem>>, vector<1x2x16x32xf32>
    %58 = vector.shape_cast %57 : vector<1x2x16x32xf32> to vector<2x16x32xf32>
    %59 = vector.shape_cast %56 : vector<2x16x32xf32> to vector<1x2x16x32xf32>
    tpu.vector_store %arg12[%c0_32, %c0_33, %c0_34, %c0_35], %59 {strides = array<i32>} : memref<1x2x16x32xf32, #tpu.memory_space<vmem>>, vector<1x2x16x32xf32>,
    return
  }
  func.func @transform_0(%arg0: i32, %arg1: i32) -> (i32, i32, i32, i32) {
    %c0_i32 = arith.constant 0 : i32
    %c0_i32_0 = arith.constant 0 : i32
    %c0_i32_1 = arith.constant 0 : i32
    return %arg0, %arg1, %c0_i32, %c0_i32_0 : i32, i32, i32, i32
  }
  func.func @transform_1(%arg0: i32, %arg1: i32) -> (i32, i32, i32) {
    %c0_i32 = arith.constant 0 : i32
    %c0_i32_0 = arith.constant 0 : i32
    %c0_i32_1 = arith.constant 0 : i32
    return %arg0, %c0_i32, %c0_i32_0 : i32, i32, i32
  }
  func.func @transform_2(%arg0: i32, %arg1: i32) -> (i32, i32, i32) {
    %c0_i32 = arith.constant 0 : i32
    %c0_i32_0 = arith.constant 0 : i32
    %c0_i32_1 = arith.constant 0 : i32
    return %arg0, %c0_i32, %c0_i32_0 : i32, i32, i32
  }
  func.func @transform_3(%arg0: i32, %arg1: i32) -> (i32, i32, i32) {
    %c0_i32 = arith.constant 0 : i32
    %c0_i32_0 = arith.constant 0 : i32
    %c0_i32_1 = arith.constant 0 : i32
    return %arg0, %c0_i32, %c0_i32_0 : i32, i32, i32
  }
  func.func @transform_4(%arg0: i32, %arg1: i32) -> (i32, i32) {
    %c0_i32 = arith.constant 0 : i32
    %c0_i32_0 = arith.constant 0 : i32
    %c0_i32_1 = arith.constant 0 : i32
    return %c0_i32, %c0_i32_0 : i32, i32
  }
  func.func @transform_5(%arg0: i32, %arg1: i32) -> (i32, i32) {
    %c0_i32 = arith.constant 0 : i32
    %c0_i32_0 = arith.constant 0 : i32
    %c0_i32_1 = arith.constant 0 : i32
    return %c0_i32, %c0_i32_0 : i32, i32
  }
  func.func @transform_6(%arg0: i32, %arg1: i32) -> (i32, i32) {
    %c0_i32 = arith.constant 0 : i32
    %c0_i32_0 = arith.constant 0 : i32
    %c0_i32_1 = arith.constant 0 : i32
    return %c0_i32, %c0_i32_0 : i32, i32
  }
  func.func @transform_7(%arg0: i32, %arg1: i32) -> (i32, i32) {
    %c0_i32 = arith.constant 0 : i32
    %c0_i32_0 = arith.constant 0 : i32
    %c0_i32_1 = arith.constant 0 : i32
    return %c0_i32, %c0_i32_0 : i32, i32
  }
  func.func @transform_8(%arg0: i32, %arg1: i32) -> (i32, i32) {
    %c0_i32 = arith.constant 0 : i32
    %c0_i32_0 = arith.constant 0 : i32
    %c0_i32_1 = arith.constant 0 : i32
    return %c0_i32, %c0_i32_0 : i32, i32
  }
  func.func @transform_9(%arg0: i32, %arg1: i32) -> (i32, i32) {
    %c0_i32 = arith.constant 0 : i32
    %c0_i32_0 = arith.constant 0 : i32
    %c0_i32_1 = arith.constant 0 : i32
    return %c0_i32, %c0_i32_0 : i32, i32
  }
  func.func @transform_10(%arg0: i32, %arg1: i32) -> (i32, i32, i32, i32) {
    %c0_i32 = arith.constant 0 : i32
    %c0_i32_0 = arith.constant 0 : i32
    %c0_i32_1 = arith.constant 0 : i32
    return %arg0, %arg1, %c0_i32, %c0_i32_0 : i32, i32, i32, i32
  }
}

</mosaic_0001>

<bundles_post_ra>
// kernel: tpu_custom_call.1
= control target key start
LH: loop header
LB: loop body
LE: loop exit
PB: predicated region body
PF: predicated region fallthrough
CT: control target
= control target key end

     0   :  { %s7291_s0 = inlined_call_operand.hbm [shape: f32[2,2,16,32], index: 0, kind: input, shape index: {}]   ;;  %s7292_s1 = inlined_call_operand.hbm [shape: f32[2,32,32], index: 1, kind: input, shape index: {}]   ;;  %s7293_s2 = inlined_call_operand.hbm [shape: f32[2,32,32], index: 2, kind: input, shape index: {}]   ;;  %s7294_s3 = inlined_call_operand.hbm [shape: f32[2,32,32], index: 3, kind: input, shape index: {}]   ;;  %s7295_s4 = inlined_call_operand.hbm [shape: f32[1,32], index: 4, kind: input, shape index: {}]   ;;  %s7296_s5 = inlined_call_operand.hbm [shape: f32[1,32], index: 5, kind: input, shape index: {}]   ;;  %s7297_s6 = inlined_call_operand.hbm [shape: f32[1,32], index: 6, kind: input, shape index: {}]   ;;  %s7298_s7 = inlined_call_operand.hbm [shape: f32[32,32], index: 7, kind: input, shape index: {}]   ;;  %s7299_s8 = inlined_call_operand.hbm [shape: f32[1,32], index: 8, kind: input, shape index: {}]   ;;  %s7300_s9 = inlined_call_operand.vmem [shape: f32[16,16], index: 9, kind: input, shape index: {}]   ;;  %s7301_s10 = inlined_call_operand.hbm [shape: f32[2,2,16,32], index: 10, kind: output, shape index: {}]  }
   0x1   :  { %7320 = sst [smem:[#allocation30_spill]] %s7291_s0 }
   0x2   :  { %7321 = sst [smem:[#allocation31_spill]] %s7292_s1 }
   0x3   :  { %7322 = sst [smem:[#allocation32_spill]] %s7300_s9 }
   0x4   :  { %7323 = sst [smem:[#allocation33_spill]] %s7301_s10 }
   0x5   :  { %15 = vsyncpa [#allocation3], 0 }
   0x6   :  { %17 = vsyncpa [#allocation3 + $0x1], 0 }
   0x7   :  { %18 = vsyncpa [#allocation6], 0 }
   0x8   :  { %19 = vsyncpa [#allocation9], 0 }
   0x9   :  { %20 = vsyncpa [#allocation12], 0 }
   0xa   :  { %21 = vsyncpa [#allocation15], 0 }
   0xb   :  { %22 = vsyncpa [#allocation4], 0 }
   0xc   :  { %24 = vsyncpa [#allocation4 + $0x1], 0  ;;  %s6045_s13 = smov 0   ;;  %s6047_s14 = smov 0  }
   0xd   :  { %s6049_s15 = smov 0   ;;  %s6051_s16 = smov 0  }
   0xe   :  { %s6053_s17 = smov 0   ;;  %s6055_s18 = smov 0  }
   0xf LB: > { %7324 = sst [smem:[#allocation25_spill]] %s5947_s13  ;;  %s5019_s19 = sadd.s32 4294967295, %s5967_s18   ;;  %s5967_s18 = sphi %s6055_s18, %s30_s18   ;;  %s5963_s17 = sphi %s6053_s17, %s7362_s17   ;;  %s5959_s16 = sphi %s6051_s16, %s7361_s16   ;;  %s5955_s15 = sphi %s6049_s15, %s7360_s15   ;;  %s5951_s14 = sphi %s6047_s14, %s7359_s14   ;;  %s5947_s13 = sphi %s6045_s13, %s7358_s13  }
  0x10   : > { %s5020_s20 = sadd.s32 4294967294, %s5967_s18   ;;  %p64_p0 = scmp.ne.s32.totalorder %s5951_s14, %s5947_s13 }
  0x11   : > { %p6077_p1 = scmp.eq.s32.totalorder %s5019_s19, 0  ;;  %p6081_p2 = scmp.eq.s32.totalorder %s5019_s19, 1 }
  0x12   : > { %p300_p3 = scmp.eq.s32.totalorder %s5020_s20, 1  ;;  %p5021_p5 = scmp.ge.s32.totalorder %s5967_s18, 1 }
  0x13   : > { %s7325_s21 = scalar_select %p6077_p1, 1, 0 }
  0x14   : > { %s7327_s22 = scalar_select %p6081_p2, 1, 0 }
  0x15   : > { %7326 = sst [smem:[#allocation26_spill]] %s7325_s21  ;;  %p6087_p4 = por %p6077_p1, %p64_p0 }
  0x16   : > { %p6092_p6 = por %p300_p3, %p64_p0  ;;  %p307_p7 = scmp.lt.s32.totalorder %s5967_s18, 3 }
  0x17   : > { %s7328_s23 = scalar_select %p6087_p4, 1, 0 }
  0x18   : > { %s7330_s24 = scalar_select %p6092_p6, 1, 0 }
  0x19   : > { %7329 = sst [smem:[#allocation27_spill]] %s7328_s23  ;;  %s6097_s25 = sshll.u32 %s5959_s16, 9 }
  0x1a   : > { %7331 = sst [smem:[#allocation28_spill]] %s7330_s24  ;;  %p6099_p8 = pnand %p5021_p5, %p307_p7 }
  0x1b   : > { %s7334_s1 = sld [smem:[#allocation31_spill]]  ;;  %s5969_s30 = smov [#allocation5]  }
  0x1c   : > { %s7332_s26 = scalar_select %p6099_p8, 1, 0 }
  0x1d   : > { %s322_s11 = sshll.u32 %s5969_s30, 4  ;;  %p5449_p9 = pneg %p6099_p8  ;;  %s6111_s11 = int_to_ptr.vmem [resolvable:$true] %s322_s11 }
  0x1e   : > { %7333 = sst [smem:[#allocation29_spill]] %s7332_s26  ;;  %s6130_s27 = scalar_lea.hbm %s7294_s3, %s6097_s25 }
  0x1f   : > { %p6115_p10 = pnand %p5449_p9, %p6087_p4  ;;  %p6121_p11 = pnand %p5449_p9, %p6077_p1 }
  0x21   : > { %s6107_s29 = scalar_lea.hbm %s7334_s1, %s6097_s25  ;;  %p6136_p0 = pneg %p6115_p10 }
  0x22   : > { %s7336_s16 = scalar_select %p6121_p11, 1, 0 }
  0x23   : > { %s5625_s28 = scalar_lea.hbm %s6107_s29, 512  ;;  %s5630_s10 = scalar_lea.hbm %s7334_s1, 1024 }
  0x24   : > { %p5626_p13 = scmp.ne.s32.totalorder %s6107_s29, %s5625_s28  ;;  %p5631_p7 = scmp.lt.s32.totalorder %s6107_s29, %s7334_s1 }
  0x25   : > { %p5632_p9 = scmp.lt.s32.totalorder %s5630_s10, %s5625_s28 }
  0x26   : > { %p5628_p3 = pnand %p6136_p0, %p5626_p13 }
  0x27   : > { %p5633_p12 = por %p5632_p9, %p5631_p7 }
  0x28   : > { %p5629_p5 = pneg %p5628_p3 }
  0x2a   : > { %p5634_p6 = pnand %p5633_p12, %p5629_p5 }
  0x2c   : > { %5637 = shalt.err (!%p5634_p6)
}
  0x2d   : > { %s5638_s19 = scalar_lea.vmem %s6111_s11, 512  ;;  %p5646_p4 = scmp.lt.s32.totalorder %s6111_s11, %s6111_s11 }
  0x2e   : > { %p5639_p1 = scmp.ne.s32.totalorder %s6111_s11, %s5638_s19  ;;  %p5647_p8 = scmp.lt.s32.totalorder %s5638_s19, %s5638_s19 }
  0x30   : > { %p5641_p13 = pnand %p5639_p1, %p6136_p0  ;;  %p5648_p2 = por %p5647_p8, %p5646_p4 }
  0x32   : > { %p5642_p3 = pneg %p5641_p13 }
  0x34   : > { %p5649_p11 = pnand %p5648_p2, %p5642_p3 }
  0x36   : > { %5652 = shalt.err (!%p5649_p11)
}
  0x37   : > { %s5970_s9 = smov 128   ;;  %s5971_s10 = smov 8  }
  0x38   : > { %5452 = dma.hbm_to_vmem [thread:$0]  (!%p6115_p10), %s6107_s29, 512, %s6111_s11, [#allocation6], %s5970_s9, %s5970_s9, %s5971_s10  }
  0x39   : > { %s5972_s13 = smov [#allocation8]   ;;  %s5973_s24 = smov [#allocation11]  }
  0x3a   : > { %s354_s21 = sshll.u32 %s5972_s13, 4  ;;  %s379_s20 = sshll.u32 %s5973_s24, 4  ;;  %s355_s21 = int_to_ptr.vmem [resolvable:$true] %s354_s21  ;;  %s6162_s20 = int_to_ptr.vmem [resolvable:$true] %s379_s20 }
  0x3b   : > { %s5653_s28 = scalar_lea.hbm %s6130_s27, 512  ;;  %s5658_s23 = scalar_lea.hbm %s7294_s3, 1024 }
  0x3c   : > { %p5654_p1 = scmp.ne.s32.totalorder %s6130_s27, %s5653_s28  ;;  %p5659_p6 = scmp.lt.s32.totalorder %s6130_s27, %s7294_s3 }
  0x3d   : > { %p5660_p8 = scmp.lt.s32.totalorder %s5658_s23, %s5653_s28 }
  0x3e   : > { %p5656_p2 = pnand %p5654_p1, %p6136_p0 }
  0x3f   : > { %p5661_p11 = por %p5660_p8, %p5659_p6 }
  0x40   : > { %p5657_p4 = pneg %p5656_p2 }
  0x42   : > { %p5662_p12 = pnand %p5661_p11, %p5657_p4 }
  0x44   : > { %5665 = shalt.err (!%p5662_p12)
}
  0x45   : > { %s5666_s29 = scalar_lea.vmem %s355_s21, 512  ;;  %p5674_p13 = scmp.lt.s32.totalorder %s355_s21, %s355_s21 }
  0x46   : > { %p5667_p5 = scmp.ne.s32.totalorder %s355_s21, %s5666_s29  ;;  %p5675_p3 = scmp.lt.s32.totalorder %s5666_s29, %s5666_s29 }
  0x48   : > { %p5669_p7 = pnand %p5667_p5, %p6136_p0  ;;  %p5676_p1 = por %p5675_p3, %p5674_p13 }
  0x4a   : > { %p5670_p9 = pneg %p5669_p7 }
  0x4c   : > { %p5677_p2 = pnand %p5676_p1, %p5670_p9 }
  0x4e   : > { %5680 = shalt.err (!%p5677_p2)
}
  0x4f   : > { %5458 = dma.hbm_to_vmem [thread:$0]  (!%p6115_p10), %s6130_s27, 512, %s355_s21, [#allocation9], %s5970_s9, %s5970_s9, %s5971_s10  }
  0x50   : > { %p7338_p4 = scmp.ne.s32.totalorder %s7336_s16, 0  ;;  %s5692_s1 = scalar_lea.vmem %s6162_s20, 16 }
  0x51   : > { %p5693_p8 = scmp.ne.s32.totalorder %s6162_s20, %s5692_s1  ;;  %s5699_s23 = scalar_lea.vmem %s6162_s20, 32 }
  0x52   : > { %p6185_p6 = pneg %p7338_p4  ;;  %p5700_p5 = scmp.lt.s32.totalorder %s6162_s20, %s6162_s20 }
  0x53   : > { %p5701_p7 = scmp.lt.s32.totalorder %s5699_s23, %s5692_s1 }
  0x54   : > { %s7339_s0 = scalar_select %p6185_p6, 1, 0 }
  0x55   : > { %p5695_p11 = pnand %p5693_p8, %p6185_p6  ;;  %p5702_p9 = por %p5701_p7, %p5700_p5 }
  0x57   : > { %p5696_p12 = pneg %p5695_p11 }
  0x59   : > { %p5703_p13 = pnand %p5702_p9, %p5696_p12 }
  0x5b   : > { %5706 = shalt.err (!%p5703_p13)
}
  0x5c   : > { %5464 = dma.hbm_to_vmem [thread:$0]  (!%p7338_p4), %s7296_s5, 16, %s6162_s20, [#allocation12]  }
  0x5d   : > { %s6206_s21 = scalar_lea.hbm %s7293_s2, %s6097_s25  ;;  %s5974_s24 = smov [#allocation14]  }
  0x5e   : > { %s400_s28 = sshll.u32 %s5974_s24, 4  ;;  %s5975_s19 = smov [#allocation7]   ;;  %s401_s28 = int_to_ptr.vmem [resolvable:$true] %s400_s28 }
  0x5f   : > { %s338_s29 = sshll.u32 %s5975_s19, 4  ;;  %s5718_s1 = scalar_lea.vmem %s401_s28, 512  ;;  %s339_s29 = int_to_ptr.vmem [resolvable:$true] %s338_s29 }
  0x60   : > { %p5719_p3 = scmp.ne.s32.totalorder %s401_s28, %s5718_s1  ;;  %p5726_p8 = scmp.lt.s32.totalorder %s401_s28, %s401_s28 }
  0x61   : > { %p5727_p11 = scmp.lt.s32.totalorder %s5718_s1, %s5718_s1 }
  0x62   : > { %p5721_p1 = pnand %p5719_p3, %p6185_p6 }
  0x63   : > { %p5728_p12 = por %p5727_p11, %p5726_p8 }
  0x64   : > { %p5722_p2 = pneg %p5721_p1 }
  0x66   : > { %p5729_p5 = pnand %p5728_p12, %p5722_p2 }
  0x68   : > { %5732 = shalt.err (!%p5729_p5)
}
  0x69   : > { %5470 = dma.hbm_to_vmem [thread:$0]  (!%p7338_p4), %s7298_s7, 512, %s401_s28, [#allocation15], %s5970_s9, %s5970_s9, %s5971_s10  }
  0x6a   : > { %s5733_s26 = scalar_lea.hbm %s6206_s21, 512  ;;  %s5738_s13 = scalar_lea.hbm %s7293_s2, 1024 }
  0x6b   : > { %p5734_p7 = scmp.ne.s32.totalorder %s6206_s21, %s5733_s26  ;;  %p5739_p3 = scmp.lt.s32.totalorder %s6206_s21, %s7293_s2 }
  0x6c   : > { %p5740_p1 = scmp.lt.s32.totalorder %s5738_s13, %s5733_s26 }
  0x6d   : > { %p5736_p9 = pnand %p5734_p7, %p6136_p0 }
  0x6e   : > { %p5741_p2 = por %p5740_p1, %p5739_p3 }
  0x6f   : > { %p5737_p13 = pneg %p5736_p9 }
  0x71   : > { %p5742_p8 = pnand %p5741_p2, %p5737_p13 }
  0x73   : > { %5745 = shalt.err (!%p5742_p8)
}
  0x74   : > { %s5746_s1 = scalar_lea.vmem %s339_s29, 512  ;;  %p5754_p7 = scmp.lt.s32.totalorder %s339_s29, %s339_s29 }
  0x75   : > { %p5747_p11 = scmp.ne.s32.totalorder %s339_s29, %s5746_s1  ;;  %p5755_p9 = scmp.lt.s32.totalorder %s5746_s1, %s5746_s1 }
  0x77   : > { %p5749_p12 = pnand %p5747_p11, %p6136_p0  ;;  %p5756_p4 = por %p5755_p9, %p5754_p7 }
  0x79   : > { %p5750_p5 = pneg %p5749_p12 }
  0x7b   : > { %p5757_p6 = pnand %p5756_p4, %p5750_p5 }
  0x7d   : > { %5760 = shalt.err (!%p5757_p6)
}
  0x7e   : > { %5455 = dma.hbm_to_vmem [thread:$0]  (!%p6115_p10), %s6206_s21, 512, %s339_s29, [#allocation6], %s5970_s9, %s5970_s9, %s5971_s10  }
  0x7f   : > { %s5976_s28 = smov [#allocation10]   ;;  %s5977_s23 = smov [#allocation13]  }
  0x80   : > { %s368_s20 = sshll.u32 %s5976_s28, 4  ;;  %s390_s30 = sshll.u32 %s5977_s23, 4  ;;  %s369_s20 = int_to_ptr.vmem [resolvable:$true] %s368_s20  ;;  %s391_s30 = int_to_ptr.vmem [resolvable:$true] %s390_s30 }
  0x81   : > { %s5772_s26 = scalar_lea.vmem %s369_s20, 16  ;;  %p7340_p13 = scmp.ne.s32.totalorder %s7339_s0, 0 }
  0x82   : > { %p5773_p0 = scmp.ne.s32.totalorder %s369_s20, %s5772_s26  ;;  %s5779_s11 = scalar_lea.vmem %s369_s20, 32 }
  0x83   : > { %p5780_p4 = scmp.lt.s32.totalorder %s369_s20, %s369_s20  ;;  %p5781_p6 = scmp.lt.s32.totalorder %s5779_s11, %s5772_s26 }
  0x84   : > { %p5775_p3 = pnand %p5773_p0, %p7340_p13 }
  0x85   : > { %p5782_p2 = por %p5781_p6, %p5780_p4 }
  0x86   : > { %p5776_p1 = pneg %p5775_p3 }
  0x88   : > { %p5783_p8 = pnand %p5782_p2, %p5776_p1 }
  0x8a   : > { %5786 = shalt.err (!%p5783_p8)
}
  0x8b   : > { %p7341_p11 = scmp.ne.s32.totalorder %s7336_s16, 0  ;;  %s5798_s29 = scalar_lea.vmem %s391_s30, 16 }
  0x8c   : > { %p5799_p10 = scmp.ne.s32.totalorder %s391_s30, %s5798_s29  ;;  %s5805_s27 = scalar_lea.vmem %s391_s30, 32 }
  0x8d   : > { %5461 = dma.hbm_to_vmem [thread:$0]  (!%p7341_p11), %s7295_s4, 16, %s369_s20, [#allocation9]  }
  0x8e   : > { %p5801_p12 = pnand %p5799_p10, %p7340_p13  ;;  %p5806_p7 = scmp.lt.s32.totalorder %s391_s30, %s391_s30 }
  0x8f   : > { %p5807_p9 = scmp.lt.s32.totalorder %s5805_s27, %s5798_s29 }
  0x90   : > { %p5802_p5 = pneg %p5801_p12 }
  0x91   : > { %p5808_p0 = por %p5807_p9, %p5806_p7 }
  0x93   : > { %p5809_p3 = pnand %p5808_p0, %p5802_p5 }
  0x95   : > { %5812 = shalt.err (!%p5809_p3)
}
  0x96   : > { %5467 = dma.hbm_to_vmem [thread:$0]  (!%p7341_p11), %s7297_s6, 16, %s391_s30, [#allocation12]  }
  0x97   : > { %s5978_s19 = smov [#allocation16]  }
  0x98   : > { %s414_s1 = sshll.u32 %s5978_s19, 4  ;;  %s415_s1 = int_to_ptr.vmem [resolvable:$true] %s414_s1 }
  0x99   : > { %s5824_s28 = scalar_lea.vmem %s415_s1, 16  ;;  %s5831_s20 = scalar_lea.vmem %s415_s1, 32 }
  0x9a   : > { %p5825_p1 = scmp.ne.s32.totalorder %s415_s1, %s5824_s28  ;;  %p5832_p2 = scmp.lt.s32.totalorder %s415_s1, %s415_s1 }
  0x9b   : > { %p5833_p8 = scmp.lt.s32.totalorder %s5831_s20, %s5824_s28 }
  0x9c   : > { %p5827_p4 = pnand %p5825_p1, %p7340_p13 }
  0x9d   : > { %p5834_p10 = por %p5833_p8, %p5832_p2 }
  0x9e   : > { %p5828_p6 = pneg %p5827_p4 }
  0xa0   : > { %p5835_p12 = pnand %p5834_p10, %p5828_p6 }
  0xa2   : > { %5838 = shalt.err (!%p5835_p12)
}
  0xa3   : > { %5473 = dma.hbm_to_vmem [thread:$0]  (!%p7341_p11), %s7299_s8, 16, %s415_s1, [#allocation15]  }
  0xa4   : > { %s42_s0 = sadd.s32 1, %s5963_s17  ;;  %s51_s30 = sadd.s32 1, %s5955_s15 }
  0xa5   : > { %p44_p13 = scmp.ge.s32.totalorder %s42_s0, 2  ;;  %p58_p5 = scmp.ne.s32.totalorder %s5955_s15, %s5951_s14 }
  0xa6   : > { %p59_p7 = scmp.eq.s32.totalorder %s5967_s18, 0  ;;  %p5487_p9 = scmp.lt.s32.totalorder %s5967_s18, 2 }
  0xa7   : > { %s7364_s0 = smov (%p44_p13, %s42_s0), 0  ;;  %p7342_p3 = scmp.ne.s32.totalorder %s7327_s22, 0 }
  0xa8   : > { %p60_p0 = por %p59_p7, %p58_p5  ;;  %s46_s11 = ssub.s32 %s5963_s17, %s7364_s0 }
  0xa9   : > { %p6268_p1 = por %p7342_p3, %p58_p5  ;;  %s428_s12 = sand.u32 1, %s5955_s15  }
  0xaa   : > { %p49_p4 = scmp.eq.s32.totalorder %s46_s11, 0  ;;  %s5034_s21 = sshll.u32 %s428_s12, 5 }
  0xab   : > { %s5153_s29 = sshll.u32 %s5963_s17, 9  ;;  %s7344_s19 = sld [smem:[#allocation30_spill]] }
  0xac   : > { %s6277_s27 = scalar_select %p49_p4, %s5955_s15, %s51_s30  }
  0xad   : > { %s432_s28 = scalar_lea.vmem [#allocation2], %s5034_s21  ;;  %p6284_p11 = pnand %p5487_p9, %p60_p0 }
  0xae   : > { %s442_s20 = sshll.u32 %s432_s28, 4  ;;  %s429_s23 = scalar_lea.sflag [#allocation3], %s428_s12  ;;  %s443_s20 = int_to_ptr.vmem [resolvable:$true] %s442_s20 }
  0xaf   : > { %p5841_p6 = pneg %p6284_p11  ;;  %s5852_s26 = scalar_lea.vmem %s443_s20, 512 }
  0xb0   : > { %p5853_p2 = scmp.ne.s32.totalorder %s443_s20, %s5852_s26  ;;  %s5979_s30 = smov [#allocation2]  }
  0xb1   : > { %s441_s1 = scalar_lea.hbm %s7344_s19, %s5153_s29  ;;  %s5857_s11 = sshll.u32 %s5979_s30, 4  ;;  %s5858_s11 = int_to_ptr.vmem [resolvable:$false] %s5857_s11 }
  0xb2   : > { %p5855_p8 = pnand %p5853_p2, %p5841_p6  ;;  %s5859_s29 = scalar_lea.vmem %s5858_s11, 1024 }
  0xb3   : > { %p5860_p12 = scmp.lt.s32.totalorder %s443_s20, %s5858_s11  ;;  %p5861_p13 = scmp.lt.s32.totalorder %s5859_s29, %s5852_s26 }
  0xb4   : > { %p5856_p10 = pneg %p5855_p8 }
  0xb5   : > { %p5862_p5 = por %p5861_p13, %p5860_p12 }
  0xb7   : > { %p5863_p7 = pnand %p5862_p5, %p5856_p10 }
  0xb9   : > { %5866 = shalt.err (!%p5863_p7)
}
  0xba   : > { %5477 = dma.hbm_to_vmem [thread:$0]  (!%p6284_p11), %s441_s1, 512, %s443_s20, %s429_s23, %s5970_s9, %s5970_s9, %s5971_s10  }
  0xbb   : > { %s7346_s12 = sld [smem:[#allocation29_spill]] }
  0xc1   : > { %p7347_p9 = scmp.ne.s32.totalorder %s7346_s12, 0 }
  0xc2   : > { %s7348_s21 = sld [smem:[#allocation27_spill]] (!%p7347_p9)  ;;  %s6298_s13 = sand.u32 (!%p7347_p9), 1, %s5951_s14  }
  0xc3   : > { %454 = sbr.rel (%p7347_p9) target bundleno = 1717 (0x6b5), region = 60  ;;  %s5038_s24 = sshll.u32 (!%p7347_p9), %s6298_s13, 5 }
  0xc4   : > { %s457_s19 = scalar_lea.sflag (!%p7347_p9), [#allocation3], %s6298_s13  ;;  %s6304_s28 = scalar_lea.vmem (!%p7347_p9), [#allocation2], %s5038_s24 }
  0xc8   : > { %p7349_p0 = scmp.ne.s32.totalorder %s7348_s21, 0 }
  0xca   : > { %5918 = dma.done.wait (%p7349_p0), %s457_s19, 512  }
  0xcb   : > { %5920 = vsyncadd (%p7349_p0), %s457_s19, 4294966784 }
  0xcc   : > { %5922 = dma.done.wait (%p7349_p0), [#allocation6], 1024  }
  0xcd   : > { %5924 = vsyncadd (%p7349_p0), [#allocation6], 4294966272 }
  0xce   : > { %5926 = dma.done.wait (%p7349_p0), [#allocation9], 512  }
  0xcf   : > { %5928 = vsyncadd (%p7349_p0), [#allocation9], 4294966784  ;;  %s7350_s9 = sld [smem:[#allocation26_spill]] }
  0xd5   : > { %p7351_p3 = scmp.ne.s32.totalorder %s7350_s9, 0 }
  0xd7   : > { %5930 = dma.done.wait (%p7351_p3), [#allocation9], 16  }
  0xd8   : > { %5932 = vsyncadd (%p7351_p3), [#allocation9], 4294967280 }
  0xd9   : > { %5934 = dma.done.wait (%p7351_p3), [#allocation12], 32  }
  0xda   : > { %5936 = vsyncadd (%p7351_p3), [#allocation12], 4294967264 }
  0xdb   : > { %5938 = dma.done.wait (%p7351_p3), [#allocation15], 528  }
  0xdc   : > { %5940 = vsyncadd (%p7351_p3), [#allocation15], 4294966768  ;;  %vm546_vm0 = vcmask 261120   ;;  %v538_v0 = vld [vmem:[#allocation5 + $0x18] sm:$0xff]  ;;  %v537_v1 = vld [vmem:[#allocation5 + $0x10] sm:$0xff]  ;;  %s5980_s10 = smov 112   ;;  %v885_v45 = vlaneseq }
  0xdd   : > { %5251 = vmatprep.subr.mxu1 %v538_v0  ;;  %v531_v2 = vld [vmem:[%s6304_s28] sm:$0xff]  ;;  %v536_v3 = vld [vmem:[#allocation5 + $0x8] sm:$0xff]  ;;  %v651_v6 = vld [vmem:[#allocation7 + $0x18] sm:$0xff]  ;;  %s5981_s1 = smov 120   ;;  %s5982_s20 = smov 104   ;;  %vm2594_vm1 = vcmask 64512  }
  0xde   : > { %5252 = vmatpush3.msra.mxu1 %v538_v0  ;;  %5259 = vmatprep.mubr.msk.f32.mxu1 %vm546_vm0, %v531_v2  ;;  %v535_v4 = vld [vmem:[#allocation5] sm:$0xff]  ;;  %v532_v5 = vld [vmem:[%s6304_s28 + $0x8] sm:$0xff]  ;;  %v533_v7 = vld [vmem:[%s6304_s28 + $0x10] sm:$0xff]  ;;  %v5983_v43 = vmov 1983009808   ;;  %v886_v49 = vshrl.u32 %v885_v45, 7 }
  0xdf   : > { %5253 = vmatprep.subr.mxu1 %v537_v1  ;;  %5287 = vmatprep.mubr.msk.f32.mxu0 %vm546_vm0, %v531_v2  ;;  %v650_v8 = vld [vmem:[#allocation7 + $0x10] sm:$0xff]  ;;  %v534_v9 = vld [vmem:[%s6304_s28 + $0x18] sm:$0xff]  ;;  %v649_v10 = vld [vmem:[#allocation7 + $0x8] sm:$0xff]  ;;  %v883_v44 = vunpack.c.l.s4 %v5983_v43  ;;  %v5984_v46 = vmov 1934713408   ;;  %s7352_s26 = sld [smem:[#allocation32_spill]] }
  0xe0   : > { %5254 = vmatpush3.msra.mxu1 %v537_v1  ;;  %v648_v11 = vld [vmem:[#allocation7] sm:$0xff]  ;;  %v747_v12 = vld [vmem:[#allocation8 + $0x18] sm:$0xff]  ;;  %v746_v13 = vld [vmem:[#allocation8 + $0x10] sm:$0xff]  ;;  %v915_v47 = vunpack.c.l.s4 %v5984_v46  ;;  %vm3291_vm2 = vcmask 130048   ;;  %s5985_s29 = smov 16   ;;  %s5986_s12 = smov 8  }
  0xe1   : > { %5255 = vmatprep.subr.mxu1 %v536_v3  ;;  %5279 = vmatprep.subr.mxu0 %v747_v12  ;;  %v745_v14 = vld [vmem:[#allocation8 + $0x8] sm:$0xff]  ;;  %v744_v15 = vld [vmem:[#allocation8] sm:$0xff]  ;;  %v884_v48 = vunpack.c.0.s8 %v883_v44  ;;  %s5987_s21 = smov 24   ;;  %vm4716_vm3 = vcmask 195584   ;;  %s528_s19 = scalar_lea.vmem [#allocation17], %s5038_s24 }
  0xe2   : > { %5256 = vmatpush3.msra.mxu1 %v536_v3  ;;  %5280 = vmatpush3.msra.mxu0 %v747_v12  ;;  %v5045_v16 = vld [vmem:[#allocation10] ss:$0 sm:$0xff]  ;;  %v5050_v24 = vld [vmem:[#allocation11] ss:$0 sm:$0xff]  ;;  %v6410_v39 = vld [vmem:[#allocation13] ss:$0 sm:$0xff]  ;;  %v916_v52 = vunpack.c.0.s8 %v915_v47 }
  0xe3   : > { %5257 = vmatprep.subr.mxu1 %v535_v4  ;;  %5281 = vmatprep.subr.mxu0 %v746_v13  ;;  %v6428_v53 = vsub.s32 %v884_v48, %v886_v49  ;;  %s4850_s28 = sshll.u32 %s528_s19, 4  ;;  %s5988_s23 = smov [#allocation17]   ;;  %s7234_s28 = int_to_ptr.vmem [resolvable:$true] %s4850_s28 }
  0xe4   : > { %5258 = vmatpush3.msra.mxu1 %v535_v4  ;;  %5282 = vmatpush3.msra.mxu0 %v746_v13  ;;  %v6432_v60 = vsub.s32 %v916_v52, %v886_v49  ;;  %s5867_s22 = scalar_lea.vmem %s7234_s28, 512  ;;  %s5871_s30 = sshll.u32 %s5988_s23, 4  ;;  %s5872_s30 = int_to_ptr.vmem [resolvable:$false] %s5871_s30 }
  0xe5   : > { %5260 = vmatmul.mubr.msk.f32.vlgmr.msra.gmra.mxu1 %vm546_vm0, %v532_v5  ;;  %5265 = vmatprep.subr.mxu1 %v651_v6  ;;  %p5868_p4 = scmp.ne.s32.totalorder %s7234_s28, %s5867_s22  ;;  %s5873_s11 = scalar_lea.vmem %s5872_s30, 1024 }
  0xe6   : > { %5266 = vmatpush3.msra.mxu1 %v651_v6  ;;  %5262 = vmatprep.mubr.msk.f32.mxu1 %vm546_vm0, %v533_v7  ;;  %p5874_p2 = scmp.lt.s32.totalorder %s7234_s28, %s5872_s30  ;;  %p5875_p8 = scmp.lt.s32.totalorder %s5873_s11, %s5867_s22 }
  0xe7   : > { %5267 = vmatprep.subr.mxu1 %v650_v8  ;;  %5283 = vmatprep.subr.mxu0 %v745_v14  ;;  %p5869_p11 = pnand %p5868_p4, %p6268_p1 }
  0xe8   : > { %5268 = vmatpush3.msra.mxu1 %v650_v8  ;;  %5284 = vmatpush3.msra.mxu0 %v745_v14  ;;  %p5876_p10 = por %p5875_p8, %p5874_p2 }
  0xe9   : > { %5263 = vmatmul.mubr.msk.f32.gmra.mxu1 %vm546_vm0, %v534_v9  ;;  %5269 = vmatprep.subr.mxu1 %v649_v10  ;;  %p5870_p6 = pneg %p5869_p11 }
  0xea   : > { %5270 = vmatpush3.msra.mxu1 %v649_v10  ;;  %5273 = vmatprep.mubr.msk.f32.mxu1 %vm546_vm0, %v531_v2 }
  0xeb   : > { %5271 = vmatprep.subr.mxu1 %v648_v11  ;;  %5285 = vmatprep.subr.mxu0 %v744_v15  ;;  %p5877_p12 = pnand %p5876_p10, %p5870_p6 }
  0xec   : > { %5272 = vmatpush3.msra.mxu1 %v648_v11  ;;  %5286 = vmatpush3.msra.mxu0 %v744_v15 }
  0xed   : > { %5274 = vmatmul.mubr.msk.f32.vlgmr.msra.gmra.mxu1 %vm546_vm0, %v532_v5  ;;  %5288 = vmatmul.mubr.msk.f32.vlgmr.msra.gmra.mxu0 %vm546_vm0, %v532_v5 }
  0xee   : > { %5276 = vmatprep.mubr.msk.f32.mxu1 %vm546_vm0, %v533_v7  ;;  %5290 = vmatprep.mubr.msk.f32.mxu0 %vm546_vm0, %v533_v7 }
  0xf1   : > { %5277 = vmatmul.mubr.msk.f32.gmra.mxu1 %vm546_vm0, %v534_v9  ;;  %5291 = vmatmul.mubr.msk.f32.gmra.mxu0 %vm546_vm0, %v534_v9 }
 0x1a5   : > { %v5261_v17 = vpop.f32.mrf.mxu1 }
 0x1a6   : > { %v631_v18 = vadd.f32 %v5261_v17, %v5045_v16 }
 0x1a7   : > { %v625_v19 = vpop.f32.mrf.mxu1 }
 0x1a8   : > { %v6346_v20 = vmul.f32 0.35355338, %v631_v18  ;;  %v626_v21 = vadd.f32 %v5045_v16, %v625_v19 }
 0x1a9   : > { %v5264_v22 = vpop.f32.mrf.mxu1 }
 0x1aa   : > { %858 = vrot.lane.b32.xlu0 %v6346_v20, %s5980_s10  ;;  %846 = vrot.lane.b32.xlu1 %v6346_v20, %s5981_s1  ;;  %v6352_v25 = vmul.f32 0.35355338, %v626_v21  ;;  %v641_v36 = vadd.f32 %v5264_v22, %v5045_v16 }
 0x1ab   : > { %v635_v23 = vpop.f32.mrf.mxu1 }
 0x1ac   : > { %v636_v28 = vadd.f32 %v5045_v16, %v635_v23  ;;  %v6400_v37 = vmul.f32 0.35355338, %v641_v36 }
 0x1ad   : > { %v5275_v26 = vpop.f32.mrf.mxu1  ;;  %v5289_v38 = vpop.f32.mrf.mxu0 }
 0x1ae   : > { %v6354_v27 = vadd.f32 %v5275_v26, %v5050_v24  ;;  %870 = vrot.lane.b32.xlu1 %v6346_v20, %s5982_s20  ;;  %856 = vrot.lane.b32.xlu0 %v6352_v25, %s5980_s10  ;;  %v6368_v30 = vmul.f32 0.35355338, %v636_v28  ;;  %v6413_v40 = vadd.f32 %v5289_v38, %v6410_v39 }
 0x1af   : > { %v725_v29 = vpop.f32.mrf.mxu1  ;;  %v821_v41 = vpop.f32.mrf.mxu0 }
 0x1b0   : > { %v6380_v33 = vadd.f32 %v5050_v24, %v725_v29  ;;  %v6420_v42 = vadd.f32 %v6410_v39, %v821_v41 }
 0x1b1   : > { %v5278_v31 = vpop.f32.mrf.mxu1 }
 0x1b2   : > { %1430 = vrot.lane.b32.xlu0 %v6354_v27, %s5981_s1  ;;  %844 = vrot.lane.b32.xlu1 %v6352_v25, %s5981_s1  ;;  %v6370_v32 = vadd.f32 %v5278_v31, %v5050_v24 }
 0x1b3   : > { %v735_v34 = vpop.f32.mrf.mxu1 }
 0x1b4   : > { %v6390_v35 = vadd.f32 %v5050_v24, %v735_v34 }
 0x1b6   : > { %1442 = vrot.lane.b32.xlu0 %v6354_v27, %s5980_s10  ;;  %868 = vrot.lane.b32.xlu1 %v6352_v25, %s5982_s20 }
 0x1ba   : > { %848 = vrot.lane.b32.xlu0 %v6368_v30, %s5981_s1  ;;  %1454 = vrot.lane.b32.xlu1 %v6354_v27, %s5982_s20 }
 0x1be   : > { %1434 = vrot.lane.b32.xlu0 %v6370_v32, %s5981_s1  ;;  %860 = vrot.lane.b32.xlu1 %v6368_v30, %s5980_s10 }
 0x1c2   : > { %1446 = vrot.lane.b32.xlu0 %v6370_v32, %s5980_s10  ;;  %1428 = vrot.lane.b32.xlu1 %v6380_v33, %s5981_s1 }
 0x1c6   : > { %1458 = vrot.lane.b32.xlu0 %v6370_v32, %s5982_s20  ;;  %1440 = vrot.lane.b32.xlu1 %v6380_v33, %s5980_s10 }
 0x1ca   : > { %1432 = vrot.lane.b32.xlu0 %v6390_v35, %s5981_s1  ;;  %1452 = vrot.lane.b32.xlu1 %v6380_v33, %s5982_s20 }
 0x1ce   : > { %1456 = vrot.lane.b32.xlu0 %v6390_v35, %s5982_s20  ;;  %1444 = vrot.lane.b32.xlu1 %v6390_v35, %s5980_s10 }
 0x1d2   : > { %872 = vrot.lane.b32.xlu0 %v6368_v30, %s5982_s20  ;;  %850 = vrot.lane.b32.xlu1 %v6400_v37, %s5981_s1 }
 0x1d6   : > { %862 = vrot.lane.b32.xlu0 %v6400_v37, %s5980_s10  ;;  %874 = vrot.lane.b32.xlu1 %v6400_v37, %s5982_s20 }
 0x1da   : > { %2014 = vrot.lane.b32.xlu1 %v6413_v40, %s5981_s1  ;;  %2026 = vrot.lane.b32.xlu0 %v6413_v40, %s5980_s10 }
 0x1de   : > { %2038 = vrot.lane.b32.xlu1 %v6413_v40, %s5982_s20  ;;  %2012 = vrot.lane.b32.xlu0 %v6420_v42, %s5981_s1 }
 0x1e2   : > { %2024 = vrot.lane.b32.xlu1 %v6420_v42, %s5980_s10 }
 0x21c   : > { %v859_v50 = vpop.permute.xlu0 %858  ;;  %v847_v51 = vpop.permute.xlu1 %846 }
 0x21d   : > { %v948_v54 = vcombine.low %v6346_v20, %v859_v50  ;;  %v949_v55 = vcombine.high %v6346_v20, %v859_v50 }
 0x21f   : > { %v956_v61 = vrot.slane %v948_v54, %v6428_v53  ;;  %v963_v62 = vrot.slane %v949_v55, %v6428_v53 }
 0x220   : > { %v871_v56 = vpop.permute.xlu1 %870  ;;  %v857_v57 = vpop.permute.xlu0 %856 }
 0x221   : > { %v964_v58 = vcombine.low %v847_v51, %v871_v56  ;;  %v965_v59 = vcombine.high %v847_v51, %v871_v56  ;;  %v880_v11 = vcombine.low %v6352_v25, %v857_v57  ;;  %v881_v12 = vcombine.high %v6352_v25, %v857_v57 }
 0x223   : > { %v972_v63 = vrot.slane %v964_v58, %v6428_v53  ;;  %v979_v0 = vrot.slane %v965_v59, %v6428_v53  ;;  %v888_v28 = vrot.slane %v880_v11, %v6428_v53  ;;  %v895_v29 = vrot.slane %v881_v12, %v6428_v53 }
 0x224   : > { %v1431_v1 = vpop.permute.xlu0 %1430  ;;  %v845_v2 = vpop.permute.xlu1 %844 }
 0x225   : > { %v980_v3 = vcombine.low %v956_v61, %v972_v63  ;;  %v981_v4 = vcombine.high %v956_v61, %v972_v63  ;;  %v996_v5 = vcombine.low %v963_v62, %v979_v0  ;;  %v997_v6 = vcombine.high %v963_v62, %v979_v0 }
 0x227   : > { %v988_v7 = vrot.slane %v980_v3, %v6432_v60  ;;  %v995_v8 = vrot.slane %v981_v4, %v6432_v60  ;;  %v1004_v9 = vrot.slane %v996_v5, %v6432_v60  ;;  %v1011_v10 = vrot.slane %v997_v6, %v6432_v60 }
 0x228   : > { %v1443_v13 = vpop.permute.xlu0 %1442  ;;  %v869_v14 = vpop.permute.xlu1 %868 }
 0x229   : > { %v1220_v15 = vcombine.low %v988_v7, %v995_v8  ;;  %v5062_v16 = vcombine.high %v988_v7, %v995_v8  ;;  %v1236_v17 = vcombine.low %v1004_v9, %v1011_v10  ;;  %v5063_v18 = vcombine.high %v1004_v9, %v1011_v10 }
 0x22a   : > { %v1532_v19 = vcombine.low %v6354_v27, %v1443_v13  ;;  %v1533_v20 = vcombine.high %v6354_v27, %v1443_v13  ;;  %v896_v21 = vcombine.low %v845_v2, %v869_v14  ;;  %v897_v22 = vcombine.high %v845_v2, %v869_v14 }
 0x22b   : > { %v6447_v23 = vrot.slane %v1220_v15, %v6428_v53  ;;  %v6450_v24 = vrot.slane %v5062_v16, %v6428_v53  ;;  %v6453_v25 = vrot.slane %v1236_v17, %v6428_v53  ;;  %v6456_v26 = vrot.slane %v5063_v18, %v6428_v53 }
 0x22c   : > { %v904_v27 = vrot.slane %v896_v21, %v6428_v53  ;;  %v911_v31 = vrot.slane %v897_v22, %v6428_v53  ;;  %v6462_v34 = vpop.permute.xlu0 %848  ;;  %v1455_v36 = vpop.permute.xlu1 %1454  ;;  %v1540_v41 = vrot.slane %v1532_v19, %v6428_v53  ;;  %v1547_v48 = vrot.slane %v1533_v20, %v6428_v53 }
 0x22d   : > { %v1252_v38 = vcombine.low %v6447_v23, %v6450_v24  ;;  %v1268_v47 = vcombine.low %v6453_v25, %v6456_v26  ;;  %v1548_v49 = vcombine.low %v1431_v1, %v1455_v36  ;;  %v1549_v50 = vcombine.high %v1431_v1, %v1455_v36 }
 0x22e   : > { %v912_v43 = vcombine.low %v888_v28, %v904_v27  ;;  %v913_v44 = vcombine.high %v888_v28, %v904_v27  ;;  %v928_v45 = vcombine.low %v895_v29, %v911_v31  ;;  %v929_v46 = vcombine.high %v895_v29, %v911_v31 }
 0x22f   : > { %v6477_v58 = vrot.slane %v1252_v38, %v6432_v60  ;;  %v1556_v59 = vrot.slane %v1548_v49, %v6428_v53  ;;  %v1563_v61 = vrot.slane %v1549_v50, %v6428_v53  ;;  %v6500_v17 = vrot.slane %v1268_v47, %v6432_v60 }
 0x230   : > { %v920_v51 = vrot.slane %v912_v43, %v6432_v60  ;;  %v927_v52 = vrot.slane %v913_v44, %v6432_v60  ;;  %v936_v54 = vrot.slane %v928_v45, %v6432_v60  ;;  %v943_v55 = vrot.slane %v929_v46, %v6432_v60  ;;  %v1435_v56 = vpop.permute.xlu0 %1434  ;;  %v6474_v57 = vpop.permute.xlu1 %860 }
 0x231   : > { %v1016_v62 = vcombine.low %v6368_v30, %v6474_v57  ;;  %v1564_v3 = vcombine.low %v1540_v41, %v1556_v59  ;;  %v1565_v4 = vcombine.high %v1540_v41, %v1556_v59  ;;  %v1580_v5 = vcombine.low %v1547_v48, %v1563_v61 }
 0x232   : > { %v1152_v63 = vcombine.low %v920_v51, %v927_v52  ;;  %v5060_v0 = vcombine.high %v920_v51, %v927_v52  ;;  %v1168_v1 = vcombine.low %v936_v54, %v943_v55  ;;  %v5061_v2 = vcombine.high %v936_v54, %v943_v55 }
 0x233   : > { %v1581_v6 = vcombine.high %v1547_v48, %v1563_v61  ;;  %v1572_v13 = vrot.slane %v1564_v3, %v6432_v60  ;;  %v1579_v14 = vrot.slane %v1565_v4, %v6432_v60  ;;  %v1588_v15 = vrot.slane %v1580_v5, %v6432_v60 }
 0x234   : > { %v6484_v7 = vrot.slane %v1152_v63, %v6428_v53  ;;  %v6487_v8 = vrot.slane %v5060_v0, %v6428_v53  ;;  %v6490_v9 = vrot.slane %v1168_v1, %v6428_v53  ;;  %v6493_v10 = vrot.slane %v5061_v2, %v6428_v53  ;;  %v1447_v11 = vpop.permute.xlu0 %1446  ;;  %v1429_v12 = vpop.permute.xlu1 %1428 }
 0x235   : > { %v1595_v16 = vrot.slane %v1581_v6, %v6432_v60  ;;  %v1017_v18 = vcombine.high %v6368_v30, %v6474_v57  ;;  %v6505_v19 = vrot.slane %v1016_v62, %v6428_v53  ;;  %v1668_v20 = vcombine.low %v6370_v32, %v1447_v11 }
 0x236   : > { %v1804_v21 = vcombine.low %v1572_v13, %v1579_v14  ;;  %v5070_v22 = vcombine.high %v1572_v13, %v1579_v14  ;;  %v1669_v27 = vcombine.high %v6370_v32, %v1447_v11  ;;  %v1184_v41 = vcombine.low %v6484_v7, %v6487_v8 }
 0x237   : > { %v1820_v28 = vcombine.low %v1588_v15, %v1595_v16  ;;  %v5071_v29 = vcombine.high %v1588_v15, %v1595_v16  ;;  %v1676_v31 = vrot.slane %v1668_v20, %v6428_v53  ;;  %v1200_v30 = vcombine.low %v6490_v9, %v6493_v10 }
 0x238   : > { %v1459_v36 = vpop.permute.xlu0 %1458  ;;  %v1441_v38 = vpop.permute.xlu1 %1440  ;;  %v6515_v43 = vrot.slane %v1804_v21, %v6428_v53  ;;  %v6518_v44 = vrot.slane %v5070_v22, %v6428_v53  ;;  %v6529_v50 = vrot.slane %v1184_v41, %v6432_v60  ;;  %v1683_v55 = vrot.slane %v1669_v27, %v6428_v53 }
 0x239   : > { %v6521_v45 = vrot.slane %v1820_v28, %v6428_v53  ;;  %v6524_v32 = vrot.slane %v5071_v29, %v6428_v53  ;;  %v1684_v46 = vcombine.low %v1435_v56, %v1459_v36  ;;  %v1685_v47 = vcombine.high %v1435_v56, %v1459_v36 }
 0x23a   : > { %v1464_v48 = vcombine.low %v6380_v33, %v1441_v38  ;;  %v1465_v49 = vcombine.high %v6380_v33, %v1441_v38  ;;  %v6532_v51 = vrot.slane %v1200_v30, %v6432_v60  ;;  %v1836_v52 = vcombine.low %v6515_v43, %v6518_v44 }
 0x23b   : > { %v1852_v54 = vcombine.low %v6521_v45, %v6524_v32  ;;  %v1692_v56 = vrot.slane %v1684_v46, %v6428_v53  ;;  %v1699_v57 = vrot.slane %v1685_v47, %v6428_v53 }
 0x23c   : > { %v1472_v33 = vrot.slane %v1464_v48, %v6428_v53  ;;  %v1433_v59 = vpop.permute.xlu0 %1432  ;;  %v1453_v61 = vpop.permute.xlu1 %1452  ;;  %v1479_v62 = vrot.slane %v1465_v49, %v6428_v53  ;;  %v1216_v63 = vcombine.low %v6529_v50, %v6532_v51  ;;  %v6549_v13 = vrot.slane %v1836_v52, %v6432_v60 }
 0x23d   : > { %v1480_v0 = vcombine.low %v1429_v12, %v1453_v61  ;;  %v1481_v1 = vcombine.high %v1429_v12, %v1453_v61  ;;  %v1700_v2 = vcombine.low %v1676_v31, %v1692_v56  ;;  %v1701_v3 = vcombine.high %v1676_v31, %v1692_v56 }
 0x23e   : > { %v1716_v4 = vcombine.low %v1683_v55, %v1699_v57  ;;  %v1717_v5 = vcombine.high %v1683_v55, %v1699_v57  ;;  %5297 = vmatprep.mubr.msk.f32.mxu1 %vm2594_vm1, %v1216_v63  ;;  %v6552_v14 = vrot.slane %v1852_v54, %v6432_v60  ;;  %v1031_v52 = vrot.slane %v1017_v18, %v6428_v53 }
 0x23f   : > { %v1488_v6 = vrot.slane %v1480_v0, %v6428_v53  ;;  %v1495_v11 = vrot.slane %v1481_v1, %v6428_v53  ;;  %v1708_v15 = vrot.slane %v1700_v2, %v6432_v60  ;;  %v1715_v12 = vrot.slane %v1701_v3, %v6432_v60 }
 0x240   : > { %v1724_v16 = vrot.slane %v1716_v4, %v6432_v60  ;;  %v1731_v20 = vrot.slane %v1717_v5, %v6432_v60  ;;  %v1457_v21 = vpop.permute.xlu0 %1456  ;;  %v1445_v22 = vpop.permute.xlu1 %1444  ;;  %v1868_v1 = vcombine.low %v6549_v13, %v6552_v14 }
 0x241   : > { %v1496_v28 = vcombine.low %v1472_v33, %v1488_v6  ;;  %v1497_v29 = vcombine.high %v1472_v33, %v1488_v6  ;;  %v1512_v27 = vcombine.low %v1479_v62, %v1495_v11  ;;  %v1513_v31 = vcombine.high %v1479_v62, %v1495_v11 }
 0x242   : > { %v1940_v36 = vcombine.low %v1708_v15, %v1715_v12  ;;  %v5074_v38 = vcombine.high %v1708_v15, %v1715_v12  ;;  %v1956_v41 = vcombine.low %v1724_v16, %v1731_v20  ;;  %v5075_v30 = vcombine.high %v1724_v16, %v1731_v20  ;;  %5293 = vmatprep.subr.msk.mxu1 %vm2594_vm1, %v1868_v1 }
 0x243   : > { %v1504_v46 = vrot.slane %v1496_v28, %v6432_v60  ;;  %v1511_v47 = vrot.slane %v1497_v29, %v6432_v60  ;;  %v1520_v48 = vrot.slane %v1512_v27, %v6432_v60  ;;  %v1527_v49 = vrot.slane %v1513_v31, %v6432_v60  ;;  %5294 = vmatpush3.xpose.msk.msra.mxu1 %vm2594_vm1, %v1868_v1 }
 0x244   : > { %v6564_v54 = vrot.slane %v1940_v36, %v6428_v53  ;;  %v6567_v55 = vrot.slane %v5074_v38, %v6428_v53  ;;  %v6570_v56 = vrot.slane %v1956_v41, %v6428_v53  ;;  %v873_v57 = vpop.permute.xlu0 %872  ;;  %v6572_v33 = vpop.permute.xlu1 %850  ;;  %v1616_v18 = vcombine.low %v1433_v59, %v1457_v21 }
 0x245   : > { %v1736_v61 = vcombine.low %v1504_v46, %v1511_v47  ;;  %v5068_v62 = vcombine.high %v1504_v46, %v1511_v47  ;;  %v1752_v63 = vcombine.low %v1520_v48, %v1527_v49  ;;  %v5069_v0 = vcombine.high %v1520_v48, %v1527_v49 }
 0x246   : > { %v1617_v2 = vcombine.high %v1433_v59, %v1457_v21  ;;  %v1600_v3 = vcombine.low %v6390_v35, %v1445_v22  ;;  %v6578_v4 = vrot.slane %v5075_v30, %v6428_v53  ;;  %v1624_v15 = vrot.slane %v1616_v18, %v6428_v53 }
 0x247   : > { %v6581_v5 = vrot.slane %v1736_v61, %v6428_v53  ;;  %v6584_v6 = vrot.slane %v5068_v62, %v6428_v53  ;;  %v6587_v11 = vrot.slane %v1752_v63, %v6428_v53  ;;  %v1601_v12 = vcombine.high %v6390_v35, %v1445_v22 }
 0x248   : > { %v1631_v59 = vrot.slane %v1617_v2, %v6428_v53  ;;  %v1608_v16 = vrot.slane %v1600_v3, %v6428_v53  ;;  %v863_v20 = vpop.permute.xlu0 %862  ;;  %v875_v21 = vpop.permute.xlu1 %874  ;;  %v6595_v28 = vrot.slane %v5069_v0, %v6428_v53  ;;  %v1032_v29 = vcombine.low %v6462_v34, %v873_v57 }
 0x249   : > { %v1033_v27 = vcombine.high %v6462_v34, %v873_v57  ;;  %v1084_v31 = vcombine.low %v6400_v37, %v863_v20  ;;  %v1615_v36 = vrot.slane %v1601_v12, %v6428_v53  ;;  %v1085_v35 = vcombine.high %v6400_v37, %v863_v20 }
 0x24a   : > { %v1632_v38 = vcombine.low %v1608_v16, %v1624_v15  ;;  %v1633_v41 = vcombine.high %v1608_v16, %v1624_v15  ;;  %v1040_v22 = vrot.slane %v1032_v29, %v6428_v53  ;;  %v1100_v47 = vcombine.low %v6572_v33, %v875_v21 }
 0x24b   : > { %v1047_v30 = vrot.slane %v1033_v27, %v6428_v53  ;;  %v1092_v46 = vrot.slane %v1084_v31, %v6428_v53  ;;  %v1648_v49 = vcombine.low %v1615_v36, %v1631_v59  ;;  %v1649_v57 = vcombine.high %v1615_v36, %v1631_v59 }
 0x24c   : > { %v1640_v48 = vrot.slane %v1632_v38, %v6432_v60  ;;  %v1647_v34 = vrot.slane %v1633_v41, %v6432_v60  ;;  %v1048_v61 = vcombine.low %v6505_v19, %v1040_v22  ;;  %v1049_v62 = vcombine.high %v6505_v19, %v1040_v22 }
 0x24d   : > { %v1064_v63 = vcombine.low %v1031_v52, %v1047_v30  ;;  %v1065_v37 = vcombine.high %v1031_v52, %v1047_v30  ;;  %v1656_v0 = vrot.slane %v1648_v49, %v6432_v60  ;;  %v1663_v1 = vrot.slane %v1649_v57, %v6432_v60 }
 0x24e   : > { %v1872_v18 = vcombine.low %v1640_v48, %v1647_v34  ;;  %v5072_v2 = vcombine.high %v1640_v48, %v1647_v34  ;;  %v1056_v3 = vrot.slane %v1048_v61, %v6432_v60  ;;  %v1063_v15 = vrot.slane %v1049_v62, %v6432_v60 }
 0x24f   : > { %v1072_v12 = vrot.slane %v1064_v63, %v6432_v60  ;;  %v1079_v59 = vrot.slane %v1065_v37, %v6432_v60  ;;  %v1888_v19 = vcombine.low %v1656_v0, %v1663_v1  ;;  %v5073_v20 = vcombine.high %v1656_v0, %v1663_v1 }
 0x250   : > { %v6618_v16 = vrot.slane %v1872_v18, %v6428_v53  ;;  %v1099_v52 = vrot.slane %v1085_v35, %v6428_v53  ;;  %v1288_v29 = vcombine.low %v1056_v3, %v1063_v15  ;;  %v5064_v27 = vcombine.high %v1056_v3, %v1063_v15 }
 0x251   : > { %v1304_v31 = vcombine.low %v1072_v12, %v1079_v59  ;;  %v5065_v36 = vcombine.high %v1072_v12, %v1079_v59  ;;  %v6622_v38 = vrot.slane %v5072_v2, %v6428_v53  ;;  %v6625_v41 = vrot.slane %v1888_v19, %v6428_v53 }
 0x252   : > { %v1101_v22 = vcombine.high %v6572_v33, %v875_v21  ;;  %v1108_v30 = vrot.slane %v1100_v47, %v6428_v53  ;;  %v6630_v48 = vrot.slane %v5073_v20, %v6428_v53  ;;  %v6633_v34 = vrot.slane %v1288_v29, %v6428_v53 }
 0x253   : > { %v6636_v35 = vrot.slane %v5064_v27, %v6428_v53  ;;  %v6639_v49 = vrot.slane %v1304_v31, %v6428_v53  ;;  %v1972_v33 = vcombine.low %v6564_v54, %v6567_v55  ;;  %v6645_v21 = vrot.slane %v5065_v36, %v6428_v53 }
 0x254   : > { %v1115_v57 = vrot.slane %v1101_v22, %v6428_v53  ;;  %v1116_v61 = vcombine.low %v1092_v46, %v1108_v30  ;;  %v1117_v62 = vcombine.high %v1092_v46, %v1108_v30  ;;  %v1988_v47 = vcombine.low %v6570_v56, %v6578_v4 }
 0x255   : > { %v1768_v63 = vcombine.low %v6581_v5, %v6584_v6  ;;  %v1784_v37 = vcombine.low %v6587_v11, %v6595_v28  ;;  %v1980_v2 = vrot.slane %v1972_v33, %v6432_v60  ;;  %v1904_v36 = vcombine.low %v6618_v16, %v6622_v38 }
 0x256   : > { %v1124_v0 = vrot.slane %v1116_v61, %v6432_v60  ;;  %v1131_v1 = vrot.slane %v1117_v62, %v6432_v60  ;;  %v1132_v46 = vcombine.low %v1099_v52, %v1115_v57  ;;  %v1133_v18 = vcombine.high %v1099_v52, %v1115_v57 }
 0x257   : > { %v1996_v3 = vrot.slane %v1988_v47, %v6432_v60  ;;  %v1776_v15 = vrot.slane %v1768_v63, %v6432_v60  ;;  %v1792_v12 = vrot.slane %v1784_v37, %v6432_v60  ;;  %v1920_v52 = vcombine.low %v6625_v41, %v6630_v48 }
 0x258   : > { %v1140_v59 = vrot.slane %v1132_v46, %v6432_v60  ;;  %v1147_v19 = vrot.slane %v1133_v18, %v6432_v60  ;;  %v1356_v20 = vcombine.low %v1124_v0, %v1131_v1  ;;  %v5066_v29 = vcombine.high %v1124_v0, %v1131_v1 }
 0x259   : > { %v2004_v27 = vcombine.low %v1980_v2, %v1996_v3  ;;  %v1800_v31 = vcombine.low %v1776_v15, %v1792_v12  ;;  %v1253_v62 = vcombine.high %v6447_v23, %v6450_v24  ;;  %v1912_v33 = vrot.slane %v1904_v36, %v6432_v60 }
 0x25a   : > { %v6666_v22 = vrot.slane %v1356_v20, %v6428_v53  ;;  %v6669_v30 = vrot.slane %v5066_v29, %v6428_v53  ;;  %v1372_v57 = vcombine.low %v1140_v59, %v1147_v19  ;;  %v5067_v61 = vcombine.high %v1140_v59, %v1147_v19 }
 0x25b   : > { %5300 = vmatprep.subr.msk.mxu0 %vm2594_vm1, %v2004_v27  ;;  %5295 = vmatprep.subr.msk.mxu1 %vm2594_vm1, %v1800_v31  ;;  %v1928_v47 = vrot.slane %v1920_v52, %v6432_v60  ;;  %v1869_v1 = vcombine.high %v6549_v13, %v6552_v14  ;;  %v1269_v46 = vcombine.high %v6453_v25, %v6456_v26 }
 0x25c   : > { %v6678_v63 = vrot.slane %v1372_v57, %v6428_v53  ;;  %v6681_v37 = vrot.slane %v5067_v61, %v6428_v53  ;;  %v1388_v0 = vcombine.low %v6666_v22, %v6669_v30  ;;  %5301 = vmatpush3.xpose.msk.msra.mxu0 %vm2594_vm1, %v2004_v27  ;;  %5296 = vmatpush3.xpose.msk.msra.mxu1 %vm2594_vm1, %v1800_v31 }
 0x25d   : > { %v1284_v18 = vcombine.low %v6477_v58, %v6500_v17  ;;  %v1936_v59 = vcombine.low %v1912_v33, %v1928_v47  ;;  %v1320_v19 = vcombine.low %v6633_v34, %v6636_v35  ;;  %5307 = vmatprep.subr.msk.mxu1 %vm2594_vm1, %v1869_v1  ;;  %v1217_v13 = vcombine.high %v6529_v50, %v6532_v51 }
 0x25e   : > { %v6696_v20 = vrot.slane %v1388_v0, %v6432_v60  ;;  %v1404_v29 = vcombine.low %v6678_v63, %v6681_v37  ;;  %v1336_v14 = vcombine.low %v6639_v49, %v6645_v21  ;;  %v1801_v27 = vcombine.high %v1776_v15, %v1792_v12 }
 0x25f   : > { %5302 = vmatprep.subr.msk.mxu0 %vm2594_vm1, %v1936_v59  ;;  %v1328_v31 = vrot.slane %v1320_v19, %v6432_v60  ;;  %v1837_v36 = vcombine.high %v6515_v43, %v6518_v44  ;;  %v1853_v52 = vcombine.high %v6521_v45, %v6524_v32  ;;  %5298 = vmatmul.mubr.msk.f32.vlgmr.msra.gmra.mxu1 %vm2594_vm1, %v1284_v18  ;;  %v2015_v18 = vpop.permute.xlu1 %2014 }
 0x260   : > { %v1412_v57 = vrot.slane %v1404_v29, %v6432_v60  ;;  %5303 = vmatpush3.xpose.msk.msra.mxu0 %vm2594_vm1, %v1936_v59  ;;  %v2005_v50 = vcombine.high %v1980_v2, %v1996_v3  ;;  %v1344_v51 = vrot.slane %v1336_v14, %v6432_v60  ;;  %5308 = vmatpush3.xpose.msk.msra.mxu1 %vm2594_vm1, %v1869_v1  ;;  %v2027_v59 = vpop.permute.xlu0 %2026 }
 0x261   : > { %5311 = vmatprep.mubr.msk.f32.mxu1 %vm2594_vm1, %v1217_v13  ;;  %v1851_v15 = vrot.slane %v1837_v36, %v6432_v60  ;;  %v1867_v43 = vrot.slane %v1853_v52, %v6432_v60  ;;  %v1185_v44 = vcombine.high %v6484_v7, %v6487_v8  ;;  %5309 = vmatprep.subr.msk.mxu1 %vm2594_vm1, %v1801_v27 }
 0x262   : > { %5314 = vmatprep.subr.msk.mxu0 %vm2594_vm1, %v2005_v50  ;;  %v1352_v45 = vcombine.low %v1328_v31, %v1344_v51  ;;  %v1420_v32 = vcombine.low %v6696_v20, %v1412_v57  ;;  %v1285_v2 = vcombine.high %v6477_v58, %v6500_v17  ;;  %v1937_v3 = vcombine.high %v1912_v33, %v1928_v47 }
 0x263   : > { %v1199_v12 = vrot.slane %v1185_v44, %v6432_v60  ;;  %v1201_v61 = vcombine.high %v6490_v9, %v6493_v10  ;;  %v1769_v0 = vcombine.high %v6581_v5, %v6584_v6  ;;  %v1870_v7 = vcombine.low %v1851_v15, %v1867_v43 }
 0x264   : > { %5304 = vmatprep.mubr.msk.f32.mxu0 %vm2594_vm1, %v1352_v45  ;;  %v1785_v8 = vcombine.high %v6587_v11, %v6595_v28  ;;  %v1973_v1 = vcombine.high %v6564_v54, %v6567_v55  ;;  %v1989_v58 = vcombine.high %v6570_v56, %v6578_v4  ;;  %5310 = vmatpush3.xpose.msk.msra.mxu1 %vm2594_vm1, %v1801_v27 }
 0x265   : > { %5305 = vmatmul.mubr.msk.f32.vlgmr.msra.gmra.mxu0 %vm2594_vm1, %v1420_v32  ;;  %v1353_v9 = vcombine.high %v1328_v31, %v1344_v51  ;;  %v1215_v10 = vrot.slane %v1201_v61, %v6432_v60  ;;  %v1783_v17 = vrot.slane %v1769_v0, %v6432_v60  ;;  %5321 = vmatprep.subr.msk.mxu1 %vm2594_vm1, %v1870_v7  ;;  %v2039_v31 = vpop.permute.xlu1 %2038 }
 0x266   : > { %5315 = vmatpush3.xpose.msk.msra.mxu0 %vm2594_vm1, %v2005_v50  ;;  %v1799_v5 = vrot.slane %v1785_v8, %v6432_v60  ;;  %v1987_v54 = vrot.slane %v1973_v1, %v6432_v60  ;;  %v2003_v55 = vrot.slane %v1989_v58, %v6432_v60  ;;  %v1389_v56 = vcombine.high %v6666_v22, %v6669_v30 }
 0x267   : > { %5316 = vmatprep.subr.msk.mxu0 %vm2594_vm1, %v1937_v3  ;;  %5318 = vmatprep.mubr.msk.f32.mxu0 %vm2594_vm1, %v1353_v9  ;;  %v1218_v4 = vcombine.low %v1199_v12, %v1215_v10  ;;  %v1267_v11 = vrot.slane %v1253_v62, %v6432_v60  ;;  %v1321_v28 = vcombine.high %v6633_v34, %v6636_v35 }
 0x268   : > { %5312 = vmatmul.mubr.msk.f32.vlgmr.msra.gmra.mxu1 %vm2594_vm1, %v1285_v2  ;;  %v1802_v6 = vcombine.low %v1783_v17, %v1799_v5  ;;  %v1337_v33 = vcombine.high %v6639_v49, %v6645_v21  ;;  %v2006_v22 = vcombine.low %v1987_v54, %v2003_v55  ;;  %v1905_v30 = vcombine.high %v6618_v16, %v6622_v38 }
 0x269   : > { %5322 = vmatpush3.xpose.msk.msra.mxu1 %vm2594_vm1, %v1870_v7  ;;  %5325 = vmatprep.mubr.msk.f32.mxu1 %vm2594_vm1, %v1218_v4  ;;  %v1921_v47 = vcombine.high %v6625_v41, %v6630_v48  ;;  %v1283_v23 = vrot.slane %v1269_v46, %v6432_v60  ;;  %v1335_v24 = vrot.slane %v1321_v28, %v6432_v60 }
 0x26a   : > { %5323 = vmatprep.subr.msk.mxu1 %vm2594_vm1, %v1802_v6  ;;  %5317 = vmatpush3.xpose.msk.msra.mxu0 %vm2594_vm1, %v1937_v3  ;;  %v1351_v34 = vrot.slane %v1337_v33, %v6432_v60  ;;  %v1405_v35 = vcombine.high %v6678_v63, %v6681_v37  ;;  %v1421_v16 = vcombine.high %v6696_v20, %v1412_v57 }
 0x26b   : > { %5328 = vmatprep.subr.msk.mxu0 %vm2594_vm1, %v2006_v22  ;;  %v1919_v38 = vrot.slane %v1905_v30, %v6432_v60  ;;  %v1935_v41 = vrot.slane %v1921_v47, %v6432_v60  ;;  %v1871_v48 = vcombine.high %v1851_v15, %v1867_v43  ;;  %v1286_v49 = vcombine.low %v1267_v11, %v1283_v23 }
 0x26c   : > { %v1354_v25 = vcombine.low %v1335_v24, %v1351_v34  ;;  %v1219_v21 = vcombine.high %v1199_v12, %v1215_v10  ;;  %v1403_v62 = vrot.slane %v1389_v56, %v6432_v60  ;;  %v1419_v63 = vrot.slane %v1405_v35, %v6432_v60  ;;  %v2592_v35 = vld [vmem:[%s7352_s26] sm:$0xff] }
 0x26d   : > { %5324 = vmatpush3.xpose.msk.msra.mxu1 %vm2594_vm1, %v1802_v6  ;;  %5319 = vmatmul.mubr.msk.f32.vlgmr.msra.gmra.mxu0 %vm2594_vm1, %v1421_v16  ;;  %v1938_v26 = vcombine.low %v1919_v38, %v1935_v41  ;;  %v1803_v37 = vcombine.high %v1783_v17, %v1799_v5  ;;  %v2007_v46 = vcombine.high %v1987_v54, %v2003_v55 }
 0x26e   : > { %5335 = vmatprep.subr.msk.mxu1 %vm2594_vm1, %v1871_v48  ;;  %5329 = vmatpush3.xpose.msk.msra.mxu0 %vm2594_vm1, %v2006_v22  ;;  %v1422_v19 = vcombine.low %v1403_v62, %v1419_v63  ;;  %v2116_v20 = vcombine.low %v6413_v40, %v2027_v59  ;;  %v2117_v29 = vcombine.high %v6413_v40, %v2027_v59 }
 0x26f   : > { %5332 = vmatprep.mubr.msk.f32.mxu0 %vm2594_vm1, %v1354_v25  ;;  %5330 = vmatprep.subr.msk.mxu0 %vm2594_vm1, %v1938_v26  ;;  %v1355_v13 = vcombine.high %v1335_v24, %v1351_v34  ;;  %v1939_v14 = vcombine.high %v1919_v38, %v1935_v41  ;;  %v1287_v27 = vcombine.high %v1267_v11, %v1283_v23  ;;  %v2593_v23 = vld [vmem:[%s7352_s26 + $0x8] sm:$0xff]  ;;  %v6827_v24 = vpop.f32.mrf.mxu0 }
 0x270   : > { %5326 = vmatmul.mubr.msk.f32.vlgmr.msra.gmra.mxu1 %vm2594_vm1, %v1286_v49  ;;  %v2132_v36 = vcombine.low %v2015_v18, %v2039_v31  ;;  %v2133_v52 = vcombine.high %v2015_v18, %v2039_v31  ;;  %v2124_v57 = vrot.slane %v2116_v20, %v6428_v53  ;;  %v2131_v40 = vrot.slane %v2117_v29, %v6428_v53 }
 0x271   : > { %5336 = vmatpush3.xpose.msk.msra.mxu1 %vm2594_vm1, %v1871_v48  ;;  %5339 = vmatprep.mubr.msk.f32.mxu1 %vm2594_vm1, %v1219_v21  ;;  %v1423_v15 = vcombine.high %v1403_v62, %v1419_v63  ;;  %v6836_v48 = vpop.f32.mrf.mxu0 }
 0x272   : > { %5337 = vmatprep.subr.msk.mxu1 %vm2594_vm1, %v1803_v37  ;;  %5331 = vmatpush3.xpose.msk.msra.mxu0 %vm2594_vm1, %v1938_v26  ;;  %v2140_v50 = vrot.slane %v2132_v36, %v6428_v53  ;;  %v2147_v51 = vrot.slane %v2133_v52, %v6428_v53 }
 0x273   : > { %5342 = vmatprep.subr.msk.mxu0 %vm2594_vm1, %v2007_v46 }
 0x274   : > { %v2148_v43 = vcombine.low %v2124_v57, %v2140_v50  ;;  %v2149_v44 = vcombine.high %v2124_v57, %v2140_v50  ;;  %v2164_v45 = vcombine.low %v2131_v40, %v2147_v51  ;;  %v2165_v32 = vcombine.high %v2131_v40, %v2147_v51 }
 0x275   : > { %5338 = vmatpush3.xpose.msk.msra.mxu1 %vm2594_vm1, %v1803_v37  ;;  %5333 = vmatmul.mubr.msk.f32.vlgmr.msra.gmra.mxu0 %vm2594_vm1, %v1422_v19 }
 0x276   : > { %5343 = vmatpush3.xpose.msk.msra.mxu0 %vm2594_vm1, %v2007_v46  ;;  %5346 = vmatprep.mubr.msk.f32.mxu0 %vm2594_vm1, %v1355_v13  ;;  %v2156_v2 = vrot.slane %v2148_v43, %v6432_v60  ;;  %v2163_v3 = vrot.slane %v2149_v44, %v6432_v60  ;;  %v2172_v12 = vrot.slane %v2164_v45, %v6432_v60 }
 0x277   : > { %5344 = vmatprep.subr.msk.mxu0 %vm2594_vm1, %v1939_v14  ;;  %v2179_v61 = vrot.slane %v2165_v32, %v6432_v60 }
 0x278   : > { %5340 = vmatmul.mubr.msk.f32.vlgmr.msra.gmra.mxu1 %vm2594_vm1, %v1287_v27  ;;  %v2388_v0 = vcombine.low %v2156_v2, %v2163_v3  ;;  %v5078_v7 = vcombine.high %v2156_v2, %v2163_v3 }
 0x279   : > { %v2404_v8 = vcombine.low %v2172_v12, %v2179_v61  ;;  %v5079_v1 = vcombine.high %v2172_v12, %v2179_v61 }
 0x27a   : > { %5345 = vmatpush3.xpose.msk.msra.mxu0 %vm2594_vm1, %v1939_v14  ;;  %v2395_v58 = vrot.slane %v2388_v0, %v6428_v53  ;;  %v2403_v9 = vrot.slane %v5078_v7, %v6428_v53 }
 0x27b   : > { %v2411_v10 = vrot.slane %v2404_v8, %v6428_v53  ;;  %v2419_v17 = vrot.slane %v5079_v1, %v6428_v53 }
 0x27c   : > { %v2420_v5 = vcombine.low %v2395_v58, %v2403_v9  ;;  %v2421_v11 = vcombine.high %v2395_v58, %v2403_v9 }
 0x27d   : > { %5347 = vmatmul.mubr.msk.f32.vlgmr.msra.gmra.mxu0 %vm2594_vm1, %v1423_v15  ;;  %v2436_v54 = vcombine.low %v2411_v10, %v2419_v17  ;;  %v2437_v28 = vcombine.high %v2411_v10, %v2419_v17 }
 0x27e   : > { %v2428_v55 = vrot.slane %v2420_v5, %v6432_v60  ;;  %v2435_v33 = vrot.slane %v2421_v11, %v6432_v60  ;;  %v6920_v11 = vpop.permute.xlu1 %2024 }
 0x27f   : > { %v2444_v56 = vrot.slane %v2436_v54, %v6432_v60  ;;  %v2451_v22 = vrot.slane %v2437_v28, %v6432_v60  ;;  %v6922_v28 = vpop.permute.xlu0 %2012 }
 0x281   : > { %v2452_v4 = vcombine.low %v2428_v55, %v2444_v56  ;;  %v2453_v6 = vcombine.high %v2428_v55, %v2444_v56  ;;  %v6820_v30 = vcombine.low %v2435_v33, %v2451_v22  ;;  %v6822_v47 = vcombine.high %v2435_v33, %v2451_v22 }
 0x283   : > { %5349 = vmatprep.subr.mxu1 %v2452_v4  ;;  %5363 = vmatprep.subr.mxu0 %v2453_v6 }
 0x284   : > { %5350 = vmatpush3.msra.mxu1 %v2452_v4  ;;  %5364 = vmatpush3.msra.mxu0 %v2453_v6  ;;  %v6902_v4 = vadd.f32 %v6827_v24, %v6410_v39  ;;  %v6908_v6 = vadd.f32 %v6410_v39, %v6836_v48 }
 0x31f   : > { %v5299_v34 = vpop.f32.mrf.mxu1 }
 0x320   : > { %v6832_v16 = vadd.f32 %v5299_v34, %v2593_v23 }
 0x321   : > { %v2673_v38 = vpop.f32.mrf.mxu1 }
 0x322   : > { %v6834_v41 = vadd.f32 %v2673_v38, %v2592_v35  ;;  %v3295_v25 = vsel %vm3291_vm2, %v6832_v16, -inf }
 0x323   : > { %3296 = vmax.xlane.f32.xlu1 %v3295_v25 }
 0x324   : > { %v3292_v26 = vsel %vm3291_vm2, %v6834_v41, -inf }
 0x325   : > { %v5306_v49 = vpop.f32.mrf.mxu0  ;;  %3293 = vmax.xlane.f32.xlu0 %v3292_v26 }
 0x326   : > { %v6842_v21 = vadd.f32 %v5306_v49, %v2593_v23 }
 0x327   : > { %v2760_v62 = vpop.f32.mrf.mxu0 }
 0x328   : > { %v5313_v63 = vpop.f32.mrf.mxu1  ;;  %v6844_v37 = vadd.f32 %v2760_v62, %v2592_v35  ;;  %v3301_v46 = vsel %vm3291_vm2, %v6842_v21, -inf }
 0x329   : > { %3302 = vmax.xlane.f32.xlu1 %v3301_v46  ;;  %v6848_v18 = vadd.f32 %v5313_v63, %v2593_v23 }
 0x32a   : > { %v3298_v59 = vsel %vm3291_vm2, %v6844_v37, -inf  ;;  %v2847_v19 = vpop.f32.mrf.mxu1 }
 0x32b   : > { %3299 = vmax.xlane.f32.xlu0 %v3298_v59  ;;  %v6852_v29 = vadd.f32 %v2847_v19, %v2592_v35  ;;  %v3307_v14 = vsel %vm3291_vm2, %v6848_v18, -inf }
 0x32d   : > { %v5320_v20 = vpop.f32.mrf.mxu0  ;;  %v3304_v40 = vsel %vm3291_vm2, %v6852_v29, -inf }
 0x32e   : > { %v6854_v13 = vadd.f32 %v5320_v20, %v2593_v23 }
 0x32f   : > { %v2934_v27 = vpop.f32.mrf.mxu0  ;;  %3308 = vmax.xlane.f32.xlu0 %v3307_v14 }
 0x330   : > { %v5327_v31 = vpop.f32.mrf.mxu1  ;;  %v6858_v36 = vadd.f32 %v2934_v27, %v2592_v35  ;;  %v3313_v52 = vsel %vm3291_vm2, %v6854_v13, -inf }
 0x331   : > { %3314 = vmax.xlane.f32.xlu1 %v3313_v52  ;;  %v6862_v57 = vadd.f32 %v5327_v31, %v2593_v23 }
 0x332   : > { %v3021_v50 = vpop.f32.mrf.mxu1  ;;  %v3310_v51 = vsel %vm3291_vm2, %v6858_v36, -inf }
 0x333   : > { %3305 = vmax.xlane.f32.xlu0 %v3304_v40  ;;  %v6868_v43 = vadd.f32 %v3021_v50, %v2592_v35  ;;  %v3319_v45 = vsel %vm3291_vm2, %v6862_v57, -inf }
 0x335   : > { %v5334_v15 = vpop.f32.mrf.mxu0  ;;  %3311 = vmax.xlane.f32.xlu1 %v3310_v51  ;;  %v3316_v0 = vsel %vm3291_vm2, %v6868_v43, -inf }
 0x336   : > { %v6870_v44 = vadd.f32 %v5334_v15, %v2593_v23 }
 0x337   : > { %v3108_v32 = vpop.f32.mrf.mxu0  ;;  %3320 = vmax.xlane.f32.xlu0 %v3319_v45 }
 0x338   : > { %v5341_v2 = vpop.f32.mrf.mxu1  ;;  %v6874_v3 = vadd.f32 %v3108_v32, %v2592_v35  ;;  %v3325_v12 = vsel %vm3291_vm2, %v6870_v44, -inf }
 0x339   : > { %3326 = vmax.xlane.f32.xlu1 %v3325_v12  ;;  %v6878_v61 = vadd.f32 %v5341_v2, %v2593_v23 }
 0x33a   : > { %v3195_v7 = vpop.f32.mrf.mxu1  ;;  %v3322_v8 = vsel %vm3291_vm2, %v6874_v3, -inf }
 0x33b   : > { %3317 = vmax.xlane.f32.xlu0 %v3316_v0  ;;  %v6884_v58 = vadd.f32 %v3195_v7, %v2592_v35  ;;  %v3331_v9 = vsel %vm3291_vm2, %v6878_v61, -inf }
 0x33d   : > { %v5348_v1 = vpop.f32.mrf.mxu0  ;;  %3323 = vmax.xlane.f32.xlu1 %v3322_v8  ;;  %v3328_v55 = vsel %vm3291_vm2, %v6884_v58, -inf }
 0x33e   : > { %v6890_v5 = vadd.f32 %v5348_v1, %v2593_v23 }
 0x33f   : > { %v3282_v10 = vpop.f32.mrf.mxu0  ;;  %3332 = vmax.xlane.f32.xlu0 %v3331_v9 }
 0x340   : > { %v6888_v17 = vadd.f32 %v3282_v10, %v2592_v35  ;;  %v3337_v56 = vsel %vm3291_vm2, %v6890_v5, -inf }
 0x342   : > { %v3334_v54 = vsel %vm3291_vm2, %v6888_v17, -inf }
 0x343   : > { %3335 = vmax.xlane.f32.xlu1 %v3334_v54  ;;  %3329 = vmax.xlane.f32.xlu0 %v3328_v55 }
 0x347   : > { %3338 = vmax.xlane.f32.xlu0 %v3337_v56 }
 0x354   : > { %2036 = vrot.lane.b32.xlu1 %v6420_v42, %s5982_s20 }
 0x358   : > { %2030 = vrot.lane.b32.xlu1 %v6902_v4, %s5980_s10 }
 0x35c   : > { %2028 = vrot.lane.b32.xlu1 %v6908_v6, %s5980_s10  ;;  %s7353_s10 = sld [smem:[#allocation33_spill]] }
 0x35d   : > { %2018 = vrot.lane.b32.xlu0 %v6902_v4, %s5981_s1 }
 0x360   : > { %2040 = vrot.lane.b32.xlu1 %v6908_v6, %s5982_s20 }
 0x361   : > { %2042 = vrot.lane.b32.xlu0 %v6902_v4, %s5982_s20  ;;  %s4834_s20 = scalar_lea.sflag [#allocation4], %s6298_s13 }
 0x365   : > { %2016 = vrot.lane.b32.xlu0 %v6908_v6, %s5981_s1  ;;  %s7241_s1 = scalar_lea.hbm %s7353_s10, %s6097_s25 }
 0x3ac   : > { %v3297_v39 = vpop.xlane.xlu1 %3296 }
 0x3ad   : > { %v3341_v33 = vsub.f32 %v6832_v16, %v3297_v39 }
 0x3ae   : > { %v3294_v22 = vpop.xlane.xlu0 %3293 }
 0x3af   : > { %v3358_v23 = vmul.f32 1.442695, %v3341_v33  ;;  %v3340_v24 = vsub.f32 %v6834_v41, %v3294_v22 }
 0x3b1   : > { %5561 = vpow2.f32 %v3358_v23  ;;  %v3356_v34 = vmul.f32 1.442695, %v3340_v24  ;;  %v2049_v24 = vcombine.high %v6420_v42, %v6920_v11 }
 0x3b2   : > { %v3303_v35 = vpop.xlane.xlu1 %3302 }
 0x3b3   : > { %v3343_v38 = vsub.f32 %v6842_v21, %v3303_v35  ;;  %5563 = vpow2.f32 %v3356_v34 }
 0x3b4   : > { %v3300_v48 = vpop.xlane.xlu0 %3299 }
 0x3b5   : > { %v3362_v25 = vmul.f32 1.442695, %v3343_v38  ;;  %v3342_v26 = vsub.f32 %v6844_v37, %v3300_v48 }
 0x3b7   : > { %5565 = vpow2.f32 %v3362_v25  ;;  %v3360_v49 = vmul.f32 1.442695, %v3342_v26 }
 0x3b8   : > { %v3309_v62 = vpop.xlane.xlu0 %3308 }
 0x3b9   : > { %v3345_v63 = vsub.f32 %v6848_v18, %v3309_v62  ;;  %5567 = vpow2.f32 %v3360_v49 }
 0x3ba   : > { %v3315_v16 = vpop.xlane.xlu1 %3314 }
 0x3bb   : > { %v3366_v46 = vmul.f32 1.442695, %v3345_v63  ;;  %v3347_v41 = vsub.f32 %v6854_v13, %v3315_v16 }
 0x3bc   : > { %v3306_v59 = vpop.xlane.xlu0 %3305 }
 0x3bd   : > { %5569 = vpow2.f32 %v3366_v46  ;;  %v3344_v19 = vsub.f32 %v6852_v29, %v3306_v59  ;;  %v3370_v21 = vmul.f32 1.442695, %v3347_v41 }
 0x3be   : > { %v3312_v20 = vpop.xlane.xlu1 %3311  ;;  %v6931_v14 = vpop.eup %5561 }
 0x3bf   : > { %v3364_v27 = vmul.f32 1.442695, %v3344_v19  ;;  %v3346_v37 = vsub.f32 %v6858_v36, %v3312_v20  ;;  %v3391_v31 = vsel %vm3291_vm2, %v6931_v14, 0.0 }
 0x3c0   : > { %v3321_v18 = vpop.xlane.xlu0 %3320  ;;  %v6936_v52 = vpop.eup %5563  ;;  %3392 = vadd.xlane.f32.xlu0 %v3391_v31 }
 0x3c1   : > { %5571 = vpow2.f32 %v3364_v27  ;;  %v3368_v40 = vmul.f32 1.442695, %v3346_v37  ;;  %v3349_v13 = vsub.f32 %v6862_v57, %v3321_v18  ;;  %v3388_v29 = vsel %vm3291_vm2, %v6936_v52, 0.0 }
 0x3c2   : > { %5573 = vpow2.f32 %v3370_v21  ;;  %v3327_v50 = vpop.xlane.xlu1 %3326  ;;  %3389 = vadd.xlane.f32.xlu1 %v3388_v29 }
 0x3c3   : > { %5575 = vpow2.f32 %v3368_v40  ;;  %v3374_v51 = vmul.f32 1.442695, %v3349_v13  ;;  %v3351_v36 = vsub.f32 %v6870_v44, %v3327_v50 }
 0x3c4   : > { %v6942_v15 = vpop.eup %5565  ;;  %v3318_v45 = vpop.xlane.xlu0 %3317 }
 0x3c5   : > { %5577 = vpow2.f32 %v3374_v51  ;;  %v3348_v32 = vsub.f32 %v6868_v43, %v3318_v45  ;;  %v3397_v2 = vsel %vm3291_vm2, %v6942_v15, 0.0  ;;  %v3378_v57 = vmul.f32 1.442695, %v3351_v36 }
 0x3c6   : > { %v3324_v12 = vpop.xlane.xlu1 %3323  ;;  %v6947_v0 = vpop.eup %5567  ;;  %3398 = vadd.xlane.f32.xlu1 %v3397_v2 }
 0x3c7   : > { %v3372_v7 = vmul.f32 1.442695, %v3348_v32  ;;  %v3350_v8 = vsub.f32 %v6874_v3, %v3324_v12  ;;  %v3394_v43 = vsel %vm3291_vm2, %v6947_v0, 0.0 }
 0x3c8   : > { %v3333_v1 = vpop.xlane.xlu0 %3332 }
 0x3c9   : > { %5579 = vpow2.f32 %v3372_v7  ;;  %v3376_v44 = vmul.f32 1.442695, %v3350_v8  ;;  %v3353_v9 = vsub.f32 %v6878_v61, %v3333_v1  ;;  %v2048_v61 = vcombine.low %v6420_v42, %v6920_v11 }
 0x3ca   : > { %v6951_v10 = vpop.eup %5569  ;;  %5581 = vpow2.f32 %v3378_v57  ;;  %3395 = vadd.xlane.f32.xlu1 %v3394_v43  ;;  %v2063_v11 = vrot.slane %v2049_v24, %v6428_v53 }
 0x3cb   : > { %5583 = vpow2.f32 %v3376_v44  ;;  %v3382_v54 = vmul.f32 1.442695, %v3353_v9  ;;  %v3403_v55 = vsel %vm3291_vm2, %v6951_v10, 0.0 }
 0x3cc   : > { %v3336_v56 = vpop.xlane.xlu1 %3335  ;;  %v3330_v3 = vpop.xlane.xlu0 %3329  ;;  %3404 = vadd.xlane.f32.xlu0 %v3403_v55 }
 0x3cd   : > { %5585 = vpow2.f32 %v3382_v54  ;;  %v3352_v39 = vsub.f32 %v6884_v58, %v3330_v3  ;;  %v3354_v22 = vsub.f32 %v6888_v17, %v3336_v56  ;;  %v2056_v17 = vrot.slane %v2048_v61, %v6428_v53 }
 0x3ce   : > { %v6958_v33 = vpop.eup %5571 }
 0x3cf   : > { %v6963_v23 = vpop.eup %5573  ;;  %v3400_v34 = vsel %vm3291_vm2, %v6958_v33, 0.0  ;;  %v3380_v38 = vmul.f32 1.442695, %v3352_v39  ;;  %v3384_v62 = vmul.f32 1.442695, %v3354_v22 }
 0x3d0   : > { %v6969_v35 = vpop.eup %5575  ;;  %v2037_v48 = vpop.permute.xlu1 %2036  ;;  %3401 = vadd.xlane.f32.xlu0 %v3400_v34  ;;  %v3409_v46 = vsel %vm3291_vm2, %v6963_v23, 0.0 }
 0x3d1   : > { %v3339_v58 = vpop.xlane.xlu0 %3338  ;;  %v2064_v25 = vcombine.low %v6922_v28, %v2037_v48  ;;  %v2065_v26 = vcombine.high %v6922_v28, %v2037_v48  ;;  %v3406_v42 = vsel %vm3291_vm2, %v6969_v35, 0.0  ;;  %5587 = vpow2.f32 %v3380_v38 }
 0x3d2   : > { %v6973_v49 = vpop.eup %5577  ;;  %3407 = vadd.xlane.f32.xlu1 %v3406_v42  ;;  %v3355_v28 = vsub.f32 %v6890_v5, %v3339_v58  ;;  %5589 = vpow2.f32 %v3384_v62 }
 0x3d3   : > { %v2072_v63 = vrot.slane %v2064_v25, %v6428_v53  ;;  %v2079_v16 = vrot.slane %v2065_v26, %v6428_v53  ;;  %v3415_v59 = vsel %vm3291_vm2, %v6973_v49, 0.0 }
 0x3d4   : > { %3410 = vadd.xlane.f32.xlu0 %v3409_v46  ;;  %v2031_v37 = vpop.permute.xlu1 %2030  ;;  %v3386_v51 = vmul.f32 1.442695, %v3355_v28 }
 0x3d5   : > { %v2019_v41 = vpop.permute.xlu0 %2018  ;;  %v2080_v19 = vcombine.low %v2056_v17, %v2072_v63  ;;  %v2081_v21 = vcombine.high %v2056_v17, %v2072_v63  ;;  %v2096_v20 = vcombine.low %v2063_v11, %v2079_v16  ;;  %v2097_v27 = vcombine.high %v2063_v11, %v2079_v16 }
 0x3d6   : > { %v6986_v31 = vpop.eup %5579  ;;  %3416 = vadd.xlane.f32.xlu1 %v3415_v59  ;;  %v2252_v36 = vcombine.low %v6902_v4, %v2031_v37  ;;  %v2253_v45 = vcombine.high %v6902_v4, %v2031_v37  ;;  %5591 = vpow2.f32 %v3386_v51 }
 0x3d7   : > { %v6988_v18 = vpop.eup %5581  ;;  %v2088_v40 = vrot.slane %v2080_v19, %v6432_v60  ;;  %v2095_v13 = vrot.slane %v2081_v21, %v6432_v60  ;;  %v2104_v5 = vrot.slane %v2096_v20, %v6432_v60  ;;  %v2111_v29 = vrot.slane %v2097_v27, %v6432_v60 }
 0x3d8   : > { %v6994_v50 = vpop.eup %5583  ;;  %v3412_v2 = vsel %vm3291_vm2, %v6986_v31, 0.0  ;;  %v3421_v54 = vsel %vm3291_vm2, %v6988_v18, 0.0  ;;  %v2260_v56 = vrot.slane %v2252_v36, %v6428_v53  ;;  %v2267_v3 = vrot.slane %v2253_v45, %v6428_v53 }
 0x3d9   : > { %v2043_v32 = vpop.permute.xlu0 %2042  ;;  %v2320_v57 = vcombine.low %v2088_v40, %v2095_v13  ;;  %v5076_v12 = vcombine.high %v2088_v40, %v2095_v13  ;;  %v2336_v7 = vcombine.low %v2104_v5, %v2111_v29  ;;  %v5077_v8 = vcombine.high %v2104_v5, %v2111_v29  ;;  %3413 = vadd.xlane.f32.xlu0 %v3412_v2 }
 0x3da   : > { %v7000_v1 = vpop.eup %5585  ;;  %v2268_v44 = vcombine.low %v2019_v41, %v2043_v32  ;;  %v2269_v9 = vcombine.high %v2019_v41, %v2043_v32  ;;  %v3418_v43 = vsel %vm3291_vm2, %v6994_v50, 0.0 }
 0x3db   : > { %v2327_v4 = vrot.slane %v2320_v57, %v6428_v53  ;;  %v2335_v55 = vrot.slane %v5076_v12, %v6428_v53  ;;  %3419 = vadd.xlane.f32.xlu1 %v3418_v43  ;;  %v3427_v22 = vsel %vm3291_vm2, %v7000_v1, 0.0  ;;  %v2343_v24 = vrot.slane %v2336_v7, %v6428_v53 }
 0x3dc   : > { %v2276_v39 = vrot.slane %v2268_v44, %v6428_v53  ;;  %v2283_v61 = vrot.slane %v2269_v9, %v6428_v53  ;;  %v2351_v34 = vrot.slane %v5077_v8, %v6428_v53 }
 0x3dd   : > { %3422 = vadd.xlane.f32.xlu0 %v3421_v54  ;;  %v2352_v26 = vcombine.low %v2327_v4, %v2335_v55  ;;  %v2353_v9 = vcombine.high %v2327_v4, %v2335_v55 }
 0x3de   : > { %v2284_v38 = vcombine.low %v2260_v56, %v2276_v39  ;;  %v2285_v48 = vcombine.high %v2260_v56, %v2276_v39  ;;  %v2300_v58 = vcombine.low %v2267_v3, %v2283_v61  ;;  %v2301_v25 = vcombine.high %v2267_v3, %v2283_v61  ;;  %v7020_v16 = vpop.eup %5587 }
 0x3df   : > { %v2368_v17 = vcombine.low %v2343_v24, %v2351_v34  ;;  %3428 = vadd.xlane.f32.xlu1 %v3427_v22  ;;  %v7022_v28 = vpop.eup %5589  ;;  %v3424_v21 = vsel %vm3291_vm2, %v7020_v16, 0.0  ;;  %v2360_v20 = vrot.slane %v2352_v26, %v6432_v60  ;;  %v2369_v54 = vcombine.high %v2343_v24, %v2351_v34  ;;  %v2029_v34 = vpop.permute.xlu1 %2028 }
 0x3e0   : > { %v2292_v62 = vrot.slane %v2284_v38, %v6432_v60  ;;  %v2299_v42 = vrot.slane %v2285_v48, %v6432_v60  ;;  %v2308_v11 = vrot.slane %v2300_v58, %v6432_v60  ;;  %v2315_v63 = vrot.slane %v2301_v25, %v6432_v60  ;;  %v2017_v58 = vpop.permute.xlu0 %2016 }
 0x3e1   : > { %v2376_v27 = vrot.slane %v2368_v17, %v6432_v60  ;;  %3425 = vadd.xlane.f32.xlu0 %v3424_v21  ;;  %v3430_v36 = vsel %vm3291_vm2, %v7022_v28, 0.0  ;;  %v2367_v61 = vrot.slane %v2353_v9, %v6432_v60  ;;  %v2383_v38 = vrot.slane %v2369_v54, %v6432_v60 }
 0x3e2   : > { %v2524_v46 = vcombine.low %v2292_v62, %v2299_v42  ;;  %v5082_v41 = vcombine.high %v2292_v62, %v2299_v42  ;;  %v2540_v59 = vcombine.low %v2308_v11, %v2315_v63  ;;  %v5083_v19 = vcombine.high %v2308_v11, %v2315_v63 }
 0x3e3   : > { %v2384_v37 = vcombine.low %v2360_v20, %v2376_v27  ;;  %v2385_v40 = vcombine.high %v2360_v20, %v2376_v27  ;;  %v7034_v57 = vpop.eup %5591  ;;  %v7054_v55 = vcombine.low %v2367_v61, %v2383_v38  ;;  %v7056_v24 = vcombine.high %v2367_v61, %v2383_v38  ;;  %v2041_v48 = vpop.permute.xlu1 %2040 }
 0x3e4   : > { %v2531_v13 = vrot.slane %v2524_v46, %v6428_v53  ;;  %v2539_v5 = vrot.slane %v5082_v41, %v6428_v53  ;;  %v2547_v29 = vrot.slane %v2540_v59, %v6428_v53  ;;  %v2555_v51 = vrot.slane %v5083_v19, %v6428_v53 }
 0x3e5   : > { %5351 = vmatprep.subr.mxu1 %v2384_v37  ;;  %5365 = vmatprep.subr.mxu0 %v2385_v40  ;;  %v3433_v56 = vsel %vm3291_vm2, %v7034_v57, 0.0  ;;  %v2200_v25 = vcombine.low %v2017_v58, %v2041_v48  ;;  %v2201_v26 = vcombine.high %v2017_v58, %v2041_v48  ;;  %v2184_v17 = vcombine.low %v6908_v6, %v2029_v34 }
 0x3e6   : > { %5352 = vmatpush3.msra.mxu1 %v2384_v37  ;;  %5366 = vmatpush3.msra.mxu0 %v2385_v40  ;;  %v2556_v45 = vcombine.low %v2531_v13, %v2539_v5  ;;  %v2572_v32 = vcombine.low %v2547_v29, %v2555_v51  ;;  %v2557_v2 = vcombine.high %v2531_v13, %v2539_v5 }
 0x3e7   : > { %3431 = vadd.xlane.f32.xlu0 %v3430_v36  ;;  %5377 = vmatprep.subr.mxu0 %v6820_v30  ;;  %v2573_v12 = vcombine.high %v2547_v29, %v2555_v51  ;;  %v2185_v62 = vcombine.high %v6908_v6, %v2029_v34  ;;  %v2208_v42 = vrot.slane %v2200_v25, %v6428_v53 }
 0x3e8   : > { %v2564_v7 = vrot.slane %v2556_v45, %v6432_v60  ;;  %v2580_v8 = vrot.slane %v2572_v32, %v6432_v60  ;;  %v2571_v44 = vrot.slane %v2557_v2, %v6432_v60  ;;  %v2215_v11 = vrot.slane %v2201_v26, %v6428_v53 }
 0x3e9   : > { %v2587_v43 = vrot.slane %v2573_v12, %v6432_v60  ;;  %v2192_v63 = vrot.slane %v2184_v17, %v6428_v53  ;;  %v2199_v46 = vrot.slane %v2185_v62, %v6428_v53 }
 0x3ea   : > { %v7043_v3 = vcombine.low %v2564_v7, %v2580_v8  ;;  %v7045_v39 = vcombine.high %v2564_v7, %v2580_v8 }
 0x3eb   : > { %3434 = vadd.xlane.f32.xlu0 %v3433_v56  ;;  %v7048_v22 = vcombine.low %v2571_v44, %v2587_v43  ;;  %v7052_v4 = vcombine.high %v2571_v44, %v2587_v43  ;;  %v2216_v41 = vcombine.low %v2192_v63, %v2208_v42  ;;  %v2217_v59 = vcombine.high %v2192_v63, %v2208_v42 }
 0x3ec   : > { %5356 = vmatprep.subr.mxu1 %v7043_v3  ;;  %v2232_v19 = vcombine.low %v2199_v46, %v2215_v11  ;;  %v2233_v21 = vcombine.high %v2199_v46, %v2215_v11 }
 0x3ed   : > { %v2224_v20 = vrot.slane %v2216_v41, %v6432_v60  ;;  %v2231_v27 = vrot.slane %v2217_v59, %v6432_v60 }
 0x3ee   : > { %v2240_v37 = vrot.slane %v2232_v19, %v6432_v60  ;;  %v2247_v6 = vrot.slane %v2233_v21, %v6432_v60 }
 0x3ef   : > { %v2456_v5 = vcombine.low %v2224_v20, %v2231_v27  ;;  %v5080_v29 = vcombine.high %v2224_v20, %v2231_v27 }
 0x3f0   : > { %v2472_v51 = vcombine.low %v2240_v37, %v2247_v6  ;;  %v5081_v36 = vcombine.high %v2240_v37, %v2247_v6 }
 0x3f1   : > { %v2463_v32 = vrot.slane %v2456_v5, %v6428_v53  ;;  %v2471_v2 = vrot.slane %v5080_v29, %v6428_v53 }
 0x3f2   : > { %v2479_v12 = vrot.slane %v2472_v51, %v6428_v53  ;;  %v2487_v7 = vrot.slane %v5081_v36, %v6428_v53 }
 0x3f3   : > { %v2488_v9 = vcombine.low %v2463_v32, %v2471_v2  ;;  %v2489_v19 = vcombine.high %v2463_v32, %v2471_v2 }
 0x3f4   : > { %v2504_v43 = vcombine.low %v2479_v12, %v2487_v7  ;;  %v2505_v21 = vcombine.high %v2479_v12, %v2487_v7 }
 0x3f5   : > { %v2496_v38 = vrot.slane %v2488_v9, %v6432_v60  ;;  %v2503_v37 = vrot.slane %v2489_v19, %v6432_v60 }
 0x3f6   : > { %v2512_v34 = vrot.slane %v2504_v43, %v6432_v60  ;;  %v2519_v6 = vrot.slane %v2505_v21, %v6432_v60 }
 0x3f8   : > { %v2520_v17 = vcombine.low %v2496_v38, %v2512_v34  ;;  %v2521_v59 = vcombine.high %v2496_v38, %v2512_v34  ;;  %v2522_v5 = vcombine.low %v2503_v37, %v2519_v6 }
 0x449   : > { %v3393_v40 = vpop.xlane.xlu0 %3392 }
 0x44a   : > { %5593 = vrcp.f32 %v3393_v40 }
 0x44b   : > { %v3390_v13 = vpop.xlane.xlu1 %3389 }
 0x44c   : > { %5595 = vrcp.f32 %v3390_v13 }
 0x44f   : > { %v3399_v45 = vpop.xlane.xlu1 %3398 }
 0x450   : > { %5597 = vrcp.f32 %v3399_v45 }
 0x453   : > { %v3396_v8 = vpop.xlane.xlu1 %3395 }
 0x454   : > { %5599 = vrcp.f32 %v3396_v8 }
 0x455   : > { %v3405_v44 = vpop.xlane.xlu0 %3404 }
 0x456   : > { %5601 = vrcp.f32 %v3405_v44 }
 0x457   : > { %v5594_v54 = vpop.eup %5593 }
 0x458   : > { %v3453_v25 = vmul.f32 %v5594_v54, %v6931_v14 }
 0x459   : > { %v3402_v56 = vpop.xlane.xlu0 %3401  ;;  %v5596_v61 = vpop.eup %5595 }
 0x45a   : > { %5603 = vrcp.f32 %v3402_v56  ;;  %v3452_v48 = vmul.f32 %v5596_v61, %v6936_v52 }
 0x45b   : > { %v3408_v58 = vpop.xlane.xlu1 %3407 }
 0x45c   : > { %5353 = vmatprep.mubr.msk.f32.mxu1 %vm3291_vm2, %v3452_v48  ;;  %5605 = vrcp.f32 %v3408_v58 }
 0x45d   : > { %v3411_v26 = vpop.xlane.xlu0 %3410  ;;  %5354 = vmatmul.mubr.msk.f32.vlgmr.msra.gmra.mxu1 %vm3291_vm2, %v3453_v25  ;;  %v5598_v42 = vpop.eup %5597 }
 0x45e   : > { %5607 = vrcp.f32 %v3411_v26  ;;  %5357 = vmatpush3.msra.mxu1 %v7043_v3  ;;  %v3455_v63 = vmul.f32 %v5598_v42, %v6942_v15 }
 0x45f   : > { %5358 = vmatprep.subr.mxu1 %v2520_v17  ;;  %v3417_v62 = vpop.xlane.xlu1 %3416 }
 0x460   : > { %5359 = vmatpush3.msra.mxu1 %v2520_v17  ;;  %5609 = vrcp.f32 %v3417_v62 }
 0x461   : > { %v5600_v11 = vpop.eup %5599  ;;  %5370 = vmatprep.subr.mxu1 %v7045_v39 }
 0x462   : > { %v3414_v52 = vpop.xlane.xlu0 %3413  ;;  %v3454_v14 = vmul.f32 %v5600_v11, %v6947_v0 }
 0x463   : > { %5611 = vrcp.f32 %v3414_v52  ;;  %v5602_v41 = vpop.eup %5601 }
 0x464   : > { %v3420_v46 = vpop.xlane.xlu1 %3419  ;;  %5360 = vmatprep.mubr.msk.f32.mxu1 %vm3291_vm2, %v3454_v14  ;;  %v3457_v15 = vmul.f32 %v5602_v41, %v6951_v10 }
 0x465   : > { %5613 = vrcp.f32 %v3420_v46  ;;  %5361 = vmatmul.mubr.msk.f32.vlgmr.msra.gmra.mxu1 %vm3291_vm2, %v3455_v63 }
 0x466   : > { %v3423_v3 = vpop.xlane.xlu0 %3422  ;;  %5371 = vmatpush3.msra.mxu1 %v7045_v39 }
 0x467   : > { %v5604_v20 = vpop.eup %5603  ;;  %5615 = vrcp.f32 %v3423_v3  ;;  %5372 = vmatprep.subr.mxu1 %v2521_v59 }
 0x468   : > { %v3456_v0 = vmul.f32 %v5604_v20, %v6958_v33  ;;  %5373 = vmatpush3.msra.mxu1 %v2521_v59  ;;  %v3429_v13 = vpop.xlane.xlu1 %3428 }
 0x469   : > { %v5606_v27 = vpop.eup %5605  ;;  %5384 = vmatprep.subr.mxu1 %v7048_v22  ;;  %5617 = vrcp.f32 %v3429_v13 }
 0x46a   : > { %5367 = vmatprep.mubr.msk.f32.mxu0 %vm3291_vm2, %v3456_v0  ;;  %v3458_v39 = vmul.f32 %v5606_v27, %v6969_v35  ;;  %v3426_v10 = vpop.xlane.xlu0 %3425 }
 0x46b   : > { %v5608_v40 = vpop.eup %5607  ;;  %5368 = vmatmul.mubr.msk.f32.vlgmr.msra.gmra.mxu0 %vm3291_vm2, %v3457_v15  ;;  %5619 = vrcp.f32 %v3426_v10 }
 0x46c   : > { %5378 = vmatpush3.msra.mxu0 %v6820_v30  ;;  %v3459_v33 = vmul.f32 %v5608_v40, %v6963_v23  ;;  %5374 = vmatprep.mubr.msk.f32.mxu1 %vm3291_vm2, %v3458_v39 }
 0x46d   : > { %5379 = vmatprep.subr.mxu0 %v7054_v55  ;;  %v5610_v29 = vpop.eup %5609 }
 0x46e   : > { %5380 = vmatpush3.msra.mxu0 %v7054_v55  ;;  %5375 = vmatmul.mubr.msk.f32.vlgmr.msra.gmra.mxu1 %vm3291_vm2, %v3459_v33  ;;  %v3461_v35 = vmul.f32 %v5610_v29, %v6973_v49  ;;  %v2523_v49 = vcombine.high %v2503_v37, %v2519_v6 }
 0x46f   : > { %5385 = vmatpush3.msra.mxu1 %v7048_v22  ;;  %5391 = vmatprep.subr.mxu0 %v6822_v47 }
 0x470   : > { %v5612_v30 = vpop.eup %5611  ;;  %5386 = vmatprep.subr.mxu1 %v2522_v5  ;;  %v3432_v55 = vpop.xlane.xlu0 %3431 }
 0x471   : > { %5387 = vmatpush3.msra.mxu1 %v2522_v5  ;;  %v3460_v23 = vmul.f32 %v5612_v30, %v6986_v31  ;;  %5621 = vrcp.f32 %v3432_v55 }
 0x472   : > { %5398 = vmatprep.subr.mxu1 %v7052_v4  ;;  %v5614_v51 = vpop.eup %5613 }
 0x473   : > { %5381 = vmatprep.mubr.msk.f32.mxu0 %vm3291_vm2, %v3460_v23  ;;  %v3462_v22 = vmul.f32 %v5614_v51, %v6994_v50 }
 0x474   : > { %v5616_v36 = vpop.eup %5615  ;;  %5382 = vmatmul.mubr.msk.f32.vlgmr.msra.gmra.mxu0 %vm3291_vm2, %v3461_v35  ;;  %v3435_v31 = vpop.xlane.xlu0 %3434 }
 0x475   : > { %5392 = vmatpush3.msra.mxu0 %v6822_v47  ;;  %v3463_v45 = vmul.f32 %v5616_v36, %v6988_v18  ;;  %5388 = vmatprep.mubr.msk.f32.mxu1 %vm3291_vm2, %v3462_v22  ;;  %5623 = vrcp.f32 %v3435_v31 }
 0x476   : > { %5393 = vmatprep.subr.mxu0 %v7056_v24  ;;  %v5618_v50 = vpop.eup %5617 }
 0x477   : > { %5394 = vmatpush3.msra.mxu0 %v7056_v24  ;;  %5389 = vmatmul.mubr.msk.f32.vlgmr.msra.gmra.mxu1 %vm3291_vm2, %v3463_v45  ;;  %v3465_v18 = vmul.f32 %v5618_v50, %v7000_v1 }
 0x478   : > { %5399 = vmatpush3.msra.mxu1 %v7052_v4  ;;  %v5620_v32 = vpop.eup %5619 }
 0x479   : > { %5400 = vmatprep.subr.mxu1 %v2523_v49  ;;  %v3464_v47 = vmul.f32 %v5620_v32, %v7020_v16 }
 0x47a   : > { %5401 = vmatpush3.msra.mxu1 %v2523_v49 }
 0x47b   : > { %5395 = vmatprep.mubr.msk.f32.mxu0 %vm3291_vm2, %v3464_v47 }
 0x47c   : > { %5396 = vmatmul.mubr.msk.f32.vlgmr.msra.gmra.mxu0 %vm3291_vm2, %v3465_v18 }
 0x47e   : > { %v5622_v2 = vpop.eup %5621 }
 0x47f   : > { %v3466_v24 = vmul.f32 %v5622_v2, %v7022_v28 }
 0x481   : > { %5402 = vmatprep.mubr.msk.f32.mxu1 %vm3291_vm2, %v3466_v24 }
 0x482   : > { %v5624_v12 = vpop.eup %5623 }
 0x483   : > { %v3467_v4 = vmul.f32 %v5624_v12, %v7034_v57 }
 0x485   : > { %5403 = vmatmul.mubr.msk.f32.vlgmr.msra.gmra.mxu1 %vm3291_vm2, %v3467_v4 }
 0x51d   : > { %v5355_v7 = vpop.f32.mrf.mxu1 }
 0x51f   : > { %v3540_v8 = vpop.f32.mrf.mxu1 }
 0x525   : > { %v5362_v44 = vpop.f32.mrf.mxu1 }
 0x527   : > { %v3621_v9 = vpop.f32.mrf.mxu1 }
 0x52b   : > { %v5369_v16 = vpop.f32.mrf.mxu0 }
 0x52d   : > { %v3702_v1 = vpop.f32.mrf.mxu0 }
 0x52e   : > { %v5376_v43 = vpop.f32.mrf.mxu1 }
 0x530   : > { %v3783_v56 = vpop.f32.mrf.mxu1 }
 0x534   : > { %v5383_v54 = vpop.f32.mrf.mxu0 }
 0x535   : > { %v4184_v34 = vcombine.low %v5355_v7, %v5383_v54  ;;  %v4185_v28 = vcombine.high %v5355_v7, %v5383_v54 }
 0x536   : > { %v3864_v61 = vpop.f32.mrf.mxu0 }
 0x537   : > { %v5390_v38 = vpop.f32.mrf.mxu1  ;;  %v4116_v48 = vcombine.low %v3540_v8, %v3864_v61  ;;  %v4117_v58 = vcombine.high %v3540_v8, %v3864_v61  ;;  %v4192_v62 = vrot.slane %v4184_v34, %v6428_v53  ;;  %v4199_v42 = vrot.slane %v4185_v28, %v6428_v53 }
 0x538   : > { %v4320_v11 = vcombine.low %v5362_v44, %v5390_v38  ;;  %v4321_v52 = vcombine.high %v5362_v44, %v5390_v38 }
 0x539   : > { %v3945_v26 = vpop.f32.mrf.mxu1  ;;  %v4124_v59 = vrot.slane %v4116_v48, %v6428_v53  ;;  %v4131_v19 = vrot.slane %v4117_v58, %v6428_v53 }
 0x53a   : > { %v4252_v21 = vcombine.low %v3621_v9, %v3945_v26  ;;  %v4253_v20 = vcombine.high %v3621_v9, %v3945_v26  ;;  %v4328_v6 = vrot.slane %v4320_v11, %v6428_v53  ;;  %v4335_v40 = vrot.slane %v4321_v52, %v6428_v53 }
 0x53c   : > { %v5397_v25 = vpop.f32.mrf.mxu0  ;;  %v4260_v36 = vrot.slane %v4252_v21, %v6428_v53  ;;  %v4267_v22 = vrot.slane %v4253_v20, %v6428_v53 }
 0x53d   : > { %v4200_v57 = vcombine.low %v5369_v16, %v5397_v25  ;;  %v4201_v17 = vcombine.high %v5369_v16, %v5397_v25 }
 0x53e   : > { %v4026_v14 = vpop.f32.mrf.mxu0 }
 0x53f   : > { %v4208_v63 = vrot.slane %v4200_v57, %v6428_v53  ;;  %v4215_v46 = vrot.slane %v4201_v17, %v6428_v53  ;;  %v4132_v41 = vcombine.low %v3702_v1, %v4026_v14  ;;  %v4133_v3 = vcombine.high %v3702_v1, %v4026_v14 }
 0x541   : > { %v4216_v0 = vcombine.low %v4192_v62, %v4208_v63  ;;  %v4217_v15 = vcombine.high %v4192_v62, %v4208_v63  ;;  %v4232_v27 = vcombine.low %v4199_v42, %v4215_v46  ;;  %v4233_v37 = vcombine.high %v4199_v42, %v4215_v46 }
 0x542   : > { %v4140_v13 = vrot.slane %v4132_v41, %v6428_v53  ;;  %v4147_v39 = vrot.slane %v4133_v3, %v6428_v53 }
 0x543   : > { %v4224_v33 = vrot.slane %v4216_v0, %v6432_v60  ;;  %v4231_v10 = vrot.slane %v4217_v15, %v6432_v60  ;;  %v4240_v5 = vrot.slane %v4232_v27, %v6432_v60  ;;  %v4247_v29 = vrot.slane %v4233_v37, %v6432_v60 }
 0x544   : > { %v4148_v30 = vcombine.low %v4124_v59, %v4140_v13  ;;  %v4149_v23 = vcombine.high %v4124_v59, %v4140_v13  ;;  %v4164_v35 = vcombine.low %v4131_v19, %v4147_v39  ;;  %v4165_v51 = vcombine.high %v4131_v19, %v4147_v39  ;;  %v4724_v59 = vld [vmem:[#allocation14 + $0x18] sm:$0xff] }
 0x545   : > { %v5404_v55 = vpop.f32.mrf.mxu1  ;;  %v4456_v45 = vcombine.low %v4224_v33, %v4231_v10  ;;  %v5134_v31 = vcombine.high %v4224_v33, %v4231_v10  ;;  %v4472_v7 = vcombine.low %v4240_v5, %v4247_v29  ;;  %v5135_v8 = vcombine.high %v4240_v5, %v4247_v29  ;;  %5405 = vmatprep.subr.mxu0 %v4724_v59 }
 0x546   : > { %v4156_v49 = vrot.slane %v4148_v30, %v6432_v60  ;;  %v4163_v50 = vrot.slane %v4149_v23, %v6432_v60  ;;  %v4172_v32 = vrot.slane %v4164_v35, %v6432_v60  ;;  %v4179_v47 = vrot.slane %v4165_v51, %v6432_v60  ;;  %5406 = vmatpush3.msra.mxu0 %v4724_v59  ;;  %v4723_v23 = vld [vmem:[#allocation14 + $0x10] sm:$0xff]  ;;  %v4722_v35 = vld [vmem:[#allocation14 + $0x8] sm:$0xff] }
 0x547   : > { %v4107_v18 = vpop.f32.mrf.mxu1  ;;  %v4336_v2 = vcombine.low %v5376_v43, %v5404_v55  ;;  %v4337_v24 = vcombine.high %v5376_v43, %v5404_v55  ;;  %v4463_v28 = vrot.slane %v4456_v45, %v6428_v53  ;;  %v4471_v43 = vrot.slane %v5134_v31, %v6428_v53  ;;  %5407 = vmatprep.subr.mxu0 %v4723_v23 }
 0x548   : > { %v4268_v12 = vcombine.low %v3783_v56, %v4107_v18  ;;  %v4269_v4 = vcombine.high %v3783_v56, %v4107_v18  ;;  %v4388_v44 = vcombine.low %v4156_v49, %v4163_v50  ;;  %v5132_v16 = vcombine.high %v4156_v49, %v4163_v50  ;;  %5408 = vmatpush3.msra.mxu0 %v4723_v23 }
 0x549   : > { %v4344_v9 = vrot.slane %v4336_v2, %v6428_v53  ;;  %v4351_v1 = vrot.slane %v4337_v24, %v6428_v53  ;;  %v4404_v38 = vcombine.low %v4172_v32, %v4179_v47  ;;  %v5133_v34 = vcombine.high %v4172_v32, %v4179_v47  ;;  %5409 = vmatprep.subr.mxu0 %v4722_v35 }
 0x54a   : > { %v4276_v54 = vrot.slane %v4268_v12, %v6428_v53  ;;  %v4283_v61 = vrot.slane %v4269_v4, %v6428_v53  ;;  %v4479_v52 = vrot.slane %v4472_v7, %v6428_v53  ;;  %v4487_v14 = vrot.slane %v5135_v8, %v6428_v53  ;;  %5410 = vmatpush3.msra.mxu0 %v4722_v35  ;;  %v4721_v8 = vld [vmem:[#allocation14] sm:$0xff] }
 0x54b   : > { %v4352_v48 = vcombine.low %v4328_v6, %v4344_v9  ;;  %v4353_v56 = vcombine.high %v4328_v6, %v4344_v9  ;;  %v4368_v58 = vcombine.low %v4335_v40, %v4351_v1  ;;  %v4369_v25 = vcombine.high %v4335_v40, %v4351_v1  ;;  %5411 = vmatprep.subr.mxu0 %v4721_v8 }
 0x54c   : > { %v4284_v26 = vcombine.low %v4260_v36, %v4276_v54  ;;  %v4285_v57 = vcombine.high %v4260_v36, %v4276_v54  ;;  %v4300_v17 = vcombine.low %v4267_v22, %v4283_v61  ;;  %v4301_v62 = vcombine.high %v4267_v22, %v4283_v61  ;;  %5412 = vmatpush3.msra.mxu0 %v4721_v8 }
 0x54d   : > { %v7149_v42 = vrot.slane %v4352_v48, %v6432_v60  ;;  %v7152_v11 = vrot.slane %v4353_v56, %v6432_v60  ;;  %v4376_v19 = vrot.slane %v4368_v58, %v6432_v60  ;;  %v4383_v21 = vrot.slane %v4369_v25, %v6432_v60 }
 0x54e   : > { %v4292_v63 = vrot.slane %v4284_v26, %v6432_v60  ;;  %v4299_v46 = vrot.slane %v4285_v57, %v6432_v60  ;;  %v4308_v41 = vrot.slane %v4300_v17, %v6432_v60  ;;  %v4315_v3 = vrot.slane %v4301_v62, %v6432_v60 }
 0x54f   : > { %v4592_v20 = vcombine.low %v7149_v42, %v7152_v11  ;;  %v5138_v0 = vcombine.high %v7149_v42, %v7152_v11  ;;  %v4489_v40 = vcombine.high %v4463_v28, %v4471_v43  ;;  %v4505_v13 = vcombine.high %v4479_v52, %v4487_v14 }
 0x550   : > { %v4524_v15 = vcombine.low %v4292_v63, %v4299_v46  ;;  %v5136_v27 = vcombine.high %v4292_v63, %v4299_v46  ;;  %v4540_v37 = vcombine.low %v4308_v41, %v4315_v3  ;;  %v5137_v6 = vcombine.high %v4308_v41, %v4315_v3 }
 0x551   : > { %v4488_v39 = vcombine.low %v4463_v28, %v4471_v43  ;;  %v4504_v33 = vcombine.low %v4479_v52, %v4487_v14  ;;  %v4395_v10 = vrot.slane %v4388_v44, %v6428_v53  ;;  %v4403_v5 = vrot.slane %v5132_v16, %v6428_v53 }
 0x552   : > { %v4411_v29 = vrot.slane %v4404_v38, %v6428_v53  ;;  %v4419_v30 = vrot.slane %v5133_v34, %v6428_v53  ;;  %v4503_v51 = vrot.slane %v4489_v40, %v6432_v60  ;;  %v4519_v55 = vrot.slane %v4505_v13, %v6432_v60 }
 0x553   : > { %v7173_v36 = vrot.slane %v4488_v39, %v6432_v60  ;;  %v7176_v22 = vrot.slane %v4504_v33, %v6432_v60  ;;  %v4421_v45 = vcombine.high %v4395_v10, %v4403_v5  ;;  %v4420_v49 = vcombine.low %v4395_v10, %v4403_v5 }
 0x554   : > { %v4437_v31 = vcombine.high %v4411_v29, %v4419_v30  ;;  %v4436_v50 = vcombine.low %v4411_v29, %v4419_v30  ;;  %v4608_v32 = vcombine.low %v4376_v19, %v4383_v21  ;;  %v4522_v47 = vcombine.low %v4503_v51, %v4519_v55 }
 0x555   : > { %v4521_v18 = vcombine.high %v7173_v36, %v7176_v22  ;;  %v4531_v2 = vrot.slane %v4524_v15, %v6428_v53  ;;  %v5139_v24 = vcombine.high %v4376_v19, %v4383_v21  ;;  %v4523_v12 = vcombine.high %v4503_v51, %v4519_v55 }
 0x556   : > { %v4435_v4 = vrot.slane %v4421_v45, %v6432_v60  ;;  %v4451_v7 = vrot.slane %v4437_v31, %v6432_v60  ;;  %4682 = vrot.lane.b32.xlu1 %v4522_v47, %s5985_s29  ;;  %v4539_v44 = vrot.slane %v5136_v27, %v6428_v53  ;;  %v4547_v16 = vrot.slane %v4540_v37, %v6428_v53 }
 0x557   : > { %4666 = vrot.lane.b32.xlu0 %v4521_v18, %s5986_s12  ;;  %v4555_v9 = vrot.slane %v5137_v6, %v6428_v53  ;;  %v4428_v54 = vrot.slane %v4420_v49, %v6432_v60  ;;  %v4444_v61 = vrot.slane %v4436_v50, %v6432_v60  ;;  %v4599_v38 = vrot.slane %v4592_v20, %v6428_v53 }
 0x558   : > { %v4455_v1 = vcombine.high %v4435_v4, %v4451_v7  ;;  %v4556_v34 = vcombine.low %v4531_v2, %v4539_v44  ;;  %v4557_v43 = vcombine.high %v4531_v2, %v4539_v44  ;;  %v4607_v56 = vrot.slane %v5138_v0, %v6428_v53 }
 0x559   : > { %v4572_v28 = vcombine.low %v4547_v16, %v4555_v9  ;;  %v4573_v48 = vcombine.high %v4547_v16, %v4555_v9  ;;  %v4615_v58 = vrot.slane %v4608_v32, %v6428_v53  ;;  %v4623_v25 = vrot.slane %v5139_v24, %v6428_v53 }
 0x55a   : > { %v4520_v26 = vcombine.low %v7173_v36, %v7176_v22  ;;  %4698 = vrot.lane.b32.xlu1 %v4523_v12, %s5987_s21  ;;  %v4564_v57 = vrot.slane %v4556_v34, %v6432_v60  ;;  %v4453_v62 = vcombine.high %v4428_v54, %v4444_v61  ;;  %v4571_v42 = vrot.slane %v4557_v43, %v6432_v60 }
 0x55b   : > { %4696 = vrot.lane.b32.xlu0 %v4455_v1, %s5987_s21  ;;  %v4580_v17 = vrot.slane %v4572_v28, %v6432_v60  ;;  %v4624_v11 = vcombine.low %v4599_v38, %v4607_v56  ;;  %v4640_v52 = vcombine.low %v4615_v58, %v4623_v25  ;;  %v4587_v53 = vrot.slane %v4573_v48, %v6432_v60 }
 0x55c   : > { %v4452_v63 = vcombine.low %v4428_v54, %v4444_v61  ;;  %v4454_v19 = vcombine.low %v4435_v4, %v4451_v7  ;;  %v4625_v20 = vcombine.high %v4599_v38, %v4607_v56  ;;  %v4641_v0 = vcombine.high %v4615_v58, %v4623_v25  ;;  %v5140_v7 = vld [vmem:[#allocation16] ss:$0 sm:$0xff] }
 0x55d   : > { %v4589_v14 = vcombine.high %v4564_v57, %v4580_v17  ;;  %v4588_v46 = vcombine.low %v4564_v57, %v4580_v17  ;;  %v4632_v41 = vrot.slane %v4624_v11, %v6432_v60  ;;  %v4648_v3 = vrot.slane %v4640_v52, %v6432_v60 }
 0x55e   : > { %4664 = vrot.lane.b32.xlu1 %v4453_v62, %s5986_s12  ;;  %v4590_v21 = vcombine.low %v4571_v42, %v4587_v53  ;;  %v4591_v27 = vcombine.high %v4571_v42, %v4587_v53  ;;  %v4639_v37 = vrot.slane %v4625_v20, %v6432_v60  ;;  %v4655_v6 = vrot.slane %v4641_v0, %v6432_v60 }
 0x55f   : > { %4668 = vrot.lane.b32.xlu0 %v4589_v14, %s5986_s12  ;;  %v4656_v59 = vcombine.low %v4632_v41, %v4648_v3  ;;  %v4657_v15 = vcombine.high %v4632_v41, %v4648_v3 }
 0x560   : > { %v4658_v40 = vcombine.low %v4639_v37, %v4655_v6  ;;  %v4659_v13 = vcombine.high %v4639_v37, %v4655_v6 }
 0x562   : > { %4680 = vrot.lane.b32.xlu1 %v4454_v19, %s5985_s29 }
 0x563   : > { %4684 = vrot.lane.b32.xlu0 %v4590_v21, %s5985_s29 }
 0x566   : > { %4670 = vrot.lane.b32.xlu1 %v4657_v15, %s5986_s12 }
 0x567   : > { %4700 = vrot.lane.b32.xlu0 %v4591_v27, %s5987_s21 }
 0x56a   : > { %4686 = vrot.lane.b32.xlu1 %v4658_v40, %s5985_s29 }
 0x56e   : > { %4702 = vrot.lane.b32.xlu1 %v4659_v13, %s5987_s21 }
 0x5c8   : > { %v4683_v39 = vpop.permute.xlu1 %4682 }
 0x5c9   : > { %v4667_v33 = vpop.permute.xlu0 %4666 }
 0x5ca   : > { %v4709_v23 = vsel %vm2594_vm1, %v4520_v26, %v4667_v33 }
 0x5cb   : > { %v4713_v36 = vsel %vm3291_vm2, %v4709_v23, %v4683_v39 }
 0x5cc   : > { %v4699_v10 = vpop.permute.xlu1 %4698 }
 0x5cd   : > { %v4697_v5 = vpop.permute.xlu0 %4696  ;;  %v4718_v45 = vsel %vm4716_vm3, %v4713_v36, %v4699_v10 }
 0x5d0   : > { %v4665_v29 = vpop.permute.xlu1 %4664 }
 0x5d1   : > { %v4669_v30 = vpop.permute.xlu0 %4668  ;;  %v4708_v60 = vsel %vm2594_vm1, %v4452_v63, %v4665_v29 }
 0x5d2   : > { %v4710_v31 = vsel %vm2594_vm1, %v4588_v46, %v4669_v30 }
 0x5d4   : > { %v4681_v35 = vpop.permute.xlu1 %4680 }
 0x5d5   : > { %v4685_v51 = vpop.permute.xlu0 %4684  ;;  %v4712_v55 = vsel %vm3291_vm2, %v4708_v60, %v4681_v35 }
 0x5d6   : > { %v4717_v22 = vsel %vm4716_vm3, %v4712_v55, %v4697_v5  ;;  %v4714_v49 = vsel %vm3291_vm2, %v4710_v31, %v4685_v51 }
 0x5d7   : > { %5413 = vmatprep.mubr.msk.f32.mxu0 %vm546_vm0, %v4717_v22 }
 0x5d8   : > { %v4671_v50 = vpop.permute.xlu1 %4670  ;;  %5414 = vmatmul.mubr.msk.f32.vlgmr.msra.gmra.mxu0 %vm546_vm0, %v4718_v45 }
 0x5d9   : > { %v4701_v32 = vpop.permute.xlu0 %4700  ;;  %v4711_v2 = vsel %vm2594_vm1, %v4656_v59, %v4671_v50 }
 0x5da   : > { %v4719_v47 = vsel %vm4716_vm3, %v4714_v49, %v4701_v32 }
 0x5db   : > { %5416 = vmatprep.mubr.msk.f32.mxu0 %vm546_vm0, %v4719_v47 }
 0x5dc   : > { %v4687_v18 = vpop.permute.xlu1 %4686 }
 0x5dd   : > { %v4715_v24 = vsel %vm3291_vm2, %v4711_v2, %v4687_v18 }
 0x5e0   : > { %v4703_v12 = vpop.permute.xlu1 %4702 }
 0x5e1   : > { %v4720_v4 = vsel %vm4716_vm3, %v4715_v24, %v4703_v12 }
 0x5e2   : > { %5417 = vmatmul.mubr.msk.f32.gmra.mxu0 %vm546_vm0, %v4720_v4 }
 0x698   : > { %v5415_v8 = vpop.f32.mrf.mxu0 }
 0x699   : > { %v4816_v44 = vadd.f32 %v5415_v8, %v5140_v7 }
 0x69a   : > { %v4810_v16 = vpop.f32.mrf.mxu0 }
 0x69b   : > { %4830 = vst.msk [vmem:[%s528_s19 + $0x8] sm:$0xff] %vm546_vm0, %v4816_v44  ;;  %v4811_v9 = vadd.f32 %v5140_v7, %v4810_v16 }
 0x69d   : > { %4829 = vst.msk [vmem:[%s528_s19] sm:$0xff] %vm546_vm0, %v4811_v9 }
 0x6a2   : > { %v5418_v1 = vpop.f32.mrf.mxu0 }
 0x6a3   : > { %v4826_v54 = vadd.f32 %v5418_v1, %v5140_v7 }
 0x6a4   : > { %v4820_v61 = vpop.f32.mrf.mxu0 }
 0x6a5   : > { %4832 = vst.msk [vmem:[%s528_s19 + $0x18] sm:$0xff] %vm546_vm0, %v4826_v54  ;;  %v4821_v38 = vadd.f32 %v5140_v7, %v4820_v61 }
 0x6a7   : > { %4831 = vst.msk [vmem:[%s528_s19 + $0x10] sm:$0xff] %vm546_vm0, %v4821_v38 }
 0x6a8   : > { %5880 = shalt.err (!%p5877_p12)
}
 0x6a9   : > { %s5881_s25 = scalar_lea.hbm %s7241_s1, 512  ;;  %s5885_s19 = scalar_lea.hbm %s7353_s10, 1024 }
 0x6aa   : > { %p5882_p13 = scmp.ne.s32.totalorder %s7241_s1, %s5881_s25  ;;  %p5886_p9 = scmp.lt.s32.totalorder %s7241_s1, %s7353_s10 }
 0x6ab   : > { %p5887_p0 = scmp.lt.s32.totalorder %s5885_s19, %s5881_s25 }
 0x6ac   : > { %p5883_p5 = pnand %p5882_p13, %p6268_p1 }
 0x6ad   : > { %p5888_p3 = por %p5887_p0, %p5886_p9 }
 0x6ae   : > { %p5884_p7 = pneg %p5883_p5 }
 0x6b0   : > { %p5889_p4 = pnand %p5888_p3, %p5884_p7 }
 0x6b2   : > { %5892 = shalt.err (!%p5889_p4)
}
 0x6b3   : > { %s5989_s22 = smov 128  }
 0x6b4   : > { %5447 = dma.vmem_to_hbm [thread:$0]  (%p6268_p1), %s7234_s28, 512, %s7241_s1, %s4834_s20, %s5989_s22, %s5989_s22, %s5986_s12  }
 0x6b5 PF: > { %s7354_s23 = sld [smem:[#allocation25_spill]]  ;;  %p7357_p6 = scmp.ge.s32.totalorder %s5967_s18, 2 }
 0x6b6   : > { %s7355_s30 = sld [smem:[#allocation28_spill]] }
 0x6bb   : > { %s4865_s11 = sand.u32 1, %s7354_s23  }
 0x6bc   : > { %p7356_p11 = scmp.ne.s32.totalorder %s7355_s30, 0  ;;  %s4866_s25 = scalar_lea.sflag [#allocation4], %s4865_s11 }
 0x6be   : > { %p5479_p2 = pnand %p7357_p6, %p7356_p11 }
 0x6c0   : > { %p5480_p8 = pneg %p5479_p2 }
 0x6c2   : > { %5942 = dma.done.wait (%p5480_p8), %s4866_s25, 512  }
 0x6c3   : > { %5944 = vsyncadd (%p5480_p8), %s4866_s25, 4294966784  ;;  %s30_s18 = sadd.s32 1, %s5967_s18   ;;  %s7358_s13 = smov %s5951_s14 }
 0x6c4   : > { %p27_p10 = scmp.ge.s32.totalorder %s30_s18, 4   ;;  %s7359_s14 = smov %s5955_s15 }
 0x6c5   : > { %s7360_s15 = smov %s6277_s27  ;;  %s7361_s16 = smov %s5963_s17 }
 0x6c6   : > { %s7362_s17 = smov %s7364_s0  ;;  %29 = sbr.rel (!%p27_p10) target bundleno = 15 (0xf), region = 140 }
 0x6cb   :  { %4871 = vsyncpa [#allocation3], 1 }
 0x6cc   :  { %4873 = vsyncpa [#allocation3 + $0x1], 1 }
 0x6cd   :  { %4874 = vsyncpa [#allocation6], 1 }
 0x6ce   :  { %4875 = vsyncpa [#allocation9], 1 }
 0x6cf   :  { %4876 = vsyncpa [#allocation12], 1 }
 0x6d0   :  { %4877 = vsyncpa [#allocation15], 1 }
 0x6d1   :  { %4878 = vsyncpa [#allocation4], 1 }
 0x6d2   :  { %4880 = vsyncpa [#allocation4 + $0x1], 1 }

// kernel: tpu_custom_call.1
= control target key start
LH: loop header
LB: loop body
LE: loop exit
PB: predicated region body
PF: predicated region fallthrough
CT: control target
= control target key end

     0   :  { %s7360_s0 = inlined_call_operand.hbm [shape: f32[2,2,16,32], index: 0, kind: input, shape index: {}]   ;;  %s7361_s1 = inlined_call_operand.hbm [shape: f32[2,32,32], index: 1, kind: input, shape index: {}]   ;;  %s7362_s2 = inlined_call_operand.hbm [shape: f32[2,32,32], index: 2, kind: input, shape index: {}]   ;;  %s7363_s3 = inlined_call_operand.hbm [shape: f32[2,32,32], index: 3, kind: input, shape index: {}]   ;;  %s7364_s4 = inlined_call_operand.hbm [shape: f32[1,32], index: 4, kind: input, shape index: {}]   ;;  %s7365_s5 = inlined_call_operand.hbm [shape: f32[1,32], index: 5, kind: input, shape index: {}]   ;;  %s7366_s6 = inlined_call_operand.hbm [shape: f32[1,32], index: 6, kind: input, shape index: {}]   ;;  %s7367_s7 = inlined_call_operand.hbm [shape: f32[32,32], index: 7, kind: input, shape index: {}]   ;;  %s7368_s8 = inlined_call_operand.hbm [shape: f32[1,32], index: 8, kind: input, shape index: {}]   ;;  %s7369_s9 = inlined_call_operand.vmem [shape: f32[16,16], index: 9, kind: input, shape index: {}]   ;;  %s7370_s10 = inlined_call_operand.hbm [shape: f32[2,2,16,32], index: 10, kind: output, shape index: {}]  }
   0x1   :  { %7389 = sst [smem:[#allocation31_spill]] %s7361_s1 }
   0x2   :  { %7390 = sst [smem:[#allocation32_spill]] %s7364_s4 }
   0x3   :  { %7391 = sst [smem:[#allocation33_spill]] %s7365_s5 }
   0x4   :  { %7392 = sst [smem:[#allocation34_spill]] %s7366_s6 }
   0x5   :  { %7393 = sst [smem:[#allocation35_spill]] %s7367_s7 }
   0x6   :  { %7394 = sst [smem:[#allocation36_spill]] %s7370_s10 }
   0x7   :  { %15 = vsyncpa [#allocation3], 0 }
   0x8   :  { %17 = vsyncpa [#allocation3 + $0x1], 0 }
   0x9   :  { %18 = vsyncpa [#allocation6], 0 }
   0xa   :  { %20 = vsyncpa [#allocation6 + $0x1], 0 }
   0xb   :  { %21 = vsyncpa [#allocation9], 0 }
   0xc   :  { %23 = vsyncpa [#allocation9 + $0x1], 0 }
   0xd   :  { %24 = vsyncpa [#allocation12], 0 }
   0xe   :  { %25 = vsyncpa [#allocation15], 0 }
   0xf   :  { %26 = vsyncpa [#allocation4], 0 }
  0x10   :  { %28 = vsyncpa [#allocation4 + $0x1], 0  ;;  %s6128_s13 = smov 0   ;;  %s6130_s14 = smov 0  }
  0x11   :  { %s6132_s15 = smov 0   ;;  %s6134_s16 = smov 0  }
  0x12   :  { %s6136_s17 = smov 0   ;;  %s6138_s18 = smov 0  }
  0x13 LB: > { %7395 = sst [smem:[#allocation25_spill]] %s6030_s13  ;;  %s6159_s19 = sadd.s32 4294967295, %s6050_s18   ;;  %s6050_s18 = sphi %s6138_s18, %s34_s18   ;;  %s6046_s17 = sphi %s6136_s17, %s7438_s17   ;;  %s6042_s16 = sphi %s6134_s16, %s7437_s16   ;;  %s6038_s15 = sphi %s6132_s15, %s7441_s15   ;;  %s6034_s14 = sphi %s6130_s14, %s7440_s14   ;;  %s6030_s13 = sphi %s6128_s13, %s7439_s13  }
  0x14   : > { %7396 = sst [smem:[#allocation26_spill]] %s6046_s17  ;;  %s5100_s20 = sadd.s32 4294967294, %s6050_s18  }
  0x15   : > { %p68_p0 = scmp.ne.s32.totalorder %s6034_s14, %s6030_s13  ;;  %p7371_p1 = scmp.eq.s32.totalorder %s6159_s19, 0 }
  0x16   : > { %p304_p3 = scmp.eq.s32.totalorder %s5100_s20, 1  ;;  %p5101_p5 = scmp.ge.s32.totalorder %s6050_s18, 1 }
  0x17   : > { %p6168_p4 = por %p7371_p1, %p68_p0  ;;  %p311_p7 = scmp.lt.s32.totalorder %s6050_s18, 3 }
  0x18   : > { %p6173_p6 = por %p304_p3, %p68_p0  ;;  %s6052_s24 = smov [#allocation10]  }
  0x19   : > { %s7397_s21 = scalar_select %p6168_p4, 1, 0 }
  0x1a   : > { %s7398_s22 = scalar_select %p6173_p6, 1, 0 }
  0x1b   : > { %p6178_p8 = pnand %p5101_p5, %p311_p7  ;;  %s324_s25 = sshll.u32 %s6052_s24, 4  ;;  %s325_s25 = int_to_ptr.vmem [resolvable:$true] %s324_s25 }
  0x1c   : > { %7399 = sst [smem:[#allocation27_spill]] %s7398_s22  ;;  %s6053_s26 = smov [#allocation11]  }
  0x1d   : > { %s7400_s23 = scalar_select %p6178_p8, 1, 0 }
  0x1e   : > { %p5535_p10 = pneg %p6178_p8  ;;  %s335_s27 = sshll.u32 %s6053_s26, 4  ;;  %s336_s27 = int_to_ptr.vmem [resolvable:$true] %s335_s27 }
  0x1f   : > { %s6054_s29 = smov [#allocation14]   ;;  %s5719_s12 = scalar_lea.vmem %s325_s25, 16 }
  0x20   : > { %p6187_p11 = pnand %p5535_p10, %p7371_p1  ;;  %s356_s30 = sshll.u32 %s6054_s29, 4  ;;  %s6191_s30 = int_to_ptr.vmem [resolvable:$true] %s356_s30 }
  0x21   : > { %p5720_p13 = scmp.ne.s32.totalorder %s325_s25, %s5719_s12  ;;  %s5726_s20 = scalar_lea.vmem %s325_s25, 32 }
  0x22   : > { %p6195_p12 = pneg %p6187_p11  ;;  %p5727_p5 = scmp.lt.s32.totalorder %s325_s25, %s325_s25 }
  0x23   : > { %p5728_p7 = scmp.lt.s32.totalorder %s5726_s20, %s5719_s12 }
  0x24   : > { %p5722_p0 = pnand %p5720_p13, %p6195_p12 }
  0x25   : > { %p5729_p10 = por %p5728_p7, %p5727_p5 }
  0x26   : > { %p5723_p3 = pneg %p5722_p0 }
  0x28   : > { %p5730_p9 = pnand %p5729_p10, %p5723_p3 }
  0x2a   : > { %5733 = shalt.err (!%p5730_p9)
}
  0x2b   : > { %s7403_s4 = sld [smem:[#allocation32_spill]]  ;;  %s5745_s29 = scalar_lea.vmem %s336_s27, 16 }
  0x2c   : > { %p5746_p1 = scmp.ne.s32.totalorder %s336_s27, %s5745_s29  ;;  %s5752_s22 = scalar_lea.vmem %s336_s27, 32 }
  0x2d   : > { %p5753_p13 = scmp.lt.s32.totalorder %s336_s27, %s336_s27  ;;  %p5754_p0 = scmp.lt.s32.totalorder %s5752_s22, %s5745_s29 }
  0x2e   : > { %p5748_p2 = pnand %p5746_p1, %p6195_p12 }
  0x2f   : > { %p5755_p4 = por %p5754_p0, %p5753_p13 }
  0x30   : > { %p5749_p6 = pneg %p5748_p2 }
  0x31   : > { %5538 = dma.hbm_to_vmem [thread:$0]  (!%p6187_p11), %s7403_s4, 16, %s325_s25, [#allocation9]  }
  0x32   : > { %p5756_p8 = pnand %p5755_p4, %p5749_p6 }
  0x34   : > { %5759 = shalt.err (!%p5756_p8)
}
  0x35   : > { %s7404_s5 = sld [smem:[#allocation33_spill]]  ;;  %s5771_s25 = scalar_lea.vmem %s6191_s30, 512 }
  0x36   : > { %p5772_p9 = scmp.ne.s32.totalorder %s6191_s30, %s5771_s25  ;;  %p5779_p3 = scmp.lt.s32.totalorder %s6191_s30, %s6191_s30 }
  0x37   : > { %p5780_p5 = scmp.lt.s32.totalorder %s5771_s25, %s5771_s25 }
  0x38   : > { %p5774_p1 = pnand %p5772_p9, %p6195_p12 }
  0x39   : > { %p5781_p4 = por %p5780_p5, %p5779_p3 }
  0x3a   : > { %p5775_p2 = pneg %p5774_p1 }
  0x3b   : > { %5541 = dma.hbm_to_vmem [thread:$0]  (!%p6187_p11), %s7404_s5, 16, %s336_s27, [#allocation12]  }
  0x3c   : > { %p5782_p6 = pnand %p5781_p4, %p5775_p2 }
  0x3e   : > { %5785 = shalt.err (!%p5782_p6)
}
  0x3f   : > { %s7375_s22 = smov 128   ;;  %s7377_s27 = smov 8  }
  0x40   : > { %s7405_s7 = sld [smem:[#allocation35_spill]]  ;;  %s55_s29 = sadd.s32 1, %s6038_s15 }
  0x41   : > { %s46_s12 = sadd.s32 1, %s6046_s17  ;;  %p62_p8 = scmp.ne.s32.totalorder %s6038_s15, %s6034_s14 }
  0x42   : > { %p48_p7 = scmp.ge.s32.totalorder %s46_s12, 2  ;;  %p63_p10 = scmp.eq.s32.totalorder %s6050_s18, 0 }
  0x43   : > { %p7406_p13 = scmp.eq.s32.totalorder %s6159_s19, 1  ;;  %p5573_p9 = scmp.lt.s32.totalorder %s6050_s18, 2 }
  0x44   : > { %s7443_s12 = smov (%p48_p7, %s46_s12), 0  ;;  %p64_p1 = por %p63_p10, %p62_p8 }
  0x45   : > { %p6235_p0 = por %p7406_p13, %p62_p8  ;;  %7409 = sst [smem:[#allocation29_spill]] %s7443_s12 }
  0x46   : > { %5547 = dma.hbm_to_vmem [thread:$0]  (!%p6187_p11), %s7405_s7, 512, %s6191_s30, [#allocation15], %s7375_s22, %s7375_s22, %s7377_s27  }
  0x47   : > { %s7407_s20 = scalar_select %p6235_p0, 1, 0 }
  0x48   : > { %s7380_s25 = sand.u32 1, %s6038_s15   ;;  %s50_s30 = ssub.s32 %s6046_s17, %s7443_s12 }
  0x49   : > { %7408 = sst [smem:[#allocation28_spill]] %s7407_s20  ;;  %s6247_s24 = sshll.u32 %s7380_s25, 5 }
  0x4a   : > { %p53_p2 = scmp.eq.s32.totalorder %s50_s30, 0  ;;  %s6250_s26 = sshll.u32 %s6046_s17, 9 }
  0x4b   : > { %p6252_p3 = pnand %p5573_p9, %p64_p1  ;;  %s7384_s27 = sand.u32 1, %s6050_s18  }
  0x4c   : > { %s6258_s4 = scalar_select %p53_p2, %s6038_s15, %s55_s29  }
  0x4d   : > { %s7412_s1 = sld [smem:[#allocation31_spill]]  ;;  %s412_s25 = scalar_lea.vmem [#allocation5], %s6247_s24 }
  0x4e   : > { %7411 = sst [smem:[#allocation30_spill]] %s6258_s4  ;;  %s419_s13 = sshll.u32 %s412_s25, 4  ;;  %s420_s13 = int_to_ptr.vmem [resolvable:$true] %s419_s13 }
  0x4f   : > { %s6267_s30 = scalar_lea.sflag [#allocation6], %s7384_s27  ;;  %p7387_p5 = pneg %p6252_p3 }
  0x50   : > { %s5799_s17 = scalar_lea.vmem %s420_s13, 512  ;;  %s6057_s29 = smov [#allocation5]  }
  0x51   : > { %p5800_p4 = scmp.ne.s32.totalorder %s420_s13, %s5799_s17  ;;  %s5804_s4 = sshll.u32 %s6057_s29, 4  ;;  %s5805_s4 = int_to_ptr.vmem [resolvable:$false] %s5804_s4 }
  0x52   : > { %s5806_s10 = scalar_lea.vmem %s5805_s4, 1024  ;;  %p5807_p7 = scmp.lt.s32.totalorder %s420_s13, %s5805_s4 }
  0x53   : > { %s418_s12 = scalar_lea.hbm %s7412_s1, %s6250_s26  ;;  %p5802_p6 = pnand %p5800_p4, %p7387_p5 }
  0x54   : > { %p5808_p10 = scmp.lt.s32.totalorder %s5806_s10, %s5799_s17 }
  0x55   : > { %p5803_p8 = pneg %p5802_p6 }
  0x56   : > { %p5809_p13 = por %p5808_p10, %p5807_p7 }
  0x58   : > { %p5810_p9 = pnand %p5809_p13, %p5803_p8 }
  0x5a   : > { %5813 = shalt.err (!%p5810_p9)
}
  0x5b   : > { %s7413_s5 = smov 8   ;;  %s7414_s7 = smov 128  }
  0x5c   : > { %5557 = dma.hbm_to_vmem [thread:$0]  (!%p6252_p3), %s418_s12, 512, %s420_s13, %s6267_s30, %s7414_s7, %s7414_s7, %s7413_s5  }
  0x5d   : > { %s6058_s25 = smov [#allocation13]   ;;  %s6059_s1 = smov [#allocation16]  }
  0x5e   : > { %s346_s27 = sshll.u32 %s6058_s25, 4  ;;  %s370_s29 = sshll.u32 %s6059_s1, 4  ;;  %s347_s27 = int_to_ptr.vmem [resolvable:$true] %s346_s27  ;;  %s371_s29 = int_to_ptr.vmem [resolvable:$true] %s370_s29 }
  0x5f   : > { %s5825_s20 = scalar_lea.vmem %s347_s27, 16  ;;  %s5832_s4 = scalar_lea.vmem %s347_s27, 32 }
  0x60   : > { %p5826_p1 = scmp.ne.s32.totalorder %s347_s27, %s5825_s20  ;;  %p5833_p6 = scmp.lt.s32.totalorder %s347_s27, %s347_s27 }
  0x61   : > { %p5834_p8 = scmp.lt.s32.totalorder %s5832_s4, %s5825_s20 }
  0x62   : > { %p5828_p2 = pnand %p5826_p1, %p6195_p12 }
  0x63   : > { %p5835_p7 = por %p5834_p8, %p5833_p6 }
  0x64   : > { %p5829_p4 = pneg %p5828_p2 }
  0x66   : > { %p5836_p10 = pnand %p5835_p7, %p5829_p4 }
  0x68   : > { %5839 = shalt.err (!%p5836_p10)
}
  0x69   : > { %s7415_s6 = sld [smem:[#allocation34_spill]]  ;;  %s5851_s1 = scalar_lea.vmem %s371_s29, 16 }
  0x6a   : > { %p5852_p13 = scmp.ne.s32.totalorder %s371_s29, %s5851_s1  ;;  %s5858_s17 = scalar_lea.vmem %s371_s29, 32 }
  0x6b   : > { %p5859_p2 = scmp.lt.s32.totalorder %s371_s29, %s371_s29  ;;  %p5860_p5 = scmp.lt.s32.totalorder %s5858_s17, %s5851_s1 }
  0x6c   : > { %p5854_p9 = pnand %p5852_p13, %p6195_p12 }
  0x6d   : > { %p5861_p0 = por %p5860_p5, %p5859_p2 }
  0x6e   : > { %p5855_p1 = pneg %p5854_p9 }
  0x6f   : > { %5544 = dma.hbm_to_vmem [thread:$0]  (!%p6187_p11), %s7415_s6, 16, %s347_s27, [#allocation12]  }
  0x70   : > { %p5862_p6 = pnand %p5861_p0, %p5855_p1 }
  0x72   : > { %5865 = shalt.err (!%p5862_p6)
}
  0x73   : > { %5550 = dma.hbm_to_vmem [thread:$0]  (!%p6187_p11), %s7368_s8, 16, %s371_s29, [#allocation15]  }
  0x74   : > { %s397_s25 = scalar_lea.hbm %s7360_s0, %s6250_s26  ;;  %s388_s4 = scalar_lea.vmem [#allocation2], %s6247_s24 }
  0x75   : > { %s398_s10 = sshll.u32 %s388_s4, 4  ;;  %s439_s28 = scalar_lea.hbm %s7362_s2, %s6250_s26  ;;  %s399_s10 = int_to_ptr.vmem [resolvable:$true] %s398_s10 }
  0x76   : > { %s7416_s17 = sand.u32 1, %s6038_s15   ;;  %s5879_s12 = scalar_lea.vmem %s399_s10, 512 }
  0x77   : > { %s385_s6 = scalar_lea.sflag [#allocation3], %s7416_s17  ;;  %p5880_p12 = scmp.ne.s32.totalorder %s399_s10, %s5879_s12 }
  0x78   : > { %p7417_p0 = pneg %p6252_p3  ;;  %s6060_s29 = smov [#allocation2]  }
  0x79   : > { %s5884_s20 = sshll.u32 %s6060_s29, 4  ;;  %s5885_s20 = int_to_ptr.vmem [resolvable:$false] %s5884_s20 }
  0x7a   : > { %p5882_p5 = pnand %p5880_p12, %p7417_p0  ;;  %s5886_s11 = scalar_lea.vmem %s5885_s20, 1024 }
  0x7b   : > { %p5887_p11 = scmp.lt.s32.totalorder %s399_s10, %s5885_s20  ;;  %p5888_p8 = scmp.lt.s32.totalorder %s5886_s11, %s5879_s12 }
  0x7c   : > { %p5883_p4 = pneg %p5882_p5 }
  0x7d   : > { %p5889_p7 = por %p5888_p8, %p5887_p11 }
  0x7f   : > { %p5890_p10 = pnand %p5889_p7, %p5883_p4 }
  0x81   : > { %5893 = shalt.err (!%p5890_p10)
}
  0x82   : > { %5554 = dma.hbm_to_vmem [thread:$0]  (!%p6252_p3), %s397_s25, 512, %s399_s10, %s385_s6, %s7414_s7, %s7414_s7, %s7413_s5  }
  0x83   : > { %s433_s27 = scalar_lea.vmem [#allocation7], %s6247_s24  ;;  %s460_s17 = scalar_lea.hbm %s7363_s3, %s6250_s26 }
  0x84   : > { %s440_s4 = sshll.u32 %s433_s27, 4  ;;  %p7418_p9 = pmov %p7417_p0  ;;  %s441_s4 = int_to_ptr.vmem [resolvable:$true] %s440_s4 }
  0x85   : > { %s5907_s12 = scalar_lea.vmem %s441_s4, 512  ;;  %s6061_s29 = smov [#allocation7]  }
  0x86   : > { %p5908_p13 = scmp.ne.s32.totalorder %s441_s4, %s5907_s12  ;;  %s5912_s20 = sshll.u32 %s6061_s29, 4  ;;  %s5913_s20 = int_to_ptr.vmem [resolvable:$false] %s5912_s20 }
  0x87   : > { %s5914_s11 = scalar_lea.vmem %s5913_s20, 1024  ;;  %p5915_p6 = scmp.lt.s32.totalorder %s441_s4, %s5913_s20 }
  0x88   : > { %p5910_p1 = pnand %p5908_p13, %p7418_p9  ;;  %p5916_p12 = scmp.lt.s32.totalorder %s5914_s11, %s5907_s12 }
  0x8a   : > { %p5911_p2 = pneg %p5910_p1  ;;  %p5917_p0 = por %p5916_p12, %p5915_p6 }
  0x8c   : > { %p5918_p5 = pnand %p5917_p0, %p5911_p2 }
  0x8e   : > { %5921 = shalt.err (!%p5918_p5)
}
  0x8f   : > { %5560 = dma.hbm_to_vmem [thread:$0]  (!%p6252_p3), %s439_s28, 512, %s441_s4, %s6267_s30, %s7414_s7, %s7414_s7, %s7413_s5  }
  0x90   : > { %s454_s10 = scalar_lea.vmem [#allocation8], %s6247_s24  ;;  %s7419_s13 = sand.u32 1, %s6050_s18  }
  0x91   : > { %s461_s27 = sshll.u32 %s454_s10, 4  ;;  %s451_s1 = scalar_lea.sflag [#allocation9], %s7419_s13  ;;  %s462_s27 = int_to_ptr.vmem [resolvable:$true] %s461_s27 }
  0x92   : > { %s5935_s12 = scalar_lea.vmem %s462_s27, 512  ;;  %p7420_p11 = pmov %p7418_p9 }
  0x93   : > { %p5936_p4 = scmp.ne.s32.totalorder %s462_s27, %s5935_s12  ;;  %s6062_s29 = smov [#allocation8]  }
  0x94   : > { %s5940_s20 = sshll.u32 %s6062_s29, 4  ;;  %s5941_s20 = int_to_ptr.vmem [resolvable:$false] %s5940_s20 }
  0x95   : > { %p5938_p8 = pnand %p5936_p4, %p7420_p11  ;;  %s5942_s11 = scalar_lea.vmem %s5941_s20, 1024 }
  0x96   : > { %p5943_p10 = scmp.lt.s32.totalorder %s462_s27, %s5941_s20  ;;  %p5944_p13 = scmp.lt.s32.totalorder %s5942_s11, %s5935_s12 }
  0x97   : > { %p5939_p7 = pneg %p5938_p8 }
  0x98   : > { %p5945_p9 = por %p5944_p13, %p5943_p10 }
  0x9a   : > { %p5946_p1 = pnand %p5945_p9, %p5939_p7 }
  0x9c   : > { %5949 = shalt.err (!%p5946_p1)
}
  0x9d   : > { %5563 = dma.hbm_to_vmem [thread:$0]  (!%p6252_p3), %s460_s17, 512, %s462_s27, %s451_s1, %s7414_s7, %s7414_s7, %s7413_s5  }
  0x9e   : > { %p7421_p2 = scmp.ne.s32.totalorder %s7400_s23, 0 }
  0x9f   : > { %s6351_s28 = sand.u32 (!%p7421_p2), 1, %s6034_s14   ;;  %p7422_p6 = scmp.ne.s32.totalorder (!%p7421_p2), %s7397_s21, 0 }
  0xa0   : > { %473 = sbr.rel (%p7421_p2) target bundleno = 1678 (0x68e), region = 60  ;;  %s6354_s4 = sshll.u32 (!%p7421_p2), %s6351_s28, 5 }
  0xa1   : > { %s476_s22 = scalar_lea.sflag (!%p7421_p2), [#allocation3], %s6351_s28  ;;  %s6358_s6 = scalar_lea.vmem (!%p7421_p2), [#allocation2], %s6354_s4 }
  0xa5   : > { %6001 = dma.done.wait (%p7422_p6), %s476_s22, 512  }
  0xa6   : > { %6003 = vsyncadd (%p7422_p6), %s476_s22, 4294966784  ;;  %s484_s23 = sand.u32 1, %s6159_s19   ;;  %s488_s5 = scalar_lea.vmem [#allocation5], %s6354_s4 }
  0xa7   : > { %s485_s26 = scalar_lea.sflag [#allocation6], %s484_s23 }
  0xa8   : > { %6005 = dma.done.wait (%p7422_p6), %s485_s26, 1024  }
  0xa9   : > { %6007 = vsyncadd (%p7422_p6), %s485_s26, 4294966272  ;;  %s6371_s7 = scalar_lea.vmem [#allocation7], %s6354_s4  ;;  %s503_s17 = scalar_lea.sflag [#allocation9], %s484_s23 }
  0xaa   : > { %s6374_s25 = scalar_lea.vmem [#allocation8], %s6354_s4 }
  0xab   : > { %6009 = dma.done.wait (%p7422_p6), %s503_s17, 512  }
  0xac   : > { %6011 = vsyncadd (%p7422_p6), %s503_s17, 4294966784  ;;  %p7423_p3 = scmp.eq.s32.totalorder %s6159_s19, 0 }
  0xae   : > { %6013 = dma.done.wait (%p7423_p3), [#allocation9], 16   ;;  %p7424_p12 = pmov %p7423_p3 }
  0xaf   : > { %p7425_p0 = pmov %p7423_p3 }
  0xb0   : > { %6015 = vsyncadd (%p7424_p12), [#allocation9], 4294967280 }
  0xb1   : > { %6017 = dma.done.wait (%p7425_p0), [#allocation12], 32   ;;  %p7426_p5 = pmov %p7425_p0 }
  0xb2   : > { %p7427_p4 = pmov %p7425_p0 }
  0xb3   : > { %6019 = vsyncadd (%p7426_p5), [#allocation12], 4294967264 }
  0xb4   : > { %6021 = dma.done.wait (%p7427_p4), [#allocation15], 528   ;;  %p7428_p11 = pmov %p7425_p0 }
  0xb5   : > { %vm595_vm0 = vcmask 261120   ;;  %v587_v0 = vld [vmem:[%s488_s5 + $0x18] sm:$0xff]  ;;  %v586_v1 = vld [vmem:[%s488_s5 + $0x10] sm:$0xff]  ;;  %v580_v2 = vld [vmem:[%s6358_s6] sm:$0xff]  ;;  %s6063_s19 = smov 112   ;;  %s6064_s21 = smov 120   ;;  %v934_v45 = vlaneseq }
  0xb6   : > { %6023 = vsyncadd (%p7428_p11), [#allocation15], 4294966768  ;;  %5337 = vmatprep.subr.mxu1 %v587_v0  ;;  %v585_v3 = vld [vmem:[%s488_s5 + $0x8] sm:$0xff]  ;;  %5345 = vmatprep.mubr.msk.f32.mxu1 %vm595_vm0, %v580_v2  ;;  %v584_v4 = vld [vmem:[%s488_s5] sm:$0xff]  ;;  %s6065_s10 = smov 104   ;;  %vm2643_vm1 = vcmask 64512  }
  0xb7   : > { %5338 = vmatpush3.msra.mxu1 %v587_v0  ;;  %5373 = vmatprep.mubr.msk.f32.mxu0 %vm595_vm0, %v580_v2  ;;  %v581_v5 = vld [vmem:[%s6358_s6 + $0x8] sm:$0xff]  ;;  %v700_v6 = vld [vmem:[%s6371_s7 + $0x18] sm:$0xff]  ;;  %v582_v7 = vld [vmem:[%s6358_s6 + $0x10] sm:$0xff]  ;;  %v6066_v43 = vmov 1983009808   ;;  %v935_v49 = vshrl.u32 %v934_v45, 7 }
  0xb8   : > { %5339 = vmatprep.subr.mxu1 %v586_v1  ;;  %v699_v8 = vld [vmem:[%s6371_s7 + $0x10] sm:$0xff]  ;;  %v583_v9 = vld [vmem:[%s6358_s6 + $0x18] sm:$0xff]  ;;  %v698_v10 = vld [vmem:[%s6371_s7 + $0x8] sm:$0xff]  ;;  %v932_v44 = vunpack.c.l.s4 %v6066_v43  ;;  %v6067_v46 = vmov 1934713408   ;;  %vm3340_vm2 = vcmask 130048  }
  0xb9   : > { %5340 = vmatpush3.msra.mxu1 %v586_v1  ;;  %v697_v11 = vld [vmem:[%s6371_s7] sm:$0xff]  ;;  %v796_v12 = vld [vmem:[%s6374_s25 + $0x18] sm:$0xff]  ;;  %v795_v13 = vld [vmem:[%s6374_s25 + $0x10] sm:$0xff]  ;;  %v964_v47 = vunpack.c.l.s4 %v6067_v46  ;;  %s6068_s29 = smov 16   ;;  %s6069_s20 = smov 8   ;;  %vm4765_vm3 = vcmask 195584  }
  0xba   : > { %5341 = vmatprep.subr.mxu1 %v585_v3  ;;  %5365 = vmatprep.subr.mxu0 %v796_v12  ;;  %v794_v14 = vld [vmem:[%s6374_s25 + $0x8] sm:$0xff]  ;;  %v793_v15 = vld [vmem:[%s6374_s25] sm:$0xff]  ;;  %v933_v48 = vunpack.c.0.s8 %v932_v44  ;;  %s6070_s11 = smov 24   ;;  %s577_s24 = scalar_lea.vmem [#allocation17], %s6354_s4 }
  0xbb   : > { %5342 = vmatpush3.msra.mxu1 %v585_v3  ;;  %5366 = vmatpush3.msra.mxu0 %v796_v12  ;;  %v5131_v16 = vld [vmem:[#allocation10] ss:$0 sm:$0xff]  ;;  %v5136_v24 = vld [vmem:[#allocation11] ss:$0 sm:$0xff]  ;;  %v6480_v39 = vld [vmem:[#allocation13] ss:$0 sm:$0xff]  ;;  %v965_v52 = vunpack.c.0.s8 %v964_v47 }
  0xbc   : > { %5343 = vmatprep.subr.mxu1 %v584_v4  ;;  %5367 = vmatprep.subr.mxu0 %v795_v13  ;;  %v6498_v53 = vsub.s32 %v933_v48, %v935_v49  ;;  %s7429_s30 = sld [smem:[#allocation28_spill]]  ;;  %s4899_s22 = sshll.u32 %s577_s24, 4  ;;  %s7304_s22 = int_to_ptr.vmem [resolvable:$true] %s4899_s22 }
  0xbd   : > { %5344 = vmatpush3.msra.mxu1 %v584_v4  ;;  %5368 = vmatpush3.msra.mxu0 %v795_v13  ;;  %v6502_v60 = vsub.s32 %v965_v52, %v935_v49  ;;  %s5240_s6 = sshll.u32 %s6042_s16, 9  ;;  %s7430_s26 = sld [smem:[#allocation36_spill]] }
  0xbe   : > { %5346 = vmatmul.mubr.msk.f32.vlgmr.msra.gmra.mxu1 %vm595_vm0, %v581_v5  ;;  %5351 = vmatprep.subr.mxu1 %v700_v6  ;;  %s4883_s7 = scalar_lea.sflag [#allocation4], %s6351_s28  ;;  %s5950_s17 = scalar_lea.vmem %s7304_s22, 512 }
  0xbf   : > { %5352 = vmatpush3.msra.mxu1 %v700_v6  ;;  %5348 = vmatprep.mubr.msk.f32.mxu1 %vm595_vm0, %v582_v7  ;;  %p5951_p8 = scmp.ne.s32.totalorder %s7304_s22, %s5950_s17  ;;  %s6071_s16 = smov [#allocation17]  }
  0xc0   : > { %5353 = vmatprep.subr.mxu1 %v699_v8  ;;  %5369 = vmatprep.subr.mxu0 %v794_v14  ;;  %s5954_s25 = sshll.u32 %s6071_s16, 4  ;;  %s5955_s25 = int_to_ptr.vmem [resolvable:$false] %s5954_s25 }
  0xc1   : > { %5354 = vmatpush3.msra.mxu1 %v699_v8  ;;  %5370 = vmatpush3.msra.mxu0 %v794_v14  ;;  %p5957_p9 = scmp.lt.s32.totalorder %s7304_s22, %s5955_s25 }
  0xc2   : > { %5349 = vmatmul.mubr.msk.f32.gmra.mxu1 %vm595_vm0, %v583_v9  ;;  %5355 = vmatprep.subr.mxu1 %v698_v10  ;;  %p7431_p7 = scmp.ne.s32.totalorder %s7429_s30, 0 }
  0xc3   : > { %5356 = vmatpush3.msra.mxu1 %v698_v10  ;;  %5359 = vmatprep.mubr.msk.f32.mxu1 %vm595_vm0, %v580_v2  ;;  %s7310_s5 = scalar_lea.hbm %s7430_s26, %s5240_s6 }
  0xc4   : > { %5357 = vmatprep.subr.mxu1 %v697_v11  ;;  %5371 = vmatprep.subr.mxu0 %v793_v15  ;;  %p5952_p10 = pnand %p5951_p8, %p7431_p7 }
  0xc5   : > { %5358 = vmatpush3.msra.mxu1 %v697_v11  ;;  %5372 = vmatpush3.msra.mxu0 %v793_v15 }
  0xc6   : > { %5360 = vmatmul.mubr.msk.f32.vlgmr.msra.gmra.mxu1 %vm595_vm0, %v581_v5  ;;  %5374 = vmatmul.mubr.msk.f32.vlgmr.msra.gmra.mxu0 %vm595_vm0, %v581_v5  ;;  %p5953_p13 = pneg %p5952_p10 }
  0xc7   : > { %5362 = vmatprep.mubr.msk.f32.mxu1 %vm595_vm0, %v582_v7  ;;  %5376 = vmatprep.mubr.msk.f32.mxu0 %vm595_vm0, %v582_v7 }
  0xca   : > { %5363 = vmatmul.mubr.msk.f32.gmra.mxu1 %vm595_vm0, %v583_v9  ;;  %5377 = vmatmul.mubr.msk.f32.gmra.mxu0 %vm595_vm0, %v583_v9 }
 0x17e   : > { %v5347_v17 = vpop.f32.mrf.mxu1 }
 0x17f   : > { %v680_v18 = vadd.f32 %v5347_v17, %v5131_v16 }
 0x180   : > { %v674_v19 = vpop.f32.mrf.mxu1 }
 0x181   : > { %v6416_v20 = vmul.f32 0.35355338, %v680_v18  ;;  %v675_v21 = vadd.f32 %v5131_v16, %v674_v19 }
 0x182   : > { %v5350_v22 = vpop.f32.mrf.mxu1 }
 0x183   : > { %907 = vrot.lane.b32.xlu0 %v6416_v20, %s6063_s19  ;;  %895 = vrot.lane.b32.xlu1 %v6416_v20, %s6064_s21  ;;  %v6422_v25 = vmul.f32 0.35355338, %v675_v21  ;;  %v690_v36 = vadd.f32 %v5350_v22, %v5131_v16 }
 0x184   : > { %v684_v23 = vpop.f32.mrf.mxu1 }
 0x185   : > { %v685_v28 = vadd.f32 %v5131_v16, %v684_v23  ;;  %v6470_v37 = vmul.f32 0.35355338, %v690_v36 }
 0x186   : > { %v5361_v26 = vpop.f32.mrf.mxu1  ;;  %v5375_v38 = vpop.f32.mrf.mxu0 }
 0x187   : > { %v6424_v27 = vadd.f32 %v5361_v26, %v5136_v24  ;;  %919 = vrot.lane.b32.xlu1 %v6416_v20, %s6065_s10  ;;  %905 = vrot.lane.b32.xlu0 %v6422_v25, %s6063_s19  ;;  %v6438_v30 = vmul.f32 0.35355338, %v685_v28  ;;  %v6483_v40 = vadd.f32 %v5375_v38, %v6480_v39 }
 0x188   : > { %v774_v29 = vpop.f32.mrf.mxu1  ;;  %v870_v41 = vpop.f32.mrf.mxu0 }
 0x189   : > { %v6450_v33 = vadd.f32 %v5136_v24, %v774_v29  ;;  %v6490_v42 = vadd.f32 %v6480_v39, %v870_v41 }
 0x18a   : > { %v5364_v31 = vpop.f32.mrf.mxu1 }
 0x18b   : > { %1479 = vrot.lane.b32.xlu0 %v6424_v27, %s6064_s21  ;;  %893 = vrot.lane.b32.xlu1 %v6422_v25, %s6064_s21  ;;  %v6440_v32 = vadd.f32 %v5364_v31, %v5136_v24 }
 0x18c   : > { %v784_v34 = vpop.f32.mrf.mxu1 }
 0x18d   : > { %v6460_v35 = vadd.f32 %v5136_v24, %v784_v34 }
 0x18f   : > { %1491 = vrot.lane.b32.xlu0 %v6424_v27, %s6063_s19  ;;  %917 = vrot.lane.b32.xlu1 %v6422_v25, %s6065_s10 }
 0x193   : > { %897 = vrot.lane.b32.xlu0 %v6438_v30, %s6064_s21  ;;  %1503 = vrot.lane.b32.xlu1 %v6424_v27, %s6065_s10 }
 0x197   : > { %1483 = vrot.lane.b32.xlu0 %v6440_v32, %s6064_s21  ;;  %909 = vrot.lane.b32.xlu1 %v6438_v30, %s6063_s19 }
 0x19b   : > { %1495 = vrot.lane.b32.xlu0 %v6440_v32, %s6063_s19  ;;  %1477 = vrot.lane.b32.xlu1 %v6450_v33, %s6064_s21 }
 0x19f   : > { %1507 = vrot.lane.b32.xlu0 %v6440_v32, %s6065_s10  ;;  %1489 = vrot.lane.b32.xlu1 %v6450_v33, %s6063_s19 }
 0x1a3   : > { %1481 = vrot.lane.b32.xlu0 %v6460_v35, %s6064_s21  ;;  %1501 = vrot.lane.b32.xlu1 %v6450_v33, %s6065_s10 }
 0x1a7   : > { %1505 = vrot.lane.b32.xlu0 %v6460_v35, %s6065_s10  ;;  %1493 = vrot.lane.b32.xlu1 %v6460_v35, %s6063_s19 }
 0x1ab   : > { %921 = vrot.lane.b32.xlu0 %v6438_v30, %s6065_s10  ;;  %899 = vrot.lane.b32.xlu1 %v6470_v37, %s6064_s21 }
 0x1af   : > { %911 = vrot.lane.b32.xlu0 %v6470_v37, %s6063_s19  ;;  %923 = vrot.lane.b32.xlu1 %v6470_v37, %s6065_s10 }
 0x1b3   : > { %2063 = vrot.lane.b32.xlu1 %v6483_v40, %s6064_s21  ;;  %2075 = vrot.lane.b32.xlu0 %v6483_v40, %s6063_s19 }
 0x1b7   : > { %2087 = vrot.lane.b32.xlu1 %v6483_v40, %s6065_s10  ;;  %2061 = vrot.lane.b32.xlu0 %v6490_v42, %s6064_s21 }
 0x1bb   : > { %2073 = vrot.lane.b32.xlu1 %v6490_v42, %s6063_s19 }
 0x1f5   : > { %v908_v50 = vpop.permute.xlu0 %907  ;;  %v896_v51 = vpop.permute.xlu1 %895 }
 0x1f6   : > { %v997_v54 = vcombine.low %v6416_v20, %v908_v50  ;;  %v998_v55 = vcombine.high %v6416_v20, %v908_v50 }
 0x1f8   : > { %v1005_v61 = vrot.slane %v997_v54, %v6498_v53  ;;  %v1012_v62 = vrot.slane %v998_v55, %v6498_v53 }
 0x1f9   : > { %v920_v56 = vpop.permute.xlu1 %919  ;;  %v906_v57 = vpop.permute.xlu0 %905 }
 0x1fa   : > { %v1013_v58 = vcombine.low %v896_v51, %v920_v56  ;;  %v1014_v59 = vcombine.high %v896_v51, %v920_v56  ;;  %v929_v11 = vcombine.low %v6422_v25, %v906_v57  ;;  %v930_v12 = vcombine.high %v6422_v25, %v906_v57 }
 0x1fc   : > { %v1021_v63 = vrot.slane %v1013_v58, %v6498_v53  ;;  %v1028_v0 = vrot.slane %v1014_v59, %v6498_v53  ;;  %v937_v28 = vrot.slane %v929_v11, %v6498_v53  ;;  %v944_v29 = vrot.slane %v930_v12, %v6498_v53 }
 0x1fd   : > { %v1480_v1 = vpop.permute.xlu0 %1479  ;;  %v894_v2 = vpop.permute.xlu1 %893 }
 0x1fe   : > { %v1029_v3 = vcombine.low %v1005_v61, %v1021_v63  ;;  %v1030_v4 = vcombine.high %v1005_v61, %v1021_v63  ;;  %v1045_v5 = vcombine.low %v1012_v62, %v1028_v0  ;;  %v1046_v6 = vcombine.high %v1012_v62, %v1028_v0 }
 0x200   : > { %v1037_v7 = vrot.slane %v1029_v3, %v6502_v60  ;;  %v1044_v8 = vrot.slane %v1030_v4, %v6502_v60  ;;  %v1053_v9 = vrot.slane %v1045_v5, %v6502_v60  ;;  %v1060_v10 = vrot.slane %v1046_v6, %v6502_v60 }
 0x201   : > { %v1492_v13 = vpop.permute.xlu0 %1491  ;;  %v918_v14 = vpop.permute.xlu1 %917 }
 0x202   : > { %v1269_v15 = vcombine.low %v1037_v7, %v1044_v8  ;;  %v5148_v16 = vcombine.high %v1037_v7, %v1044_v8  ;;  %v1285_v17 = vcombine.low %v1053_v9, %v1060_v10  ;;  %v5149_v18 = vcombine.high %v1053_v9, %v1060_v10 }
 0x203   : > { %v1581_v19 = vcombine.low %v6424_v27, %v1492_v13  ;;  %v1582_v20 = vcombine.high %v6424_v27, %v1492_v13  ;;  %v945_v21 = vcombine.low %v894_v2, %v918_v14  ;;  %v946_v22 = vcombine.high %v894_v2, %v918_v14 }
 0x204   : > { %v6517_v23 = vrot.slane %v1269_v15, %v6498_v53  ;;  %v6520_v24 = vrot.slane %v5148_v16, %v6498_v53  ;;  %v6523_v25 = vrot.slane %v1285_v17, %v6498_v53  ;;  %v6526_v26 = vrot.slane %v5149_v18, %v6498_v53 }
 0x205   : > { %v953_v27 = vrot.slane %v945_v21, %v6498_v53  ;;  %v960_v31 = vrot.slane %v946_v22, %v6498_v53  ;;  %v6532_v34 = vpop.permute.xlu0 %897  ;;  %v1504_v36 = vpop.permute.xlu1 %1503  ;;  %v1589_v41 = vrot.slane %v1581_v19, %v6498_v53  ;;  %v1596_v48 = vrot.slane %v1582_v20, %v6498_v53 }
 0x206   : > { %v1301_v38 = vcombine.low %v6517_v23, %v6520_v24  ;;  %v1317_v47 = vcombine.low %v6523_v25, %v6526_v26  ;;  %v1597_v49 = vcombine.low %v1480_v1, %v1504_v36  ;;  %v1598_v50 = vcombine.high %v1480_v1, %v1504_v36 }
 0x207   : > { %v961_v43 = vcombine.low %v937_v28, %v953_v27  ;;  %v962_v44 = vcombine.high %v937_v28, %v953_v27  ;;  %v977_v45 = vcombine.low %v944_v29, %v960_v31  ;;  %v978_v46 = vcombine.high %v944_v29, %v960_v31 }
 0x208   : > { %v6547_v58 = vrot.slane %v1301_v38, %v6502_v60  ;;  %v1605_v59 = vrot.slane %v1597_v49, %v6498_v53  ;;  %v1612_v61 = vrot.slane %v1598_v50, %v6498_v53  ;;  %v6570_v17 = vrot.slane %v1317_v47, %v6502_v60 }
 0x209   : > { %v969_v51 = vrot.slane %v961_v43, %v6502_v60  ;;  %v976_v52 = vrot.slane %v962_v44, %v6502_v60  ;;  %v985_v54 = vrot.slane %v977_v45, %v6502_v60  ;;  %v992_v55 = vrot.slane %v978_v46, %v6502_v60  ;;  %v1484_v56 = vpop.permute.xlu0 %1483  ;;  %v6544_v57 = vpop.permute.xlu1 %909 }
 0x20a   : > { %v1065_v62 = vcombine.low %v6438_v30, %v6544_v57  ;;  %v1613_v3 = vcombine.low %v1589_v41, %v1605_v59  ;;  %v1614_v4 = vcombine.high %v1589_v41, %v1605_v59  ;;  %v1629_v5 = vcombine.low %v1596_v48, %v1612_v61 }
 0x20b   : > { %v1201_v63 = vcombine.low %v969_v51, %v976_v52  ;;  %v5146_v0 = vcombine.high %v969_v51, %v976_v52  ;;  %v1217_v1 = vcombine.low %v985_v54, %v992_v55  ;;  %v5147_v2 = vcombine.high %v985_v54, %v992_v55 }
 0x20c   : > { %v1630_v6 = vcombine.high %v1596_v48, %v1612_v61  ;;  %v1621_v13 = vrot.slane %v1613_v3, %v6502_v60  ;;  %v1628_v14 = vrot.slane %v1614_v4, %v6502_v60  ;;  %v1637_v15 = vrot.slane %v1629_v5, %v6502_v60 }
 0x20d   : > { %v6554_v7 = vrot.slane %v1201_v63, %v6498_v53  ;;  %v6557_v8 = vrot.slane %v5146_v0, %v6498_v53  ;;  %v6560_v9 = vrot.slane %v1217_v1, %v6498_v53  ;;  %v6563_v10 = vrot.slane %v5147_v2, %v6498_v53  ;;  %v1496_v11 = vpop.permute.xlu0 %1495  ;;  %v1478_v12 = vpop.permute.xlu1 %1477 }
 0x20e   : > { %v1644_v16 = vrot.slane %v1630_v6, %v6502_v60  ;;  %v1066_v18 = vcombine.high %v6438_v30, %v6544_v57  ;;  %v6575_v19 = vrot.slane %v1065_v62, %v6498_v53  ;;  %v1717_v20 = vcombine.low %v6440_v32, %v1496_v11 }
 0x20f   : > { %v1853_v21 = vcombine.low %v1621_v13, %v1628_v14  ;;  %v5156_v22 = vcombine.high %v1621_v13, %v1628_v14  ;;  %v1718_v27 = vcombine.high %v6440_v32, %v1496_v11  ;;  %v1233_v41 = vcombine.low %v6554_v7, %v6557_v8 }
 0x210   : > { %v1869_v28 = vcombine.low %v1637_v15, %v1644_v16  ;;  %v5157_v29 = vcombine.high %v1637_v15, %v1644_v16  ;;  %v1725_v31 = vrot.slane %v1717_v20, %v6498_v53  ;;  %v1249_v30 = vcombine.low %v6560_v9, %v6563_v10 }
 0x211   : > { %v1508_v36 = vpop.permute.xlu0 %1507  ;;  %v1490_v38 = vpop.permute.xlu1 %1489  ;;  %v6585_v43 = vrot.slane %v1853_v21, %v6498_v53  ;;  %v6588_v44 = vrot.slane %v5156_v22, %v6498_v53  ;;  %v6599_v50 = vrot.slane %v1233_v41, %v6502_v60  ;;  %v1732_v55 = vrot.slane %v1718_v27, %v6498_v53 }
 0x212   : > { %v6591_v45 = vrot.slane %v1869_v28, %v6498_v53  ;;  %v6594_v32 = vrot.slane %v5157_v29, %v6498_v53  ;;  %v1733_v46 = vcombine.low %v1484_v56, %v1508_v36  ;;  %v1734_v47 = vcombine.high %v1484_v56, %v1508_v36 }
 0x213   : > { %v1513_v48 = vcombine.low %v6450_v33, %v1490_v38  ;;  %v1514_v49 = vcombine.high %v6450_v33, %v1490_v38  ;;  %v6602_v51 = vrot.slane %v1249_v30, %v6502_v60  ;;  %v1885_v52 = vcombine.low %v6585_v43, %v6588_v44 }
 0x214   : > { %v1901_v54 = vcombine.low %v6591_v45, %v6594_v32  ;;  %v1741_v56 = vrot.slane %v1733_v46, %v6498_v53  ;;  %v1748_v57 = vrot.slane %v1734_v47, %v6498_v53 }
 0x215   : > { %v1521_v33 = vrot.slane %v1513_v48, %v6498_v53  ;;  %v1482_v59 = vpop.permute.xlu0 %1481  ;;  %v1502_v61 = vpop.permute.xlu1 %1501  ;;  %v1528_v62 = vrot.slane %v1514_v49, %v6498_v53  ;;  %v1265_v63 = vcombine.low %v6599_v50, %v6602_v51  ;;  %v6619_v13 = vrot.slane %v1885_v52, %v6502_v60 }
 0x216   : > { %v1529_v0 = vcombine.low %v1478_v12, %v1502_v61  ;;  %v1530_v1 = vcombine.high %v1478_v12, %v1502_v61  ;;  %v1749_v2 = vcombine.low %v1725_v31, %v1741_v56  ;;  %v1750_v3 = vcombine.high %v1725_v31, %v1741_v56 }
 0x217   : > { %v1765_v4 = vcombine.low %v1732_v55, %v1748_v57  ;;  %v1766_v5 = vcombine.high %v1732_v55, %v1748_v57  ;;  %5383 = vmatprep.mubr.msk.f32.mxu1 %vm2643_vm1, %v1265_v63  ;;  %v6622_v14 = vrot.slane %v1901_v54, %v6502_v60  ;;  %v1080_v52 = vrot.slane %v1066_v18, %v6498_v53 }
 0x218   : > { %v1537_v6 = vrot.slane %v1529_v0, %v6498_v53  ;;  %v1544_v11 = vrot.slane %v1530_v1, %v6498_v53  ;;  %v1757_v15 = vrot.slane %v1749_v2, %v6502_v60  ;;  %v1764_v12 = vrot.slane %v1750_v3, %v6502_v60 }
 0x219   : > { %v1773_v16 = vrot.slane %v1765_v4, %v6502_v60  ;;  %v1780_v20 = vrot.slane %v1766_v5, %v6502_v60  ;;  %v1506_v21 = vpop.permute.xlu0 %1505  ;;  %v1494_v22 = vpop.permute.xlu1 %1493  ;;  %v1917_v1 = vcombine.low %v6619_v13, %v6622_v14 }
 0x21a   : > { %v1545_v28 = vcombine.low %v1521_v33, %v1537_v6  ;;  %v1546_v29 = vcombine.high %v1521_v33, %v1537_v6  ;;  %v1561_v27 = vcombine.low %v1528_v62, %v1544_v11  ;;  %v1562_v31 = vcombine.high %v1528_v62, %v1544_v11 }
 0x21b   : > { %v1989_v36 = vcombine.low %v1757_v15, %v1764_v12  ;;  %v5160_v38 = vcombine.high %v1757_v15, %v1764_v12  ;;  %v2005_v41 = vcombine.low %v1773_v16, %v1780_v20  ;;  %v5161_v30 = vcombine.high %v1773_v16, %v1780_v20  ;;  %5379 = vmatprep.subr.msk.mxu1 %vm2643_vm1, %v1917_v1 }
 0x21c   : > { %v1553_v46 = vrot.slane %v1545_v28, %v6502_v60  ;;  %v1560_v47 = vrot.slane %v1546_v29, %v6502_v60  ;;  %v1569_v48 = vrot.slane %v1561_v27, %v6502_v60  ;;  %v1576_v49 = vrot.slane %v1562_v31, %v6502_v60  ;;  %5380 = vmatpush3.xpose.msk.msra.mxu1 %vm2643_vm1, %v1917_v1 }
 0x21d   : > { %v6634_v54 = vrot.slane %v1989_v36, %v6498_v53  ;;  %v6637_v55 = vrot.slane %v5160_v38, %v6498_v53  ;;  %v6640_v56 = vrot.slane %v2005_v41, %v6498_v53  ;;  %v922_v57 = vpop.permute.xlu0 %921  ;;  %v6642_v33 = vpop.permute.xlu1 %899  ;;  %v1665_v18 = vcombine.low %v1482_v59, %v1506_v21 }
 0x21e   : > { %v1785_v61 = vcombine.low %v1553_v46, %v1560_v47  ;;  %v5154_v62 = vcombine.high %v1553_v46, %v1560_v47  ;;  %v1801_v63 = vcombine.low %v1569_v48, %v1576_v49  ;;  %v5155_v0 = vcombine.high %v1569_v48, %v1576_v49 }
 0x21f   : > { %v1666_v2 = vcombine.high %v1482_v59, %v1506_v21  ;;  %v1649_v3 = vcombine.low %v6460_v35, %v1494_v22  ;;  %v6648_v4 = vrot.slane %v5161_v30, %v6498_v53  ;;  %v1673_v15 = vrot.slane %v1665_v18, %v6498_v53 }
 0x220   : > { %v6651_v5 = vrot.slane %v1785_v61, %v6498_v53  ;;  %v6654_v6 = vrot.slane %v5154_v62, %v6498_v53  ;;  %v6657_v11 = vrot.slane %v1801_v63, %v6498_v53  ;;  %v1650_v12 = vcombine.high %v6460_v35, %v1494_v22 }
 0x221   : > { %v1680_v59 = vrot.slane %v1666_v2, %v6498_v53  ;;  %v1657_v16 = vrot.slane %v1649_v3, %v6498_v53  ;;  %v912_v20 = vpop.permute.xlu0 %911  ;;  %v924_v21 = vpop.permute.xlu1 %923  ;;  %v6665_v28 = vrot.slane %v5155_v0, %v6498_v53  ;;  %v1081_v29 = vcombine.low %v6532_v34, %v922_v57 }
 0x222   : > { %v1082_v27 = vcombine.high %v6532_v34, %v922_v57  ;;  %v1133_v31 = vcombine.low %v6470_v37, %v912_v20  ;;  %v1664_v36 = vrot.slane %v1650_v12, %v6498_v53  ;;  %v1134_v35 = vcombine.high %v6470_v37, %v912_v20 }
 0x223   : > { %v1681_v38 = vcombine.low %v1657_v16, %v1673_v15  ;;  %v1682_v41 = vcombine.high %v1657_v16, %v1673_v15  ;;  %v1089_v22 = vrot.slane %v1081_v29, %v6498_v53  ;;  %v1149_v47 = vcombine.low %v6642_v33, %v924_v21 }
 0x224   : > { %v1096_v30 = vrot.slane %v1082_v27, %v6498_v53  ;;  %v1141_v46 = vrot.slane %v1133_v31, %v6498_v53  ;;  %v1697_v49 = vcombine.low %v1664_v36, %v1680_v59  ;;  %v1698_v57 = vcombine.high %v1664_v36, %v1680_v59 }
 0x225   : > { %v1689_v48 = vrot.slane %v1681_v38, %v6502_v60  ;;  %v1696_v34 = vrot.slane %v1682_v41, %v6502_v60  ;;  %v1097_v61 = vcombine.low %v6575_v19, %v1089_v22  ;;  %v1098_v62 = vcombine.high %v6575_v19, %v1089_v22 }
 0x226   : > { %v1113_v63 = vcombine.low %v1080_v52, %v1096_v30  ;;  %v1114_v37 = vcombine.high %v1080_v52, %v1096_v30  ;;  %v1705_v0 = vrot.slane %v1697_v49, %v6502_v60  ;;  %v1712_v1 = vrot.slane %v1698_v57, %v6502_v60 }
 0x227   : > { %v1921_v18 = vcombine.low %v1689_v48, %v1696_v34  ;;  %v5158_v2 = vcombine.high %v1689_v48, %v1696_v34  ;;  %v1105_v3 = vrot.slane %v1097_v61, %v6502_v60  ;;  %v1112_v15 = vrot.slane %v1098_v62, %v6502_v60 }
 0x228   : > { %v1121_v12 = vrot.slane %v1113_v63, %v6502_v60  ;;  %v1128_v59 = vrot.slane %v1114_v37, %v6502_v60  ;;  %v1937_v19 = vcombine.low %v1705_v0, %v1712_v1  ;;  %v5159_v20 = vcombine.high %v1705_v0, %v1712_v1 }
 0x229   : > { %v6688_v16 = vrot.slane %v1921_v18, %v6498_v53  ;;  %v1148_v52 = vrot.slane %v1134_v35, %v6498_v53  ;;  %v1337_v29 = vcombine.low %v1105_v3, %v1112_v15  ;;  %v5150_v27 = vcombine.high %v1105_v3, %v1112_v15 }
 0x22a   : > { %v1353_v31 = vcombine.low %v1121_v12, %v1128_v59  ;;  %v5151_v36 = vcombine.high %v1121_v12, %v1128_v59  ;;  %v6692_v38 = vrot.slane %v5158_v2, %v6498_v53  ;;  %v6695_v41 = vrot.slane %v1937_v19, %v6498_v53 }
 0x22b   : > { %v1150_v22 = vcombine.high %v6642_v33, %v924_v21  ;;  %v1157_v30 = vrot.slane %v1149_v47, %v6498_v53  ;;  %v6700_v48 = vrot.slane %v5159_v20, %v6498_v53  ;;  %v6703_v34 = vrot.slane %v1337_v29, %v6498_v53 }
 0x22c   : > { %v6706_v35 = vrot.slane %v5150_v27, %v6498_v53  ;;  %v6709_v49 = vrot.slane %v1353_v31, %v6498_v53  ;;  %v2021_v33 = vcombine.low %v6634_v54, %v6637_v55  ;;  %v6715_v21 = vrot.slane %v5151_v36, %v6498_v53 }
 0x22d   : > { %v1164_v57 = vrot.slane %v1150_v22, %v6498_v53  ;;  %v1165_v61 = vcombine.low %v1141_v46, %v1157_v30  ;;  %v1166_v62 = vcombine.high %v1141_v46, %v1157_v30  ;;  %v2037_v47 = vcombine.low %v6640_v56, %v6648_v4 }
 0x22e   : > { %v1817_v63 = vcombine.low %v6651_v5, %v6654_v6  ;;  %v1833_v37 = vcombine.low %v6657_v11, %v6665_v28  ;;  %v2029_v2 = vrot.slane %v2021_v33, %v6502_v60  ;;  %v1953_v36 = vcombine.low %v6688_v16, %v6692_v38 }
 0x22f   : > { %v1173_v0 = vrot.slane %v1165_v61, %v6502_v60  ;;  %v1180_v1 = vrot.slane %v1166_v62, %v6502_v60  ;;  %v1181_v46 = vcombine.low %v1148_v52, %v1164_v57  ;;  %v1182_v18 = vcombine.high %v1148_v52, %v1164_v57 }
 0x230   : > { %v2045_v3 = vrot.slane %v2037_v47, %v6502_v60  ;;  %v1825_v15 = vrot.slane %v1817_v63, %v6502_v60  ;;  %v1841_v12 = vrot.slane %v1833_v37, %v6502_v60  ;;  %v1969_v52 = vcombine.low %v6695_v41, %v6700_v48 }
 0x231   : > { %v1189_v59 = vrot.slane %v1181_v46, %v6502_v60  ;;  %v1196_v19 = vrot.slane %v1182_v18, %v6502_v60  ;;  %v1405_v20 = vcombine.low %v1173_v0, %v1180_v1  ;;  %v5152_v29 = vcombine.high %v1173_v0, %v1180_v1 }
 0x232   : > { %v2053_v27 = vcombine.low %v2029_v2, %v2045_v3  ;;  %v1849_v31 = vcombine.low %v1825_v15, %v1841_v12  ;;  %v1302_v62 = vcombine.high %v6517_v23, %v6520_v24  ;;  %v1961_v33 = vrot.slane %v1953_v36, %v6502_v60 }
 0x233   : > { %v6736_v22 = vrot.slane %v1405_v20, %v6498_v53  ;;  %v6739_v30 = vrot.slane %v5152_v29, %v6498_v53  ;;  %v1421_v57 = vcombine.low %v1189_v59, %v1196_v19  ;;  %v5153_v61 = vcombine.high %v1189_v59, %v1196_v19 }
 0x234   : > { %5386 = vmatprep.subr.msk.mxu0 %vm2643_vm1, %v2053_v27  ;;  %5381 = vmatprep.subr.msk.mxu1 %vm2643_vm1, %v1849_v31  ;;  %v1977_v47 = vrot.slane %v1969_v52, %v6502_v60  ;;  %v1918_v1 = vcombine.high %v6619_v13, %v6622_v14  ;;  %v1318_v46 = vcombine.high %v6523_v25, %v6526_v26 }
 0x235   : > { %v6748_v63 = vrot.slane %v1421_v57, %v6498_v53  ;;  %v6751_v37 = vrot.slane %v5153_v61, %v6498_v53  ;;  %v1437_v0 = vcombine.low %v6736_v22, %v6739_v30  ;;  %5387 = vmatpush3.xpose.msk.msra.mxu0 %vm2643_vm1, %v2053_v27  ;;  %5382 = vmatpush3.xpose.msk.msra.mxu1 %vm2643_vm1, %v1849_v31 }
 0x236   : > { %v1333_v18 = vcombine.low %v6547_v58, %v6570_v17  ;;  %v1985_v59 = vcombine.low %v1961_v33, %v1977_v47  ;;  %v1369_v19 = vcombine.low %v6703_v34, %v6706_v35  ;;  %5393 = vmatprep.subr.msk.mxu1 %vm2643_vm1, %v1918_v1  ;;  %v1266_v13 = vcombine.high %v6599_v50, %v6602_v51 }
 0x237   : > { %v6766_v20 = vrot.slane %v1437_v0, %v6502_v60  ;;  %v1453_v29 = vcombine.low %v6748_v63, %v6751_v37  ;;  %v1385_v14 = vcombine.low %v6709_v49, %v6715_v21  ;;  %v1850_v27 = vcombine.high %v1825_v15, %v1841_v12 }
 0x238   : > { %5388 = vmatprep.subr.msk.mxu0 %vm2643_vm1, %v1985_v59  ;;  %v1377_v31 = vrot.slane %v1369_v19, %v6502_v60  ;;  %v1886_v36 = vcombine.high %v6585_v43, %v6588_v44  ;;  %v1902_v52 = vcombine.high %v6591_v45, %v6594_v32  ;;  %5384 = vmatmul.mubr.msk.f32.vlgmr.msra.gmra.mxu1 %vm2643_vm1, %v1333_v18  ;;  %v2064_v18 = vpop.permute.xlu1 %2063 }
 0x239   : > { %v1461_v57 = vrot.slane %v1453_v29, %v6502_v60  ;;  %5389 = vmatpush3.xpose.msk.msra.mxu0 %vm2643_vm1, %v1985_v59  ;;  %v2054_v50 = vcombine.high %v2029_v2, %v2045_v3  ;;  %v1393_v51 = vrot.slane %v1385_v14, %v6502_v60  ;;  %5394 = vmatpush3.xpose.msk.msra.mxu1 %vm2643_vm1, %v1918_v1  ;;  %v2076_v59 = vpop.permute.xlu0 %2075 }
 0x23a   : > { %5397 = vmatprep.mubr.msk.f32.mxu1 %vm2643_vm1, %v1266_v13  ;;  %v1900_v15 = vrot.slane %v1886_v36, %v6502_v60  ;;  %v1916_v43 = vrot.slane %v1902_v52, %v6502_v60  ;;  %v1234_v44 = vcombine.high %v6554_v7, %v6557_v8  ;;  %5395 = vmatprep.subr.msk.mxu1 %vm2643_vm1, %v1850_v27 }
 0x23b   : > { %5400 = vmatprep.subr.msk.mxu0 %vm2643_vm1, %v2054_v50  ;;  %v1401_v45 = vcombine.low %v1377_v31, %v1393_v51  ;;  %v1469_v32 = vcombine.low %v6766_v20, %v1461_v57  ;;  %v1334_v2 = vcombine.high %v6547_v58, %v6570_v17  ;;  %v1986_v3 = vcombine.high %v1961_v33, %v1977_v47 }
 0x23c   : > { %v1248_v12 = vrot.slane %v1234_v44, %v6502_v60  ;;  %v1250_v61 = vcombine.high %v6560_v9, %v6563_v10  ;;  %v1818_v0 = vcombine.high %v6651_v5, %v6654_v6  ;;  %v1919_v7 = vcombine.low %v1900_v15, %v1916_v43 }
 0x23d   : > { %5390 = vmatprep.mubr.msk.f32.mxu0 %vm2643_vm1, %v1401_v45  ;;  %v1834_v8 = vcombine.high %v6657_v11, %v6665_v28  ;;  %v2022_v1 = vcombine.high %v6634_v54, %v6637_v55  ;;  %v2038_v58 = vcombine.high %v6640_v56, %v6648_v4  ;;  %5396 = vmatpush3.xpose.msk.msra.mxu1 %vm2643_vm1, %v1850_v27 }
 0x23e   : > { %5391 = vmatmul.mubr.msk.f32.vlgmr.msra.gmra.mxu0 %vm2643_vm1, %v1469_v32  ;;  %v1402_v9 = vcombine.high %v1377_v31, %v1393_v51  ;;  %v1264_v10 = vrot.slane %v1250_v61, %v6502_v60  ;;  %v1832_v17 = vrot.slane %v1818_v0, %v6502_v60  ;;  %5407 = vmatprep.subr.msk.mxu1 %vm2643_vm1, %v1919_v7  ;;  %v2088_v31 = vpop.permute.xlu1 %2087 }
 0x23f   : > { %5401 = vmatpush3.xpose.msk.msra.mxu0 %vm2643_vm1, %v2054_v50  ;;  %v1848_v5 = vrot.slane %v1834_v8, %v6502_v60  ;;  %v2036_v54 = vrot.slane %v2022_v1, %v6502_v60  ;;  %v2052_v55 = vrot.slane %v2038_v58, %v6502_v60  ;;  %v1438_v56 = vcombine.high %v6736_v22, %v6739_v30 }
 0x240   : > { %5402 = vmatprep.subr.msk.mxu0 %vm2643_vm1, %v1986_v3  ;;  %5404 = vmatprep.mubr.msk.f32.mxu0 %vm2643_vm1, %v1402_v9  ;;  %v1267_v4 = vcombine.low %v1248_v12, %v1264_v10  ;;  %v1316_v11 = vrot.slane %v1302_v62, %v6502_v60  ;;  %v1370_v28 = vcombine.high %v6703_v34, %v6706_v35 }
 0x241   : > { %5398 = vmatmul.mubr.msk.f32.vlgmr.msra.gmra.mxu1 %vm2643_vm1, %v1334_v2  ;;  %v1851_v6 = vcombine.low %v1832_v17, %v1848_v5  ;;  %v1386_v33 = vcombine.high %v6709_v49, %v6715_v21  ;;  %v2055_v22 = vcombine.low %v2036_v54, %v2052_v55  ;;  %v1954_v30 = vcombine.high %v6688_v16, %v6692_v38 }
 0x242   : > { %5408 = vmatpush3.xpose.msk.msra.mxu1 %vm2643_vm1, %v1919_v7  ;;  %5411 = vmatprep.mubr.msk.f32.mxu1 %vm2643_vm1, %v1267_v4  ;;  %v1970_v47 = vcombine.high %v6695_v41, %v6700_v48  ;;  %v1332_v23 = vrot.slane %v1318_v46, %v6502_v60  ;;  %v1384_v24 = vrot.slane %v1370_v28, %v6502_v60 }
 0x243   : > { %5409 = vmatprep.subr.msk.mxu1 %vm2643_vm1, %v1851_v6  ;;  %5403 = vmatpush3.xpose.msk.msra.mxu0 %vm2643_vm1, %v1986_v3  ;;  %v1400_v34 = vrot.slane %v1386_v33, %v6502_v60  ;;  %v1454_v35 = vcombine.high %v6748_v63, %v6751_v37  ;;  %v1470_v16 = vcombine.high %v6766_v20, %v1461_v57 }
 0x244   : > { %5414 = vmatprep.subr.msk.mxu0 %vm2643_vm1, %v2055_v22  ;;  %v1968_v38 = vrot.slane %v1954_v30, %v6502_v60  ;;  %v1984_v41 = vrot.slane %v1970_v47, %v6502_v60  ;;  %v1920_v48 = vcombine.high %v1900_v15, %v1916_v43  ;;  %v1335_v49 = vcombine.low %v1316_v11, %v1332_v23 }
 0x245   : > { %v1403_v25 = vcombine.low %v1384_v24, %v1400_v34  ;;  %v1268_v21 = vcombine.high %v1248_v12, %v1264_v10  ;;  %v1452_v62 = vrot.slane %v1438_v56, %v6502_v60  ;;  %v1468_v63 = vrot.slane %v1454_v35, %v6502_v60  ;;  %v2641_v35 = vld [vmem:[%s7369_s9] sm:$0xff] }
 0x246   : > { %5410 = vmatpush3.xpose.msk.msra.mxu1 %vm2643_vm1, %v1851_v6  ;;  %5405 = vmatmul.mubr.msk.f32.vlgmr.msra.gmra.mxu0 %vm2643_vm1, %v1470_v16  ;;  %v1987_v26 = vcombine.low %v1968_v38, %v1984_v41  ;;  %v1852_v37 = vcombine.high %v1832_v17, %v1848_v5  ;;  %v2056_v46 = vcombine.high %v2036_v54, %v2052_v55 }
 0x247   : > { %5421 = vmatprep.subr.msk.mxu1 %vm2643_vm1, %v1920_v48  ;;  %5415 = vmatpush3.xpose.msk.msra.mxu0 %vm2643_vm1, %v2055_v22  ;;  %v1471_v19 = vcombine.low %v1452_v62, %v1468_v63  ;;  %v2165_v20 = vcombine.low %v6483_v40, %v2076_v59  ;;  %v2166_v29 = vcombine.high %v6483_v40, %v2076_v59 }
 0x248   : > { %5418 = vmatprep.mubr.msk.f32.mxu0 %vm2643_vm1, %v1403_v25  ;;  %5416 = vmatprep.subr.msk.mxu0 %vm2643_vm1, %v1987_v26  ;;  %v1404_v13 = vcombine.high %v1384_v24, %v1400_v34  ;;  %v1988_v14 = vcombine.high %v1968_v38, %v1984_v41  ;;  %v1336_v27 = vcombine.high %v1316_v11, %v1332_v23  ;;  %v2642_v23 = vld [vmem:[%s7369_s9 + $0x8] sm:$0xff]  ;;  %v6897_v24 = vpop.f32.mrf.mxu0 }
 0x249   : > { %5412 = vmatmul.mubr.msk.f32.vlgmr.msra.gmra.mxu1 %vm2643_vm1, %v1335_v49  ;;  %v2181_v36 = vcombine.low %v2064_v18, %v2088_v31  ;;  %v2182_v52 = vcombine.high %v2064_v18, %v2088_v31  ;;  %v2173_v57 = vrot.slane %v2165_v20, %v6498_v53  ;;  %v2180_v40 = vrot.slane %v2166_v29, %v6498_v53 }
 0x24a   : > { %5422 = vmatpush3.xpose.msk.msra.mxu1 %vm2643_vm1, %v1920_v48  ;;  %5425 = vmatprep.mubr.msk.f32.mxu1 %vm2643_vm1, %v1268_v21  ;;  %v1472_v15 = vcombine.high %v1452_v62, %v1468_v63  ;;  %v6906_v48 = vpop.f32.mrf.mxu0 }
 0x24b   : > { %5423 = vmatprep.subr.msk.mxu1 %vm2643_vm1, %v1852_v37  ;;  %5417 = vmatpush3.xpose.msk.msra.mxu0 %vm2643_vm1, %v1987_v26  ;;  %v2189_v50 = vrot.slane %v2181_v36, %v6498_v53  ;;  %v2196_v51 = vrot.slane %v2182_v52, %v6498_v53 }
 0x24c   : > { %5428 = vmatprep.subr.msk.mxu0 %vm2643_vm1, %v2056_v46 }
 0x24d   : > { %v2197_v43 = vcombine.low %v2173_v57, %v2189_v50  ;;  %v2198_v44 = vcombine.high %v2173_v57, %v2189_v50  ;;  %v2213_v45 = vcombine.low %v2180_v40, %v2196_v51  ;;  %v2214_v32 = vcombine.high %v2180_v40, %v2196_v51 }
 0x24e   : > { %5424 = vmatpush3.xpose.msk.msra.mxu1 %vm2643_vm1, %v1852_v37  ;;  %5419 = vmatmul.mubr.msk.f32.vlgmr.msra.gmra.mxu0 %vm2643_vm1, %v1471_v19 }
 0x24f   : > { %5429 = vmatpush3.xpose.msk.msra.mxu0 %vm2643_vm1, %v2056_v46  ;;  %5432 = vmatprep.mubr.msk.f32.mxu0 %vm2643_vm1, %v1404_v13  ;;  %v2205_v2 = vrot.slane %v2197_v43, %v6502_v60  ;;  %v2212_v3 = vrot.slane %v2198_v44, %v6502_v60  ;;  %v2221_v12 = vrot.slane %v2213_v45, %v6502_v60 }
 0x250   : > { %5430 = vmatprep.subr.msk.mxu0 %vm2643_vm1, %v1988_v14  ;;  %v2228_v61 = vrot.slane %v2214_v32, %v6502_v60 }
 0x251   : > { %5426 = vmatmul.mubr.msk.f32.vlgmr.msra.gmra.mxu1 %vm2643_vm1, %v1336_v27  ;;  %v2437_v0 = vcombine.low %v2205_v2, %v2212_v3  ;;  %v5164_v7 = vcombine.high %v2205_v2, %v2212_v3 }
 0x252   : > { %v2453_v8 = vcombine.low %v2221_v12, %v2228_v61  ;;  %v5165_v1 = vcombine.high %v2221_v12, %v2228_v61 }
 0x253   : > { %5431 = vmatpush3.xpose.msk.msra.mxu0 %vm2643_vm1, %v1988_v14  ;;  %v2444_v58 = vrot.slane %v2437_v0, %v6498_v53  ;;  %v2452_v9 = vrot.slane %v5164_v7, %v6498_v53 }
 0x254   : > { %v2460_v10 = vrot.slane %v2453_v8, %v6498_v53  ;;  %v2468_v17 = vrot.slane %v5165_v1, %v6498_v53 }
 0x255   : > { %v2469_v5 = vcombine.low %v2444_v58, %v2452_v9  ;;  %v2470_v11 = vcombine.high %v2444_v58, %v2452_v9 }
 0x256   : > { %5433 = vmatmul.mubr.msk.f32.vlgmr.msra.gmra.mxu0 %vm2643_vm1, %v1472_v15  ;;  %v2485_v54 = vcombine.low %v2460_v10, %v2468_v17  ;;  %v2486_v28 = vcombine.high %v2460_v10, %v2468_v17 }
 0x257   : > { %v2477_v55 = vrot.slane %v2469_v5, %v6502_v60  ;;  %v2484_v33 = vrot.slane %v2470_v11, %v6502_v60  ;;  %v6990_v11 = vpop.permute.xlu1 %2073 }
 0x258   : > { %v2493_v56 = vrot.slane %v2485_v54, %v6502_v60  ;;  %v2500_v22 = vrot.slane %v2486_v28, %v6502_v60  ;;  %v6992_v28 = vpop.permute.xlu0 %2061 }
 0x25a   : > { %v2501_v4 = vcombine.low %v2477_v55, %v2493_v56  ;;  %v2502_v6 = vcombine.high %v2477_v55, %v2493_v56  ;;  %v6890_v30 = vcombine.low %v2484_v33, %v2500_v22  ;;  %v6892_v47 = vcombine.high %v2484_v33, %v2500_v22 }
 0x25c   : > { %5435 = vmatprep.subr.mxu1 %v2501_v4  ;;  %5449 = vmatprep.subr.mxu0 %v2502_v6 }
 0x25d   : > { %5436 = vmatpush3.msra.mxu1 %v2501_v4  ;;  %5450 = vmatpush3.msra.mxu0 %v2502_v6  ;;  %v6972_v4 = vadd.f32 %v6897_v24, %v6480_v39  ;;  %v6978_v6 = vadd.f32 %v6480_v39, %v6906_v48 }
 0x2f8   : > { %v5385_v34 = vpop.f32.mrf.mxu1 }
 0x2f9   : > { %v6902_v16 = vadd.f32 %v5385_v34, %v2642_v23 }
 0x2fa   : > { %v2722_v38 = vpop.f32.mrf.mxu1 }
 0x2fb   : > { %v6904_v41 = vadd.f32 %v2722_v38, %v2641_v35  ;;  %v3344_v25 = vsel %vm3340_vm2, %v6902_v16, -inf }
 0x2fc   : > { %3345 = vmax.xlane.f32.xlu1 %v3344_v25 }
 0x2fd   : > { %v3341_v26 = vsel %vm3340_vm2, %v6904_v41, -inf }
 0x2fe   : > { %v5392_v49 = vpop.f32.mrf.mxu0  ;;  %3342 = vmax.xlane.f32.xlu0 %v3341_v26 }
 0x2ff   : > { %v6912_v21 = vadd.f32 %v5392_v49, %v2642_v23 }
 0x300   : > { %v2809_v62 = vpop.f32.mrf.mxu0 }
 0x301   : > { %v5399_v63 = vpop.f32.mrf.mxu1  ;;  %v6914_v37 = vadd.f32 %v2809_v62, %v2641_v35  ;;  %v3350_v46 = vsel %vm3340_vm2, %v6912_v21, -inf }
 0x302   : > { %3351 = vmax.xlane.f32.xlu1 %v3350_v46  ;;  %v6918_v18 = vadd.f32 %v5399_v63, %v2642_v23 }
 0x303   : > { %v3347_v59 = vsel %vm3340_vm2, %v6914_v37, -inf  ;;  %v2896_v19 = vpop.f32.mrf.mxu1 }
 0x304   : > { %3348 = vmax.xlane.f32.xlu0 %v3347_v59  ;;  %v6922_v29 = vadd.f32 %v2896_v19, %v2641_v35  ;;  %v3356_v14 = vsel %vm3340_vm2, %v6918_v18, -inf }
 0x306   : > { %v5406_v20 = vpop.f32.mrf.mxu0  ;;  %v3353_v40 = vsel %vm3340_vm2, %v6922_v29, -inf }
 0x307   : > { %v6924_v13 = vadd.f32 %v5406_v20, %v2642_v23 }
 0x308   : > { %v2983_v27 = vpop.f32.mrf.mxu0  ;;  %3357 = vmax.xlane.f32.xlu0 %v3356_v14 }
 0x309   : > { %v5413_v31 = vpop.f32.mrf.mxu1  ;;  %v6928_v36 = vadd.f32 %v2983_v27, %v2641_v35  ;;  %v3362_v52 = vsel %vm3340_vm2, %v6924_v13, -inf }
 0x30a   : > { %3363 = vmax.xlane.f32.xlu1 %v3362_v52  ;;  %v6932_v57 = vadd.f32 %v5413_v31, %v2642_v23 }
 0x30b   : > { %v3070_v50 = vpop.f32.mrf.mxu1  ;;  %v3359_v51 = vsel %vm3340_vm2, %v6928_v36, -inf }
 0x30c   : > { %3354 = vmax.xlane.f32.xlu0 %v3353_v40  ;;  %v6938_v43 = vadd.f32 %v3070_v50, %v2641_v35  ;;  %v3368_v45 = vsel %vm3340_vm2, %v6932_v57, -inf }
 0x30e   : > { %v5420_v15 = vpop.f32.mrf.mxu0  ;;  %3360 = vmax.xlane.f32.xlu1 %v3359_v51  ;;  %v3365_v0 = vsel %vm3340_vm2, %v6938_v43, -inf }
 0x30f   : > { %v6940_v44 = vadd.f32 %v5420_v15, %v2642_v23 }
 0x310   : > { %v3157_v32 = vpop.f32.mrf.mxu0  ;;  %3369 = vmax.xlane.f32.xlu0 %v3368_v45 }
 0x311   : > { %v5427_v2 = vpop.f32.mrf.mxu1  ;;  %v6944_v3 = vadd.f32 %v3157_v32, %v2641_v35  ;;  %v3374_v12 = vsel %vm3340_vm2, %v6940_v44, -inf }
 0x312   : > { %3375 = vmax.xlane.f32.xlu1 %v3374_v12  ;;  %v6948_v61 = vadd.f32 %v5427_v2, %v2642_v23 }
 0x313   : > { %v3244_v7 = vpop.f32.mrf.mxu1  ;;  %v3371_v8 = vsel %vm3340_vm2, %v6944_v3, -inf }
 0x314   : > { %3366 = vmax.xlane.f32.xlu0 %v3365_v0  ;;  %v6954_v58 = vadd.f32 %v3244_v7, %v2641_v35  ;;  %v3380_v9 = vsel %vm3340_vm2, %v6948_v61, -inf }
 0x316   : > { %v5434_v1 = vpop.f32.mrf.mxu0  ;;  %3372 = vmax.xlane.f32.xlu1 %v3371_v8  ;;  %v3377_v55 = vsel %vm3340_vm2, %v6954_v58, -inf }
 0x317   : > { %v6960_v5 = vadd.f32 %v5434_v1, %v2642_v23 }
 0x318   : > { %v3331_v10 = vpop.f32.mrf.mxu0  ;;  %3381 = vmax.xlane.f32.xlu0 %v3380_v9 }
 0x319   : > { %v6958_v17 = vadd.f32 %v3331_v10, %v2641_v35  ;;  %v3386_v56 = vsel %vm3340_vm2, %v6960_v5, -inf }
 0x31b   : > { %v3383_v54 = vsel %vm3340_vm2, %v6958_v17, -inf }
 0x31c   : > { %3384 = vmax.xlane.f32.xlu1 %v3383_v54  ;;  %3378 = vmax.xlane.f32.xlu0 %v3377_v55 }
 0x320   : > { %3387 = vmax.xlane.f32.xlu0 %v3386_v56 }
 0x32d   : > { %2085 = vrot.lane.b32.xlu1 %v6490_v42, %s6065_s10 }
 0x331   : > { %2079 = vrot.lane.b32.xlu1 %v6972_v4, %s6063_s19 }
 0x335   : > { %2077 = vrot.lane.b32.xlu1 %v6978_v6, %s6063_s19  ;;  %s5956_s19 = scalar_lea.vmem %s5955_s25, 1024 }
 0x336   : > { %2067 = vrot.lane.b32.xlu0 %v6972_v4, %s6064_s21  ;;  %p5958_p1 = scmp.lt.s32.totalorder %s5956_s19, %s5950_s17 }
 0x338   : > { %p5959_p2 = por %p5958_p1, %p5957_p9 }
 0x339   : > { %2089 = vrot.lane.b32.xlu1 %v6978_v6, %s6065_s10 }
 0x33a   : > { %2091 = vrot.lane.b32.xlu0 %v6972_v4, %s6065_s10  ;;  %p5960_p6 = pnand %p5959_p2, %p5953_p13 }
 0x33e   : > { %2065 = vrot.lane.b32.xlu0 %v6978_v6, %s6064_s21 }
 0x385   : > { %v3346_v39 = vpop.xlane.xlu1 %3345 }
 0x386   : > { %v3390_v33 = vsub.f32 %v6902_v16, %v3346_v39 }
 0x387   : > { %v3343_v22 = vpop.xlane.xlu0 %3342 }
 0x388   : > { %v3407_v23 = vmul.f32 1.442695, %v3390_v33  ;;  %v3389_v24 = vsub.f32 %v6904_v41, %v3343_v22 }
 0x38a   : > { %5644 = vpow2.f32 %v3407_v23  ;;  %v3405_v34 = vmul.f32 1.442695, %v3389_v24  ;;  %v2098_v24 = vcombine.high %v6490_v42, %v6990_v11 }
 0x38b   : > { %v3352_v35 = vpop.xlane.xlu1 %3351 }
 0x38c   : > { %v3392_v38 = vsub.f32 %v6912_v21, %v3352_v35  ;;  %5646 = vpow2.f32 %v3405_v34 }
 0x38d   : > { %v3349_v48 = vpop.xlane.xlu0 %3348 }
 0x38e   : > { %v3411_v25 = vmul.f32 1.442695, %v3392_v38  ;;  %v3391_v26 = vsub.f32 %v6914_v37, %v3349_v48 }
 0x390   : > { %5648 = vpow2.f32 %v3411_v25  ;;  %v3409_v49 = vmul.f32 1.442695, %v3391_v26 }
 0x391   : > { %v3358_v62 = vpop.xlane.xlu0 %3357 }
 0x392   : > { %v3394_v63 = vsub.f32 %v6918_v18, %v3358_v62  ;;  %5650 = vpow2.f32 %v3409_v49 }
 0x393   : > { %v3364_v16 = vpop.xlane.xlu1 %3363 }
 0x394   : > { %v3415_v46 = vmul.f32 1.442695, %v3394_v63  ;;  %v3396_v41 = vsub.f32 %v6924_v13, %v3364_v16 }
 0x395   : > { %v3355_v59 = vpop.xlane.xlu0 %3354 }
 0x396   : > { %5652 = vpow2.f32 %v3415_v46  ;;  %v3393_v19 = vsub.f32 %v6922_v29, %v3355_v59  ;;  %v3419_v21 = vmul.f32 1.442695, %v3396_v41 }
 0x397   : > { %v3361_v20 = vpop.xlane.xlu1 %3360  ;;  %v7001_v14 = vpop.eup %5644 }
 0x398   : > { %v3413_v27 = vmul.f32 1.442695, %v3393_v19  ;;  %v3395_v37 = vsub.f32 %v6928_v36, %v3361_v20  ;;  %v3440_v31 = vsel %vm3340_vm2, %v7001_v14, 0.0 }
 0x399   : > { %v3370_v18 = vpop.xlane.xlu0 %3369  ;;  %v7006_v52 = vpop.eup %5646  ;;  %3441 = vadd.xlane.f32.xlu0 %v3440_v31 }
 0x39a   : > { %5654 = vpow2.f32 %v3413_v27  ;;  %v3417_v40 = vmul.f32 1.442695, %v3395_v37  ;;  %v3398_v13 = vsub.f32 %v6932_v57, %v3370_v18  ;;  %v3437_v29 = vsel %vm3340_vm2, %v7006_v52, 0.0 }
 0x39b   : > { %5656 = vpow2.f32 %v3419_v21  ;;  %v3376_v50 = vpop.xlane.xlu1 %3375  ;;  %3438 = vadd.xlane.f32.xlu1 %v3437_v29 }
 0x39c   : > { %5658 = vpow2.f32 %v3417_v40  ;;  %v3423_v51 = vmul.f32 1.442695, %v3398_v13  ;;  %v3400_v36 = vsub.f32 %v6940_v44, %v3376_v50 }
 0x39d   : > { %v7012_v15 = vpop.eup %5648  ;;  %v3367_v45 = vpop.xlane.xlu0 %3366 }
 0x39e   : > { %5660 = vpow2.f32 %v3423_v51  ;;  %v3397_v32 = vsub.f32 %v6938_v43, %v3367_v45  ;;  %v3446_v2 = vsel %vm3340_vm2, %v7012_v15, 0.0  ;;  %v3427_v57 = vmul.f32 1.442695, %v3400_v36 }
 0x39f   : > { %v3373_v12 = vpop.xlane.xlu1 %3372  ;;  %v7017_v0 = vpop.eup %5650  ;;  %3447 = vadd.xlane.f32.xlu1 %v3446_v2 }
 0x3a0   : > { %v3421_v7 = vmul.f32 1.442695, %v3397_v32  ;;  %v3399_v8 = vsub.f32 %v6944_v3, %v3373_v12  ;;  %v3443_v43 = vsel %vm3340_vm2, %v7017_v0, 0.0 }
 0x3a1   : > { %v3382_v1 = vpop.xlane.xlu0 %3381 }
 0x3a2   : > { %5662 = vpow2.f32 %v3421_v7  ;;  %v3425_v44 = vmul.f32 1.442695, %v3399_v8  ;;  %v3402_v9 = vsub.f32 %v6948_v61, %v3382_v1  ;;  %v2097_v61 = vcombine.low %v6490_v42, %v6990_v11 }
 0x3a3   : > { %v7021_v10 = vpop.eup %5652  ;;  %5664 = vpow2.f32 %v3427_v57  ;;  %3444 = vadd.xlane.f32.xlu1 %v3443_v43  ;;  %v2112_v11 = vrot.slane %v2098_v24, %v6498_v53 }
 0x3a4   : > { %5666 = vpow2.f32 %v3425_v44  ;;  %v3431_v54 = vmul.f32 1.442695, %v3402_v9  ;;  %v3452_v55 = vsel %vm3340_vm2, %v7021_v10, 0.0 }
 0x3a5   : > { %v3385_v56 = vpop.xlane.xlu1 %3384  ;;  %v3379_v3 = vpop.xlane.xlu0 %3378  ;;  %3453 = vadd.xlane.f32.xlu0 %v3452_v55 }
 0x3a6   : > { %5668 = vpow2.f32 %v3431_v54  ;;  %v3401_v39 = vsub.f32 %v6954_v58, %v3379_v3  ;;  %v3403_v22 = vsub.f32 %v6958_v17, %v3385_v56  ;;  %v2105_v17 = vrot.slane %v2097_v61, %v6498_v53 }
 0x3a7   : > { %v7028_v33 = vpop.eup %5654 }
 0x3a8   : > { %v7033_v23 = vpop.eup %5656  ;;  %v3449_v34 = vsel %vm3340_vm2, %v7028_v33, 0.0  ;;  %v3429_v38 = vmul.f32 1.442695, %v3401_v39  ;;  %v3433_v62 = vmul.f32 1.442695, %v3403_v22 }
 0x3a9   : > { %v7039_v35 = vpop.eup %5658  ;;  %v2086_v48 = vpop.permute.xlu1 %2085  ;;  %3450 = vadd.xlane.f32.xlu0 %v3449_v34  ;;  %v3458_v46 = vsel %vm3340_vm2, %v7033_v23, 0.0 }
 0x3aa   : > { %v3388_v58 = vpop.xlane.xlu0 %3387  ;;  %v2113_v25 = vcombine.low %v6992_v28, %v2086_v48  ;;  %v2114_v26 = vcombine.high %v6992_v28, %v2086_v48  ;;  %v3455_v42 = vsel %vm3340_vm2, %v7039_v35, 0.0  ;;  %5670 = vpow2.f32 %v3429_v38 }
 0x3ab   : > { %v7043_v49 = vpop.eup %5660  ;;  %3456 = vadd.xlane.f32.xlu1 %v3455_v42  ;;  %v3404_v28 = vsub.f32 %v6960_v5, %v3388_v58  ;;  %5672 = vpow2.f32 %v3433_v62 }
 0x3ac   : > { %v2121_v63 = vrot.slane %v2113_v25, %v6498_v53  ;;  %v2128_v16 = vrot.slane %v2114_v26, %v6498_v53  ;;  %v3464_v59 = vsel %vm3340_vm2, %v7043_v49, 0.0 }
 0x3ad   : > { %3459 = vadd.xlane.f32.xlu0 %v3458_v46  ;;  %v2080_v37 = vpop.permute.xlu1 %2079  ;;  %v3435_v51 = vmul.f32 1.442695, %v3404_v28 }
 0x3ae   : > { %v2068_v41 = vpop.permute.xlu0 %2067  ;;  %v2129_v19 = vcombine.low %v2105_v17, %v2121_v63  ;;  %v2130_v21 = vcombine.high %v2105_v17, %v2121_v63  ;;  %v2145_v20 = vcombine.low %v2112_v11, %v2128_v16  ;;  %v2146_v27 = vcombine.high %v2112_v11, %v2128_v16 }
 0x3af   : > { %v7056_v31 = vpop.eup %5662  ;;  %3465 = vadd.xlane.f32.xlu1 %v3464_v59  ;;  %v2301_v36 = vcombine.low %v6972_v4, %v2080_v37  ;;  %v2302_v45 = vcombine.high %v6972_v4, %v2080_v37  ;;  %5674 = vpow2.f32 %v3435_v51 }
 0x3b0   : > { %v7058_v18 = vpop.eup %5664  ;;  %v2137_v40 = vrot.slane %v2129_v19, %v6502_v60  ;;  %v2144_v13 = vrot.slane %v2130_v21, %v6502_v60  ;;  %v2153_v5 = vrot.slane %v2145_v20, %v6502_v60  ;;  %v2160_v29 = vrot.slane %v2146_v27, %v6502_v60 }
 0x3b1   : > { %v7064_v50 = vpop.eup %5666  ;;  %v3461_v2 = vsel %vm3340_vm2, %v7056_v31, 0.0  ;;  %v3470_v54 = vsel %vm3340_vm2, %v7058_v18, 0.0  ;;  %v2309_v56 = vrot.slane %v2301_v36, %v6498_v53  ;;  %v2316_v3 = vrot.slane %v2302_v45, %v6498_v53 }
 0x3b2   : > { %v2092_v32 = vpop.permute.xlu0 %2091  ;;  %v2369_v57 = vcombine.low %v2137_v40, %v2144_v13  ;;  %v5162_v12 = vcombine.high %v2137_v40, %v2144_v13  ;;  %v2385_v7 = vcombine.low %v2153_v5, %v2160_v29  ;;  %v5163_v8 = vcombine.high %v2153_v5, %v2160_v29  ;;  %3462 = vadd.xlane.f32.xlu0 %v3461_v2 }
 0x3b3   : > { %v7070_v1 = vpop.eup %5668  ;;  %v2317_v44 = vcombine.low %v2068_v41, %v2092_v32  ;;  %v2318_v9 = vcombine.high %v2068_v41, %v2092_v32  ;;  %v3467_v43 = vsel %vm3340_vm2, %v7064_v50, 0.0 }
 0x3b4   : > { %v2376_v4 = vrot.slane %v2369_v57, %v6498_v53  ;;  %v2384_v55 = vrot.slane %v5162_v12, %v6498_v53  ;;  %3468 = vadd.xlane.f32.xlu1 %v3467_v43  ;;  %v3476_v22 = vsel %vm3340_vm2, %v7070_v1, 0.0  ;;  %v2392_v24 = vrot.slane %v2385_v7, %v6498_v53 }
 0x3b5   : > { %v2325_v39 = vrot.slane %v2317_v44, %v6498_v53  ;;  %v2332_v61 = vrot.slane %v2318_v9, %v6498_v53  ;;  %v2400_v34 = vrot.slane %v5163_v8, %v6498_v53 }
 0x3b6   : > { %3471 = vadd.xlane.f32.xlu0 %v3470_v54  ;;  %v2401_v26 = vcombine.low %v2376_v4, %v2384_v55  ;;  %v2402_v9 = vcombine.high %v2376_v4, %v2384_v55 }
 0x3b7   : > { %v2333_v38 = vcombine.low %v2309_v56, %v2325_v39  ;;  %v2334_v48 = vcombine.high %v2309_v56, %v2325_v39  ;;  %v2349_v58 = vcombine.low %v2316_v3, %v2332_v61  ;;  %v2350_v25 = vcombine.high %v2316_v3, %v2332_v61  ;;  %v7090_v16 = vpop.eup %5670 }
 0x3b8   : > { %v2417_v17 = vcombine.low %v2392_v24, %v2400_v34  ;;  %3477 = vadd.xlane.f32.xlu1 %v3476_v22  ;;  %v7092_v28 = vpop.eup %5672  ;;  %v3473_v21 = vsel %vm3340_vm2, %v7090_v16, 0.0  ;;  %v2409_v20 = vrot.slane %v2401_v26, %v6502_v60  ;;  %v2418_v54 = vcombine.high %v2392_v24, %v2400_v34  ;;  %v2078_v34 = vpop.permute.xlu1 %2077 }
 0x3b9   : > { %v2341_v62 = vrot.slane %v2333_v38, %v6502_v60  ;;  %v2348_v42 = vrot.slane %v2334_v48, %v6502_v60  ;;  %v2357_v11 = vrot.slane %v2349_v58, %v6502_v60  ;;  %v2364_v63 = vrot.slane %v2350_v25, %v6502_v60  ;;  %v2066_v58 = vpop.permute.xlu0 %2065 }
 0x3ba   : > { %v2425_v27 = vrot.slane %v2417_v17, %v6502_v60  ;;  %3474 = vadd.xlane.f32.xlu0 %v3473_v21  ;;  %v3479_v36 = vsel %vm3340_vm2, %v7092_v28, 0.0  ;;  %v2416_v61 = vrot.slane %v2402_v9, %v6502_v60  ;;  %v2432_v38 = vrot.slane %v2418_v54, %v6502_v60 }
 0x3bb   : > { %v2573_v46 = vcombine.low %v2341_v62, %v2348_v42  ;;  %v5168_v41 = vcombine.high %v2341_v62, %v2348_v42  ;;  %v2589_v59 = vcombine.low %v2357_v11, %v2364_v63  ;;  %v5169_v19 = vcombine.high %v2357_v11, %v2364_v63 }
 0x3bc   : > { %v2433_v37 = vcombine.low %v2409_v20, %v2425_v27  ;;  %v2434_v40 = vcombine.high %v2409_v20, %v2425_v27  ;;  %v7104_v57 = vpop.eup %5674  ;;  %v7124_v55 = vcombine.low %v2416_v61, %v2432_v38  ;;  %v7126_v24 = vcombine.high %v2416_v61, %v2432_v38  ;;  %v2090_v48 = vpop.permute.xlu1 %2089 }
 0x3bd   : > { %v2580_v13 = vrot.slane %v2573_v46, %v6498_v53  ;;  %v2588_v5 = vrot.slane %v5168_v41, %v6498_v53  ;;  %v2596_v29 = vrot.slane %v2589_v59, %v6498_v53  ;;  %v2604_v51 = vrot.slane %v5169_v19, %v6498_v53 }
 0x3be   : > { %5437 = vmatprep.subr.mxu1 %v2433_v37  ;;  %5451 = vmatprep.subr.mxu0 %v2434_v40  ;;  %v3482_v56 = vsel %vm3340_vm2, %v7104_v57, 0.0  ;;  %v2249_v25 = vcombine.low %v2066_v58, %v2090_v48  ;;  %v2250_v26 = vcombine.high %v2066_v58, %v2090_v48  ;;  %v2233_v17 = vcombine.low %v6978_v6, %v2078_v34 }
 0x3bf   : > { %5438 = vmatpush3.msra.mxu1 %v2433_v37  ;;  %5452 = vmatpush3.msra.mxu0 %v2434_v40  ;;  %v2605_v45 = vcombine.low %v2580_v13, %v2588_v5  ;;  %v2621_v32 = vcombine.low %v2596_v29, %v2604_v51  ;;  %v2606_v2 = vcombine.high %v2580_v13, %v2588_v5 }
 0x3c0   : > { %3480 = vadd.xlane.f32.xlu0 %v3479_v36  ;;  %5463 = vmatprep.subr.mxu0 %v6890_v30  ;;  %v2622_v12 = vcombine.high %v2596_v29, %v2604_v51  ;;  %v2234_v62 = vcombine.high %v6978_v6, %v2078_v34  ;;  %v2257_v42 = vrot.slane %v2249_v25, %v6498_v53 }
 0x3c1   : > { %v2613_v7 = vrot.slane %v2605_v45, %v6502_v60  ;;  %v2629_v8 = vrot.slane %v2621_v32, %v6502_v60  ;;  %v2620_v44 = vrot.slane %v2606_v2, %v6502_v60  ;;  %v2264_v11 = vrot.slane %v2250_v26, %v6498_v53 }
 0x3c2   : > { %v2636_v43 = vrot.slane %v2622_v12, %v6502_v60  ;;  %v2241_v63 = vrot.slane %v2233_v17, %v6498_v53  ;;  %v2248_v46 = vrot.slane %v2234_v62, %v6498_v53 }
 0x3c3   : > { %v7113_v3 = vcombine.low %v2613_v7, %v2629_v8  ;;  %v7115_v39 = vcombine.high %v2613_v7, %v2629_v8 }
 0x3c4   : > { %3483 = vadd.xlane.f32.xlu0 %v3482_v56  ;;  %v7118_v22 = vcombine.low %v2620_v44, %v2636_v43  ;;  %v7122_v4 = vcombine.high %v2620_v44, %v2636_v43  ;;  %v2265_v41 = vcombine.low %v2241_v63, %v2257_v42  ;;  %v2266_v59 = vcombine.high %v2241_v63, %v2257_v42 }
 0x3c5   : > { %5442 = vmatprep.subr.mxu1 %v7113_v3  ;;  %v2281_v19 = vcombine.low %v2248_v46, %v2264_v11  ;;  %v2282_v21 = vcombine.high %v2248_v46, %v2264_v11 }
 0x3c6   : > { %v2273_v20 = vrot.slane %v2265_v41, %v6502_v60  ;;  %v2280_v27 = vrot.slane %v2266_v59, %v6502_v60 }
 0x3c7   : > { %v2289_v37 = vrot.slane %v2281_v19, %v6502_v60  ;;  %v2296_v6 = vrot.slane %v2282_v21, %v6502_v60 }
 0x3c8   : > { %v2505_v5 = vcombine.low %v2273_v20, %v2280_v27  ;;  %v5166_v29 = vcombine.high %v2273_v20, %v2280_v27 }
 0x3c9   : > { %v2521_v51 = vcombine.low %v2289_v37, %v2296_v6  ;;  %v5167_v36 = vcombine.high %v2289_v37, %v2296_v6 }
 0x3ca   : > { %v2512_v32 = vrot.slane %v2505_v5, %v6498_v53  ;;  %v2520_v2 = vrot.slane %v5166_v29, %v6498_v53 }
 0x3cb   : > { %v2528_v12 = vrot.slane %v2521_v51, %v6498_v53  ;;  %v2536_v7 = vrot.slane %v5167_v36, %v6498_v53 }
 0x3cc   : > { %v2537_v9 = vcombine.low %v2512_v32, %v2520_v2  ;;  %v2538_v19 = vcombine.high %v2512_v32, %v2520_v2 }
 0x3cd   : > { %v2553_v43 = vcombine.low %v2528_v12, %v2536_v7  ;;  %v2554_v21 = vcombine.high %v2528_v12, %v2536_v7 }
 0x3ce   : > { %v2545_v38 = vrot.slane %v2537_v9, %v6502_v60  ;;  %v2552_v37 = vrot.slane %v2538_v19, %v6502_v60 }
 0x3cf   : > { %v2561_v34 = vrot.slane %v2553_v43, %v6502_v60  ;;  %v2568_v6 = vrot.slane %v2554_v21, %v6502_v60 }
 0x3d1   : > { %v2569_v17 = vcombine.low %v2545_v38, %v2561_v34  ;;  %v2570_v59 = vcombine.high %v2545_v38, %v2561_v34  ;;  %v2571_v5 = vcombine.low %v2552_v37, %v2568_v6 }
 0x422   : > { %v3442_v40 = vpop.xlane.xlu0 %3441 }
 0x423   : > { %5676 = vrcp.f32 %v3442_v40 }
 0x424   : > { %v3439_v13 = vpop.xlane.xlu1 %3438 }
 0x425   : > { %5678 = vrcp.f32 %v3439_v13 }
 0x428   : > { %v3448_v45 = vpop.xlane.xlu1 %3447 }
 0x429   : > { %5680 = vrcp.f32 %v3448_v45 }
 0x42c   : > { %v3445_v8 = vpop.xlane.xlu1 %3444 }
 0x42d   : > { %5682 = vrcp.f32 %v3445_v8 }
 0x42e   : > { %v3454_v44 = vpop.xlane.xlu0 %3453 }
 0x42f   : > { %5684 = vrcp.f32 %v3454_v44 }
 0x430   : > { %v5677_v54 = vpop.eup %5676 }
 0x431   : > { %v3502_v25 = vmul.f32 %v5677_v54, %v7001_v14 }
 0x432   : > { %v3451_v56 = vpop.xlane.xlu0 %3450  ;;  %v5679_v61 = vpop.eup %5678 }
 0x433   : > { %5686 = vrcp.f32 %v3451_v56  ;;  %v3501_v48 = vmul.f32 %v5679_v61, %v7006_v52 }
 0x434   : > { %v3457_v58 = vpop.xlane.xlu1 %3456 }
 0x435   : > { %5439 = vmatprep.mubr.msk.f32.mxu1 %vm3340_vm2, %v3501_v48  ;;  %5688 = vrcp.f32 %v3457_v58 }
 0x436   : > { %v3460_v26 = vpop.xlane.xlu0 %3459  ;;  %5440 = vmatmul.mubr.msk.f32.vlgmr.msra.gmra.mxu1 %vm3340_vm2, %v3502_v25  ;;  %v5681_v42 = vpop.eup %5680 }
 0x437   : > { %5690 = vrcp.f32 %v3460_v26  ;;  %5443 = vmatpush3.msra.mxu1 %v7113_v3  ;;  %v3504_v63 = vmul.f32 %v5681_v42, %v7012_v15 }
 0x438   : > { %5444 = vmatprep.subr.mxu1 %v2569_v17  ;;  %v3466_v62 = vpop.xlane.xlu1 %3465 }
 0x439   : > { %5445 = vmatpush3.msra.mxu1 %v2569_v17  ;;  %5692 = vrcp.f32 %v3466_v62 }
 0x43a   : > { %v5683_v11 = vpop.eup %5682  ;;  %5456 = vmatprep.subr.mxu1 %v7115_v39 }
 0x43b   : > { %v3463_v52 = vpop.xlane.xlu0 %3462  ;;  %v3503_v14 = vmul.f32 %v5683_v11, %v7017_v0 }
 0x43c   : > { %5694 = vrcp.f32 %v3463_v52  ;;  %v5685_v41 = vpop.eup %5684 }
 0x43d   : > { %v3469_v46 = vpop.xlane.xlu1 %3468  ;;  %5446 = vmatprep.mubr.msk.f32.mxu1 %vm3340_vm2, %v3503_v14  ;;  %v3506_v15 = vmul.f32 %v5685_v41, %v7021_v10 }
 0x43e   : > { %5696 = vrcp.f32 %v3469_v46  ;;  %5447 = vmatmul.mubr.msk.f32.vlgmr.msra.gmra.mxu1 %vm3340_vm2, %v3504_v63 }
 0x43f   : > { %v3472_v3 = vpop.xlane.xlu0 %3471  ;;  %5457 = vmatpush3.msra.mxu1 %v7115_v39 }
 0x440   : > { %v5687_v20 = vpop.eup %5686  ;;  %5698 = vrcp.f32 %v3472_v3  ;;  %5458 = vmatprep.subr.mxu1 %v2570_v59 }
 0x441   : > { %v3505_v0 = vmul.f32 %v5687_v20, %v7028_v33  ;;  %5459 = vmatpush3.msra.mxu1 %v2570_v59  ;;  %v3478_v13 = vpop.xlane.xlu1 %3477 }
 0x442   : > { %v5689_v27 = vpop.eup %5688  ;;  %5470 = vmatprep.subr.mxu1 %v7118_v22  ;;  %5700 = vrcp.f32 %v3478_v13 }
 0x443   : > { %5453 = vmatprep.mubr.msk.f32.mxu0 %vm3340_vm2, %v3505_v0  ;;  %v3507_v39 = vmul.f32 %v5689_v27, %v7039_v35  ;;  %v3475_v10 = vpop.xlane.xlu0 %3474 }
 0x444   : > { %v5691_v40 = vpop.eup %5690  ;;  %5454 = vmatmul.mubr.msk.f32.vlgmr.msra.gmra.mxu0 %vm3340_vm2, %v3506_v15  ;;  %5702 = vrcp.f32 %v3475_v10 }
 0x445   : > { %5464 = vmatpush3.msra.mxu0 %v6890_v30  ;;  %v3508_v33 = vmul.f32 %v5691_v40, %v7033_v23  ;;  %5460 = vmatprep.mubr.msk.f32.mxu1 %vm3340_vm2, %v3507_v39 }
 0x446   : > { %5465 = vmatprep.subr.mxu0 %v7124_v55  ;;  %v5693_v29 = vpop.eup %5692 }
 0x447   : > { %5466 = vmatpush3.msra.mxu0 %v7124_v55  ;;  %5461 = vmatmul.mubr.msk.f32.vlgmr.msra.gmra.mxu1 %vm3340_vm2, %v3508_v33  ;;  %v3510_v35 = vmul.f32 %v5693_v29, %v7043_v49  ;;  %v2572_v49 = vcombine.high %v2552_v37, %v2568_v6 }
 0x448   : > { %5471 = vmatpush3.msra.mxu1 %v7118_v22  ;;  %5477 = vmatprep.subr.mxu0 %v6892_v47 }
 0x449   : > { %v5695_v30 = vpop.eup %5694  ;;  %5472 = vmatprep.subr.mxu1 %v2571_v5  ;;  %v3481_v55 = vpop.xlane.xlu0 %3480 }
 0x44a   : > { %5473 = vmatpush3.msra.mxu1 %v2571_v5  ;;  %v3509_v23 = vmul.f32 %v5695_v30, %v7056_v31  ;;  %5704 = vrcp.f32 %v3481_v55 }
 0x44b   : > { %5484 = vmatprep.subr.mxu1 %v7122_v4  ;;  %v5697_v51 = vpop.eup %5696 }
 0x44c   : > { %5467 = vmatprep.mubr.msk.f32.mxu0 %vm3340_vm2, %v3509_v23  ;;  %v3511_v22 = vmul.f32 %v5697_v51, %v7064_v50 }
 0x44d   : > { %v5699_v36 = vpop.eup %5698  ;;  %5468 = vmatmul.mubr.msk.f32.vlgmr.msra.gmra.mxu0 %vm3340_vm2, %v3510_v35  ;;  %v3484_v31 = vpop.xlane.xlu0 %3483 }
 0x44e   : > { %5478 = vmatpush3.msra.mxu0 %v6892_v47  ;;  %v3512_v45 = vmul.f32 %v5699_v36, %v7058_v18  ;;  %5474 = vmatprep.mubr.msk.f32.mxu1 %vm3340_vm2, %v3511_v22  ;;  %5706 = vrcp.f32 %v3484_v31 }
 0x44f   : > { %5479 = vmatprep.subr.mxu0 %v7126_v24  ;;  %v5701_v50 = vpop.eup %5700 }
 0x450   : > { %5480 = vmatpush3.msra.mxu0 %v7126_v24  ;;  %5475 = vmatmul.mubr.msk.f32.vlgmr.msra.gmra.mxu1 %vm3340_vm2, %v3512_v45  ;;  %v3514_v18 = vmul.f32 %v5701_v50, %v7070_v1 }
 0x451   : > { %5485 = vmatpush3.msra.mxu1 %v7122_v4  ;;  %v5703_v32 = vpop.eup %5702 }
 0x452   : > { %5486 = vmatprep.subr.mxu1 %v2572_v49  ;;  %v3513_v47 = vmul.f32 %v5703_v32, %v7090_v16 }
 0x453   : > { %5487 = vmatpush3.msra.mxu1 %v2572_v49 }
 0x454   : > { %5481 = vmatprep.mubr.msk.f32.mxu0 %vm3340_vm2, %v3513_v47 }
 0x455   : > { %5482 = vmatmul.mubr.msk.f32.vlgmr.msra.gmra.mxu0 %vm3340_vm2, %v3514_v18 }
 0x457   : > { %v5705_v2 = vpop.eup %5704 }
 0x458   : > { %v3515_v24 = vmul.f32 %v5705_v2, %v7092_v28 }
 0x45a   : > { %5488 = vmatprep.mubr.msk.f32.mxu1 %vm3340_vm2, %v3515_v24 }
 0x45b   : > { %v5707_v12 = vpop.eup %5706 }
 0x45c   : > { %v3516_v4 = vmul.f32 %v5707_v12, %v7104_v57 }
 0x45e   : > { %5489 = vmatmul.mubr.msk.f32.vlgmr.msra.gmra.mxu1 %vm3340_vm2, %v3516_v4 }
 0x4f6   : > { %v5441_v7 = vpop.f32.mrf.mxu1 }
 0x4f8   : > { %v3589_v8 = vpop.f32.mrf.mxu1 }
 0x4fe   : > { %v5448_v44 = vpop.f32.mrf.mxu1 }
 0x500   : > { %v3670_v9 = vpop.f32.mrf.mxu1 }
 0x504   : > { %v5455_v16 = vpop.f32.mrf.mxu0 }
 0x506   : > { %v3751_v1 = vpop.f32.mrf.mxu0 }
 0x507   : > { %v5462_v43 = vpop.f32.mrf.mxu1 }
 0x509   : > { %v3832_v56 = vpop.f32.mrf.mxu1 }
 0x50d   : > { %v5469_v54 = vpop.f32.mrf.mxu0 }
 0x50e   : > { %v4233_v34 = vcombine.low %v5441_v7, %v5469_v54  ;;  %v4234_v28 = vcombine.high %v5441_v7, %v5469_v54 }
 0x50f   : > { %v3913_v61 = vpop.f32.mrf.mxu0 }
 0x510   : > { %v5476_v38 = vpop.f32.mrf.mxu1  ;;  %v4165_v48 = vcombine.low %v3589_v8, %v3913_v61  ;;  %v4166_v58 = vcombine.high %v3589_v8, %v3913_v61  ;;  %v4241_v62 = vrot.slane %v4233_v34, %v6498_v53  ;;  %v4248_v42 = vrot.slane %v4234_v28, %v6498_v53 }
 0x511   : > { %v4369_v11 = vcombine.low %v5448_v44, %v5476_v38  ;;  %v4370_v52 = vcombine.high %v5448_v44, %v5476_v38 }
 0x512   : > { %v3994_v26 = vpop.f32.mrf.mxu1  ;;  %v4173_v59 = vrot.slane %v4165_v48, %v6498_v53  ;;  %v4180_v19 = vrot.slane %v4166_v58, %v6498_v53 }
 0x513   : > { %v4301_v21 = vcombine.low %v3670_v9, %v3994_v26  ;;  %v4302_v20 = vcombine.high %v3670_v9, %v3994_v26  ;;  %v4377_v6 = vrot.slane %v4369_v11, %v6498_v53  ;;  %v4384_v40 = vrot.slane %v4370_v52, %v6498_v53 }
 0x515   : > { %v5483_v25 = vpop.f32.mrf.mxu0  ;;  %v4309_v36 = vrot.slane %v4301_v21, %v6498_v53  ;;  %v4316_v22 = vrot.slane %v4302_v20, %v6498_v53 }
 0x516   : > { %v4249_v57 = vcombine.low %v5455_v16, %v5483_v25  ;;  %v4250_v17 = vcombine.high %v5455_v16, %v5483_v25 }
 0x517   : > { %v4075_v14 = vpop.f32.mrf.mxu0 }
 0x518   : > { %v4257_v63 = vrot.slane %v4249_v57, %v6498_v53  ;;  %v4264_v46 = vrot.slane %v4250_v17, %v6498_v53  ;;  %v4181_v41 = vcombine.low %v3751_v1, %v4075_v14  ;;  %v4182_v3 = vcombine.high %v3751_v1, %v4075_v14 }
 0x51a   : > { %v4265_v0 = vcombine.low %v4241_v62, %v4257_v63  ;;  %v4266_v15 = vcombine.high %v4241_v62, %v4257_v63  ;;  %v4281_v27 = vcombine.low %v4248_v42, %v4264_v46  ;;  %v4282_v37 = vcombine.high %v4248_v42, %v4264_v46 }
 0x51b   : > { %v4189_v13 = vrot.slane %v4181_v41, %v6498_v53  ;;  %v4196_v39 = vrot.slane %v4182_v3, %v6498_v53 }
 0x51c   : > { %v4273_v33 = vrot.slane %v4265_v0, %v6502_v60  ;;  %v4280_v10 = vrot.slane %v4266_v15, %v6502_v60  ;;  %v4289_v5 = vrot.slane %v4281_v27, %v6502_v60  ;;  %v4296_v29 = vrot.slane %v4282_v37, %v6502_v60 }
 0x51d   : > { %v4197_v30 = vcombine.low %v4173_v59, %v4189_v13  ;;  %v4198_v23 = vcombine.high %v4173_v59, %v4189_v13  ;;  %v4213_v35 = vcombine.low %v4180_v19, %v4196_v39  ;;  %v4214_v51 = vcombine.high %v4180_v19, %v4196_v39  ;;  %v4773_v59 = vld [vmem:[#allocation14 + $0x18] sm:$0xff] }
 0x51e   : > { %v5490_v55 = vpop.f32.mrf.mxu1  ;;  %v4505_v45 = vcombine.low %v4273_v33, %v4280_v10  ;;  %v5220_v31 = vcombine.high %v4273_v33, %v4280_v10  ;;  %v4521_v7 = vcombine.low %v4289_v5, %v4296_v29  ;;  %v5221_v8 = vcombine.high %v4289_v5, %v4296_v29  ;;  %5491 = vmatprep.subr.mxu0 %v4773_v59 }
 0x51f   : > { %v4205_v49 = vrot.slane %v4197_v30, %v6502_v60  ;;  %v4212_v50 = vrot.slane %v4198_v23, %v6502_v60  ;;  %v4221_v32 = vrot.slane %v4213_v35, %v6502_v60  ;;  %v4228_v47 = vrot.slane %v4214_v51, %v6502_v60  ;;  %5492 = vmatpush3.msra.mxu0 %v4773_v59  ;;  %v4772_v23 = vld [vmem:[#allocation14 + $0x10] sm:$0xff]  ;;  %v4771_v35 = vld [vmem:[#allocation14 + $0x8] sm:$0xff] }
 0x520   : > { %v4156_v18 = vpop.f32.mrf.mxu1  ;;  %v4385_v2 = vcombine.low %v5462_v43, %v5490_v55  ;;  %v4386_v24 = vcombine.high %v5462_v43, %v5490_v55  ;;  %v4512_v28 = vrot.slane %v4505_v45, %v6498_v53  ;;  %v4520_v43 = vrot.slane %v5220_v31, %v6498_v53  ;;  %5493 = vmatprep.subr.mxu0 %v4772_v23 }
 0x521   : > { %v4317_v12 = vcombine.low %v3832_v56, %v4156_v18  ;;  %v4318_v4 = vcombine.high %v3832_v56, %v4156_v18  ;;  %v4437_v44 = vcombine.low %v4205_v49, %v4212_v50  ;;  %v5218_v16 = vcombine.high %v4205_v49, %v4212_v50  ;;  %5494 = vmatpush3.msra.mxu0 %v4772_v23 }
 0x522   : > { %v4393_v9 = vrot.slane %v4385_v2, %v6498_v53  ;;  %v4400_v1 = vrot.slane %v4386_v24, %v6498_v53  ;;  %v4453_v38 = vcombine.low %v4221_v32, %v4228_v47  ;;  %v5219_v34 = vcombine.high %v4221_v32, %v4228_v47  ;;  %5495 = vmatprep.subr.mxu0 %v4771_v35 }
 0x523   : > { %v4325_v54 = vrot.slane %v4317_v12, %v6498_v53  ;;  %v4332_v61 = vrot.slane %v4318_v4, %v6498_v53  ;;  %v4528_v52 = vrot.slane %v4521_v7, %v6498_v53  ;;  %v4536_v14 = vrot.slane %v5221_v8, %v6498_v53  ;;  %5496 = vmatpush3.msra.mxu0 %v4771_v35  ;;  %v4770_v8 = vld [vmem:[#allocation14] sm:$0xff] }
 0x524   : > { %v4401_v48 = vcombine.low %v4377_v6, %v4393_v9  ;;  %v4402_v56 = vcombine.high %v4377_v6, %v4393_v9  ;;  %v4417_v58 = vcombine.low %v4384_v40, %v4400_v1  ;;  %v4418_v25 = vcombine.high %v4384_v40, %v4400_v1  ;;  %5497 = vmatprep.subr.mxu0 %v4770_v8 }
 0x525   : > { %v4333_v26 = vcombine.low %v4309_v36, %v4325_v54  ;;  %v4334_v57 = vcombine.high %v4309_v36, %v4325_v54  ;;  %v4349_v17 = vcombine.low %v4316_v22, %v4332_v61  ;;  %v4350_v62 = vcombine.high %v4316_v22, %v4332_v61  ;;  %5498 = vmatpush3.msra.mxu0 %v4770_v8 }
 0x526   : > { %v7219_v42 = vrot.slane %v4401_v48, %v6502_v60  ;;  %v7222_v11 = vrot.slane %v4402_v56, %v6502_v60  ;;  %v4425_v19 = vrot.slane %v4417_v58, %v6502_v60  ;;  %v4432_v21 = vrot.slane %v4418_v25, %v6502_v60 }
 0x527   : > { %v4341_v63 = vrot.slane %v4333_v26, %v6502_v60  ;;  %v4348_v46 = vrot.slane %v4334_v57, %v6502_v60  ;;  %v4357_v41 = vrot.slane %v4349_v17, %v6502_v60  ;;  %v4364_v3 = vrot.slane %v4350_v62, %v6502_v60 }
 0x528   : > { %v4641_v20 = vcombine.low %v7219_v42, %v7222_v11  ;;  %v5224_v0 = vcombine.high %v7219_v42, %v7222_v11  ;;  %v4538_v40 = vcombine.high %v4512_v28, %v4520_v43  ;;  %v4554_v13 = vcombine.high %v4528_v52, %v4536_v14 }
 0x529   : > { %v4573_v15 = vcombine.low %v4341_v63, %v4348_v46  ;;  %v5222_v27 = vcombine.high %v4341_v63, %v4348_v46  ;;  %v4589_v37 = vcombine.low %v4357_v41, %v4364_v3  ;;  %v5223_v6 = vcombine.high %v4357_v41, %v4364_v3 }
 0x52a   : > { %v4537_v39 = vcombine.low %v4512_v28, %v4520_v43  ;;  %v4553_v33 = vcombine.low %v4528_v52, %v4536_v14  ;;  %v4444_v10 = vrot.slane %v4437_v44, %v6498_v53  ;;  %v4452_v5 = vrot.slane %v5218_v16, %v6498_v53 }
 0x52b   : > { %v4460_v29 = vrot.slane %v4453_v38, %v6498_v53  ;;  %v4468_v30 = vrot.slane %v5219_v34, %v6498_v53  ;;  %v4552_v51 = vrot.slane %v4538_v40, %v6502_v60  ;;  %v4568_v55 = vrot.slane %v4554_v13, %v6502_v60 }
 0x52c   : > { %v7243_v36 = vrot.slane %v4537_v39, %v6502_v60  ;;  %v7246_v22 = vrot.slane %v4553_v33, %v6502_v60  ;;  %v4470_v45 = vcombine.high %v4444_v10, %v4452_v5  ;;  %v4469_v49 = vcombine.low %v4444_v10, %v4452_v5 }
 0x52d   : > { %v4486_v31 = vcombine.high %v4460_v29, %v4468_v30  ;;  %v4485_v50 = vcombine.low %v4460_v29, %v4468_v30  ;;  %v4657_v32 = vcombine.low %v4425_v19, %v4432_v21  ;;  %v4571_v47 = vcombine.low %v4552_v51, %v4568_v55 }
 0x52e   : > { %v4570_v18 = vcombine.high %v7243_v36, %v7246_v22  ;;  %v4580_v2 = vrot.slane %v4573_v15, %v6498_v53  ;;  %v5225_v24 = vcombine.high %v4425_v19, %v4432_v21  ;;  %v4572_v12 = vcombine.high %v4552_v51, %v4568_v55 }
 0x52f   : > { %v4484_v4 = vrot.slane %v4470_v45, %v6502_v60  ;;  %v4500_v7 = vrot.slane %v4486_v31, %v6502_v60  ;;  %4731 = vrot.lane.b32.xlu1 %v4571_v47, %s6068_s29  ;;  %v4588_v44 = vrot.slane %v5222_v27, %v6498_v53  ;;  %v4596_v16 = vrot.slane %v4589_v37, %v6498_v53 }
 0x530   : > { %4715 = vrot.lane.b32.xlu0 %v4570_v18, %s6069_s20  ;;  %v4604_v9 = vrot.slane %v5223_v6, %v6498_v53  ;;  %v4477_v54 = vrot.slane %v4469_v49, %v6502_v60  ;;  %v4493_v61 = vrot.slane %v4485_v50, %v6502_v60  ;;  %v4648_v38 = vrot.slane %v4641_v20, %v6498_v53 }
 0x531   : > { %v4504_v1 = vcombine.high %v4484_v4, %v4500_v7  ;;  %v4605_v34 = vcombine.low %v4580_v2, %v4588_v44  ;;  %v4606_v43 = vcombine.high %v4580_v2, %v4588_v44  ;;  %v4656_v56 = vrot.slane %v5224_v0, %v6498_v53 }
 0x532   : > { %v4621_v28 = vcombine.low %v4596_v16, %v4604_v9  ;;  %v4622_v48 = vcombine.high %v4596_v16, %v4604_v9  ;;  %v4664_v58 = vrot.slane %v4657_v32, %v6498_v53  ;;  %v4672_v25 = vrot.slane %v5225_v24, %v6498_v53 }
 0x533   : > { %v4569_v26 = vcombine.low %v7243_v36, %v7246_v22  ;;  %4747 = vrot.lane.b32.xlu1 %v4572_v12, %s6070_s11  ;;  %v4613_v57 = vrot.slane %v4605_v34, %v6502_v60  ;;  %v4502_v62 = vcombine.high %v4477_v54, %v4493_v61  ;;  %v4620_v42 = vrot.slane %v4606_v43, %v6502_v60 }
 0x534   : > { %4745 = vrot.lane.b32.xlu0 %v4504_v1, %s6070_s11  ;;  %v4629_v17 = vrot.slane %v4621_v28, %v6502_v60  ;;  %v4673_v11 = vcombine.low %v4648_v38, %v4656_v56  ;;  %v4689_v52 = vcombine.low %v4664_v58, %v4672_v25  ;;  %v4636_v53 = vrot.slane %v4622_v48, %v6502_v60 }
 0x535   : > { %v4501_v63 = vcombine.low %v4477_v54, %v4493_v61  ;;  %v4503_v19 = vcombine.low %v4484_v4, %v4500_v7  ;;  %v4674_v20 = vcombine.high %v4648_v38, %v4656_v56  ;;  %v4690_v0 = vcombine.high %v4664_v58, %v4672_v25  ;;  %v5226_v7 = vld [vmem:[#allocation16] ss:$0 sm:$0xff] }
 0x536   : > { %v4638_v14 = vcombine.high %v4613_v57, %v4629_v17  ;;  %v4637_v46 = vcombine.low %v4613_v57, %v4629_v17  ;;  %v4681_v41 = vrot.slane %v4673_v11, %v6502_v60  ;;  %v4697_v3 = vrot.slane %v4689_v52, %v6502_v60 }
 0x537   : > { %4713 = vrot.lane.b32.xlu1 %v4502_v62, %s6069_s20  ;;  %v4639_v21 = vcombine.low %v4620_v42, %v4636_v53  ;;  %v4640_v27 = vcombine.high %v4620_v42, %v4636_v53  ;;  %v4688_v37 = vrot.slane %v4674_v20, %v6502_v60  ;;  %v4704_v6 = vrot.slane %v4690_v0, %v6502_v60 }
 0x538   : > { %4717 = vrot.lane.b32.xlu0 %v4638_v14, %s6069_s20  ;;  %v4705_v59 = vcombine.low %v4681_v41, %v4697_v3  ;;  %v4706_v15 = vcombine.high %v4681_v41, %v4697_v3 }
 0x539   : > { %v4707_v40 = vcombine.low %v4688_v37, %v4704_v6  ;;  %v4708_v13 = vcombine.high %v4688_v37, %v4704_v6 }
 0x53b   : > { %4729 = vrot.lane.b32.xlu1 %v4503_v19, %s6068_s29 }
 0x53c   : > { %4733 = vrot.lane.b32.xlu0 %v4639_v21, %s6068_s29 }
 0x53f   : > { %4719 = vrot.lane.b32.xlu1 %v4706_v15, %s6069_s20 }
 0x540   : > { %4749 = vrot.lane.b32.xlu0 %v4640_v27, %s6070_s11 }
 0x543   : > { %4735 = vrot.lane.b32.xlu1 %v4707_v40, %s6068_s29 }
 0x547   : > { %4751 = vrot.lane.b32.xlu1 %v4708_v13, %s6070_s11 }
 0x5a1   : > { %v4732_v39 = vpop.permute.xlu1 %4731 }
 0x5a2   : > { %v4716_v33 = vpop.permute.xlu0 %4715 }
 0x5a3   : > { %v4758_v23 = vsel %vm2643_vm1, %v4569_v26, %v4716_v33 }
 0x5a4   : > { %v4762_v36 = vsel %vm3340_vm2, %v4758_v23, %v4732_v39 }
 0x5a5   : > { %v4748_v10 = vpop.permute.xlu1 %4747 }
 0x5a6   : > { %v4746_v5 = vpop.permute.xlu0 %4745  ;;  %v4767_v45 = vsel %vm4765_vm3, %v4762_v36, %v4748_v10 }
 0x5a9   : > { %v4714_v29 = vpop.permute.xlu1 %4713 }
 0x5aa   : > { %v4718_v30 = vpop.permute.xlu0 %4717  ;;  %v4757_v60 = vsel %vm2643_vm1, %v4501_v63, %v4714_v29 }
 0x5ab   : > { %v4759_v31 = vsel %vm2643_vm1, %v4637_v46, %v4718_v30 }
 0x5ad   : > { %v4730_v35 = vpop.permute.xlu1 %4729 }
 0x5ae   : > { %v4734_v51 = vpop.permute.xlu0 %4733  ;;  %v4761_v55 = vsel %vm3340_vm2, %v4757_v60, %v4730_v35 }
 0x5af   : > { %v4766_v22 = vsel %vm4765_vm3, %v4761_v55, %v4746_v5  ;;  %v4763_v49 = vsel %vm3340_vm2, %v4759_v31, %v4734_v51 }
 0x5b0   : > { %5499 = vmatprep.mubr.msk.f32.mxu0 %vm595_vm0, %v4766_v22 }
 0x5b1   : > { %v4720_v50 = vpop.permute.xlu1 %4719  ;;  %5500 = vmatmul.mubr.msk.f32.vlgmr.msra.gmra.mxu0 %vm595_vm0, %v4767_v45 }
 0x5b2   : > { %v4750_v32 = vpop.permute.xlu0 %4749  ;;  %v4760_v2 = vsel %vm2643_vm1, %v4705_v59, %v4720_v50 }
 0x5b3   : > { %v4768_v47 = vsel %vm4765_vm3, %v4763_v49, %v4750_v32 }
 0x5b4   : > { %5502 = vmatprep.mubr.msk.f32.mxu0 %vm595_vm0, %v4768_v47 }
 0x5b5   : > { %v4736_v18 = vpop.permute.xlu1 %4735 }
 0x5b6   : > { %v4764_v24 = vsel %vm3340_vm2, %v4760_v2, %v4736_v18 }
 0x5b9   : > { %v4752_v12 = vpop.permute.xlu1 %4751 }
 0x5ba   : > { %v4769_v4 = vsel %vm4765_vm3, %v4764_v24, %v4752_v12 }
 0x5bb   : > { %5503 = vmatmul.mubr.msk.f32.gmra.mxu0 %vm595_vm0, %v4769_v4 }
 0x671   : > { %v5501_v8 = vpop.f32.mrf.mxu0 }
 0x672   : > { %v4865_v44 = vadd.f32 %v5501_v8, %v5226_v7 }
 0x673   : > { %v4859_v16 = vpop.f32.mrf.mxu0 }
 0x674   : > { %4879 = vst.msk [vmem:[%s577_s24 + $0x8] sm:$0xff] %vm595_vm0, %v4865_v44  ;;  %v4860_v9 = vadd.f32 %v5226_v7, %v4859_v16 }
 0x676   : > { %4878 = vst.msk [vmem:[%s577_s24] sm:$0xff] %vm595_vm0, %v4860_v9 }
 0x67b   : > { %v5504_v1 = vpop.f32.mrf.mxu0 }
 0x67c   : > { %v4875_v54 = vadd.f32 %v5504_v1, %v5226_v7 }
 0x67d   : > { %v4869_v61 = vpop.f32.mrf.mxu0 }
 0x67e   : > { %4881 = vst.msk [vmem:[%s577_s24 + $0x18] sm:$0xff] %vm595_vm0, %v4875_v54  ;;  %v4870_v38 = vadd.f32 %v5226_v7, %v4869_v61 }
 0x680   : > { %4880 = vst.msk [vmem:[%s577_s24 + $0x10] sm:$0xff] %vm595_vm0, %v4870_v38 }
 0x681   : > { %5963 = shalt.err (!%p5960_p6)
}
 0x682   : > { %s5964_s21 = scalar_lea.hbm %s7310_s5, 512  ;;  %s5968_s13 = scalar_lea.hbm %s7430_s26, 1024 }
 0x683   : > { %p5965_p3 = scmp.ne.s32.totalorder %s7310_s5, %s5964_s21  ;;  %p5969_p5 = scmp.lt.s32.totalorder %s7310_s5, %s7430_s26 }
 0x684   : > { %p5970_p4 = scmp.lt.s32.totalorder %s5968_s13, %s5964_s21 }
 0x685   : > { %p5966_p12 = pnand %p5965_p3, %p7431_p7 }
 0x686   : > { %p5971_p11 = por %p5970_p4, %p5969_p5 }
 0x687   : > { %p5967_p0 = pneg %p5966_p12 }
 0x689   : > { %p5972_p8 = pnand %p5971_p11, %p5967_p0 }
 0x68b   : > { %5975 = shalt.err (!%p5972_p8)
}
 0x68c   : > { %s6072_s29 = smov 128  }
 0x68d   : > { %5533 = dma.vmem_to_hbm [thread:$0]  (%p7431_p7), %s7304_s22, 512, %s7310_s5, %s4883_s7, %s6072_s29, %s6072_s29, %s6069_s20  }
 0x68e PF: > { %s7432_s11 = sld [smem:[#allocation25_spill]]  ;;  %p7435_p13 = scmp.ge.s32.totalorder %s6050_s18, 2 }
 0x68f   : > { %s7433_s24 = sld [smem:[#allocation27_spill]] }
 0x694   : > { %s4914_s6 = sand.u32 1, %s7432_s11  }
 0x695   : > { %p7434_p10 = scmp.ne.s32.totalorder %s7433_s24, 0  ;;  %s4915_s4 = scalar_lea.sflag [#allocation4], %s4914_s6 }
 0x697   : > { %p5565_p9 = pnand %p7435_p13, %p7434_p10 }
 0x699   : > { %p5566_p1 = pneg %p5565_p9 }
 0x69b   : > { %6025 = dma.done.wait (%p5566_p1), %s4915_s4, 512  }
 0x69c   : > { %6027 = vsyncadd (%p5566_p1), %s4915_s4, 4294966784  ;;  %s34_s18 = sadd.s32 1, %s6050_s18   ;;  %s7436_s28 = sld [smem:[#allocation30_spill]] }
 0x69d   : > { %p31_p2 = scmp.ge.s32.totalorder %s34_s18, 4   ;;  %s7437_s16 = sld [smem:[#allocation26_spill]] }
 0x69e   : > { %s7438_s17 = sld [smem:[#allocation29_spill]]  ;;  %s7439_s13 = smov %s6034_s14 }
 0x69f   : > { %s7440_s14 = smov %s6038_s15  ;;  %33 = sbr.rel (!%p31_p2) target bundleno = 19 (0x13), region = 162 }
 0x6a2   : > { %s7441_s15 = smov %s7436_s28 }
 0x6a4   :  { %4920 = vsyncpa [#allocation3], 1 }
 0x6a5   :  { %4922 = vsyncpa [#allocation3 + $0x1], 1 }
 0x6a6   :  { %4923 = vsyncpa [#allocation6], 1 }
 0x6a7   :  { %4925 = vsyncpa [#allocation6 + $0x1], 1 }
 0x6a8   :  { %4926 = vsyncpa [#allocation9], 1 }
 0x6a9   :  { %4928 = vsyncpa [#allocation9 + $0x1], 1 }
 0x6aa   :  { %4929 = vsyncpa [#allocation12], 1 }
 0x6ab   :  { %4930 = vsyncpa [#allocation15], 1 }
 0x6ac   :  { %4931 = vsyncpa [#allocation4], 1 }
 0x6ad   :  { %4933 = vsyncpa [#allocation4 + $0x1], 1 }

</bundles_post_ra>
